<compile_context>
chip_gen: v7x
topology: tpu7x:2x2x1
jax: 0.10.0
libtpu: 0.0.40
codegen_flags: <defaults>
</compile_context>

<pallas_src>
import functools
import numpy as np
import jax
import jax.numpy as jnp
from jax.experimental import pallas as pl
from jax.experimental.pallas import tpu as pltpu

VMEM = pltpu.MemorySpace.VMEM
_CP = pltpu.CompilerParams(vmem_limit_bytes=64 * 1024 * 1024)


def _vspecs(n):
    return [pl.BlockSpec(memory_space=VMEM) for _ in range(n)]


def _swish(x):
    return x * jax.nn.sigmoid(x)


# ----------------------------------------------------------------------------
# Fused Pallas kernels (one per SphereNet block)
# ----------------------------------------------------------------------------
def _init_e_kernel(sel_z_ref, emb_ref, rbf_ref, sel_i_ref, sel_j_ref,
                   w_rbf0_ref, b_rbf0_ref, w_i_ref, w_j_ref, w_r_ref,
                   b_lin_ref, w_rbf1_ref, e1_out, e2_out):
    f32 = jnp.float32
    x = jnp.dot(sel_z_ref[...], emb_ref[...], preferred_element_type=f32)      # Embedding(z)
    rbf = rbf_ref[...]
    rbf0 = _swish(jnp.dot(rbf, w_rbf0_ref[...], preferred_element_type=f32)
                  + b_rbf0_ref[...])
    xi = jnp.dot(sel_i_ref[...], x, preferred_element_type=f32)                # x[i]
    xj = jnp.dot(sel_j_ref[...], x, preferred_element_type=f32)                # x[j]
    # lin(cat([xi, xj, rbf0])) without materializing the concat (weight split at fold time)
    pre = (jnp.dot(xi, w_i_ref[...], preferred_element_type=f32)
           + jnp.dot(xj, w_j_ref[...], preferred_element_type=f32)
           + jnp.dot(rbf0, w_r_ref[...], preferred_element_type=f32)
           + b_lin_ref[...])
    e1 = _swish(pre)
    e1_out[...] = e1
    e2_out[...] = jnp.dot(rbf, w_rbf1_ref[...], preferred_element_type=f32) * e1


def init_e_block(p, sel_z, rbf, sel_i, sel_j):
    E = rbf.shape[0]
    H = p["emb_table"].shape[1]
    args = [sel_z, p["emb_table"], rbf, sel_i, sel_j,
            p["lin_rbf_0"]["w"], p["lin_rbf_0"]["b"],
            p["w_i"], p["w_j"], p["w_r"], p["b_lin"], p["w_rbf_1"]]
    return pl.pallas_call(
        _init_e_kernel,
        out_shape=(jax.ShapeDtypeStruct((E, H), jnp.float32),
                   jax.ShapeDtypeStruct((E, H), jnp.float32)),
        in_specs=_vspecs(len(args)),
        out_specs=(pl.BlockSpec(memory_space=VMEM), pl.BlockSpec(memory_space=VMEM)),
        compiler_params=_CP,
    )(*args)


def _update_e_kernel(nb, na, *refs):
    f32 = jnp.float32
    (e1_ref, rbf_ref, sbf_ref, tbf_ref, sel_kj_ref, sel_jiT_ref,
     w_ji_ref, b_ji_ref, w_kj_ref, b_kj_ref,
     w_rbf12_ref, w_down_ref, w_sbf12_ref, w_t12_ref, w_up_ref) = refs[:15]
    idx = 15
    before = []
    for _ in range(nb):
        before.append(refs[idx:idx + 4]); idx += 4
    w_lin_ref, b_lin_ref = refs[idx:idx + 2]; idx += 2
    after = []
    for _ in range(na):
        after.append(refs[idx:idx + 4]); idx += 4
    w_rbf_e2_ref = refs[idx]; idx += 1
    e1_out, e2_out = refs[idx:idx + 2]

    x1 = e1_ref[...]
    rbf0 = rbf_ref[...]
    x_ji = _swish(jnp.dot(x1, w_ji_ref[...], preferred_element_type=f32) + b_ji_ref[...])
    x_kj = _swish(jnp.dot(x1, w_kj_ref[...], preferred_element_type=f32) + b_kj_ref[...])

    rbf_h = jnp.dot(rbf0, w_rbf12_ref[...], preferred_element_type=f32)        # folded rbf1@rbf2
    x_kj = x_kj * rbf_h
    x_kj = _swish(jnp.dot(x_kj, w_down_ref[...], preferred_element_type=f32))  # [E, I]

    x_kj_t = jnp.dot(sel_kj_ref[...], x_kj, preferred_element_type=f32)        # gather -> [T, I]
    sbf_p = jnp.dot(sbf_ref[...], w_sbf12_ref[...], preferred_element_type=f32)
    x_kj_t = x_kj_t * sbf_p
    t_p = jnp.dot(tbf_ref[...], w_t12_ref[...], preferred_element_type=f32)
    x_kj_t = x_kj_t * t_p

    x_agg = jnp.dot(sel_jiT_ref[...], x_kj_t, preferred_element_type=f32)      # scatter-add -> [E, I]
    x_up = _swish(jnp.dot(x_agg, w_up_ref[...], preferred_element_type=f32))   # [E, H]

    e1 = x_ji + x_up
    for (wa, ba, wb, bb) in before:
        h = _swish(jnp.dot(e1, wa[...], preferred_element_type=f32) + ba[...])
        h = _swish(jnp.dot(h, wb[...], preferred_element_type=f32) + bb[...])
        e1 = e1 + h
    e1 = _swish(jnp.dot(e1, w_lin_ref[...], preferred_element_type=f32) + b_lin_ref[...]) + x1
    for (wa, ba, wb, bb) in after:
        h = _swish(jnp.dot(e1, wa[...], preferred_element_type=f32) + ba[...])
        h = _swish(jnp.dot(h, wb[...], preferred_element_type=f32) + bb[...])
        e1 = e1 + h

    e1_out[...] = e1
    e2_out[...] = jnp.dot(rbf0, w_rbf_e2_ref[...], preferred_element_type=f32) * e1


def update_e_block(p, e1, rbf, sbf, tbf, sel_kj, sel_jiT, cfg):
    E, H = e1.shape
    nb, na = cfg["num_before_skip"], cfg["num_after_skip"]
    args = [e1, rbf, sbf, tbf, sel_kj, sel_jiT,
            p["lin_ji"]["w"], p["lin_ji"]["b"], p["lin_kj"]["w"], p["lin_kj"]["b"],
            p["w_rbf12"], p["w_down"], p["w_sbf12"], p["w_t12"], p["w_up"]]
    for pair in p["before_skip"]:
        args += [pair[0]["w"], pair[0]["b"], pair[1]["w"], pair[1]["b"]]
    args += [p["lin"]["w"], p["lin"]["b"]]
    for pair in p["after_skip"]:
        args += [pair[0]["w"], pair[0]["b"], pair[1]["w"], pair[1]["b"]]
    args += [p["w_rbf"]]
    return pl.pallas_call(
        functools.partial(_update_e_kernel, nb, na),
        out_shape=(jax.ShapeDtypeStruct((E, H), jnp.float32),
                   jax.ShapeDtypeStruct((E, H), jnp.float32)),
        in_specs=_vspecs(len(args)),
        out_specs=(pl.BlockSpec(memory_space=VMEM), pl.BlockSpec(memory_space=VMEM)),
        compiler_params=_CP,
    )(*args)


def _update_v_kernel(nlins, *refs):
    f32 = jnp.float32
    e2_ref, sel_iT_ref, sel_bT_ref, w_up_ref, b_up_ref = refs[:5]
    idx = 5
    lins = []
    for _ in range(nlins):
        lins.append(refs[idx:idx + 2]); idx += 2
    w_out_ref = refs[idx]; idx += 1
    u_out = refs[idx]

    v = jnp.dot(sel_iT_ref[...], e2_ref[...], preferred_element_type=f32)      # scatter(e2, i) -> [N,H]
    v = jnp.dot(v, w_up_ref[...], preferred_element_type=f32) + b_up_ref[...]  # lin_up (no act)
    for (w, b) in lins:
        v = _swish(jnp.dot(v, w[...], preferred_element_type=f32) + b[...])
    v = jnp.dot(v, w_out_ref[...], preferred_element_type=f32)                 # lin (bias=False)
    u_out[...] = jnp.dot(sel_bT_ref[...], v, preferred_element_type=f32)       # scatter(v, batch)


def update_v_block(p, e2, sel_iT, sel_bT, cfg):
    G = sel_bT.shape[0]
    OC = cfg["out_channels"]
    nl = cfg["num_output_layers"]
    args = [e2, sel_iT, sel_bT, p["lin_up"]["w"], p["lin_up"]["b"]]
    for lin in p["lins"]:
        args += [lin["w"], lin["b"]]
    args += [p["lin"]["w"]]
    return pl.pallas_call(
        functools.partial(_update_v_kernel, nl),
        out_shape=jax.ShapeDtypeStruct((G, OC), jnp.float32),
        in_specs=_vspecs(len(args)),
        out_specs=pl.BlockSpec(memory_space=VMEM),
        compiler_params=_CP,
    )(*args)


# ----------------------------------------------------------------------------
# Graph / geometry glue  (radius_graph + xyz_to_dat equivalents)
# ----------------------------------------------------------------------------
def build_graph_indices(N):
    """Static complete directed graph (data constructed so radius_graph == complete graph)."""
    # TODO(synk): dynamic edge pruning by cutoff (radius_graph) needs dynamic shapes.
    edges = [(s, t) for s in range(N) for t in range(N) if s != t]   # (j, i) = (src, dst)
    eid = {e: k for k, e in enumerate(edges)}
    j_idx = np.array([e[0] for e in edges], np.int32)
    i_idx = np.array([e[1] for e in edges], np.int32)
    t_k, t_j, t_i, idx_kj, idx_ji = [], [], [], [], []
    for e, (jv, iv) in enumerate(edges):
        for kv in range(N):
            if kv == jv or kv == iv:
                continue
            t_k.append(kv); t_j.append(jv); t_i.append(iv)
            idx_kj.append(eid[(kv, jv)])     # edge k -> j
            idx_ji.append(e)                 # edge j -> i
    return (j_idx, i_idx,
            np.array(t_k, np.int32), np.array(t_j, np.int32), np.array(t_i, np.int32),
            np.array(idx_kj, np.int32), np.array(idx_ji, np.int32))


def xyz_to_dat_geometry(pos, idxs):
    """dist per edge, angle & torsion per triplet (matches DIG xyz_to_dat, use_torsion=True)."""
    j_idx, i_idx, t_k, t_j, t_i, _, _ = idxs
    dist = jnp.linalg.norm(pos[i_idx] - pos[j_idx], axis=-1)           # [E]

    pos_ji = pos[t_i] - pos[t_j]                                       # [T,3]
    pos_jk = pos[t_k] - pos[t_j]                                       # [T,3]
    a = jnp.sum(pos_ji * pos_jk, -1)
    b = jnp.linalg.norm(jnp.cross(pos_ji, pos_jk), axis=-1)
    angle = jnp.arctan2(b, a)                                          # [T]

    N = pos.shape[0]
    kn = jnp.arange(N)
    pos_jkn = pos[kn][None, :, :] - pos[t_j][:, None, :]               # [T,N,3]
    plane1 = jnp.cross(pos_ji, pos_jk)                                 # [T,3]
    plane2 = jnp.cross(pos_ji[:, None, :], pos_jkn)                    # [T,N,3]
    dist_ji = jnp.linalg.norm(pos_ji, axis=-1)
    aa = jnp.sum(plane1[:, None, :] * plane2, -1)
    bb = jnp.sum(jnp.cross(plane1[:, None, :], plane2) *
                 pos_ji[:, None, :], -1) / dist_ji[:, None]
    tors = jnp.arctan2(bb, aa)
    tors = jnp.where(tors <= 0, tors + 2.0 * jnp.pi, tors)
    valid = (kn[None, :] != t_j[:, None]) & (kn[None, :] != t_i[:, None])
    torsion = jnp.min(jnp.where(valid, tors, jnp.inf), axis=1)         # [T]
    return dist, angle, torsion


# ----------------------------------------------------------------------------
# Basis functions (emb block) — plain JAX one-time glue
# ----------------------------------------------------------------------------
_J_ZEROS = np.array([
    [np.pi, 2 * np.pi, 3 * np.pi, 4 * np.pi],
    [4.493409457909064, 7.725251836937707, 10.904121659428899, 14.066193912831473],
    [5.763459196894550, 9.095011330476355, 12.322940970566582, 15.514603010886749],
])


def _sph_jn_np(l, x):
    s, c = np.sin(x), np.cos(x)
    if l == 1:
        return s / x ** 2 - c / x
    if l == 2:
        return (3.0 / x ** 2 - 1.0) * s / x - 3.0 * c / x ** 2
    if l == 3:
        return (15.0 / x ** 3 - 6.0 / x) * s / x - (15.0 / x ** 2 - 1.0) * c / x
    return s / x


_J_NORM = np.stack([1.0 / np.sqrt(0.5 * _sph_jn_np(l + 1, _J_ZEROS[l]) ** 2)
                    for l in range(3)])


def _sph_j(l, x):
    s, c = jnp.sin(x), jnp.cos(x)
    if l == 0:
        return s / x
    if l == 1:
        return s / x ** 2 - c / x
    return (3.0 / x ** 2 - 1.0) * s / x - 3.0 * c / x ** 2


def dist_emb(dist, cfg):
    K = cfg["num_radial"]
    p = cfg["envelope_exponent"] + 1
    d = (dist / cfg["cutoff"])[:, None]
    freq = jnp.arange(1, K + 1, dtype=jnp.float32) * jnp.pi
    a = -(p + 1) * (p + 2) / 2.0
    b = p * (p + 2)
    c = -p * (p + 1) / 2.0
    env = 1.0 / d + a * d ** (p - 1) + b * d ** p + c * d ** (p + 1)
    return env * jnp.sin(freq * d)                                     # [E, K]


def radial_bessel(dist, cfg):
    L, K = cfg["num_spherical"], cfg["num_radial"]
    assert L <= 3 and K <= 4, "hard-coded Bessel zeros cover L<=3, K<=4"
    d = dist / cfg["cutoff"]
    cols = []
    for l in range(L):
        for n in range(K):
            cols.append(_J_NORM[l, n] * _sph_j(l, _J_ZEROS[l, n] * d))
    return jnp.stack(cols, axis=-1)                                    # [E, L*K]


def sph_harm_m0(theta):
    ct = jnp.cos(theta)
    return jnp.stack([jnp.full_like(theta, 0.28209479177387814),
                      0.4886025119029199 * ct,
                      0.31539156525252005 * (3.0 * ct ** 2 - 1.0)], axis=-1)


def sph_harm_full(theta, phi):
    # TODO(synk): negative-m sign convention may differ from DimeNet's sympy-derived harmonics.
    st, ct = jnp.sin(theta), jnp.cos(theta)
    sp, cp = jnp.sin(phi), jnp.cos(phi)
    y00 = jnp.full_like(theta, 0.28209479177387814)
    y1m1 = 0.4886025119029199 * st * sp
    y10 = 0.4886025119029199 * ct
    y11 = 0.4886025119029199 * st * cp
    y2m2 = 0.5462742152960396 * st ** 2 * (2.0 * sp * cp)
    y2m1 = 1.0925484305920792 * st * ct * sp
    y20 = 0.31539156525252005 * (3.0 * ct ** 2 - 1.0)
    y21 = 1.0925484305920792 * st * ct * cp
    y22 = 0.5462742152960396 * st ** 2 * (cp ** 2 - sp ** 2)
    return jnp.stack([y00, y1m1, y10, y11, y2m2, y2m1, y20, y21, y22], axis=-1)


def emb_fn(dist, angle, torsion, idx_kj, cfg):
    L, K = cfg["num_spherical"], cfg["num_radial"]
    rbf = dist_emb(dist, cfg)                                          # [E, K]
    rbf_lk = radial_bessel(dist, cfg)                                  # [E, L*K]
    rbf_g = rbf_lk[idx_kj]                                             # [T, L*K] plain gather
    T = rbf_g.shape[0]
    sbf = (rbf_g.reshape(T, L, K) * sph_harm_m0(angle)[:, :, None]).reshape(T, L * K)
    cbf = sph_harm_full(angle, torsion).reshape(T, L, L)
    tbf = (rbf_g.reshape(T, 1, L, K) * cbf[:, :, :, None]).reshape(T, L * L * K)
    return rbf, sbf, tbf


# ----------------------------------------------------------------------------
# Parameters (deterministic synthetic init) + fold (inference-time weight algebra)
# ----------------------------------------------------------------------------
class _Keys:
    def __init__(self, key):
        self._key = key

    def next(self):
        self._key, k = jax.random.split(self._key)
        return k


def _linear(ks, din, dout, bias=True):
    w = jax.random.normal(ks.next(), (din, dout), jnp.float32) / np.sqrt(din)
    if bias:
        b = jax.random.normal(ks.next(), (1, dout), jnp.float32) * 0.05
    else:
        b = jnp.zeros((1, dout), jnp.float32)
    return {"w": w, "b": b}


def make_params(key, cfg):
    ks = _Keys(key)
    H, K, L = cfg["hidden_channels"], cfg["num_radial"], cfg["num_spherical"]
    I, OE, OC = cfg["int_emb_size"], cfg["out_emb_channels"], cfg["out_channels"]
    Bd, Ba, Bt = (cfg["basis_emb_size_dist"], cfg["basis_emb_size_angle"],
                  cfg["basis_emb_size_torsion"])

    def update_v_params():
        return {"lin_up": _linear(ks, H, OE),
                "lins": [_linear(ks, OE, OE) for _ in range(cfg["num_output_layers"])],
                "lin": _linear(ks, OE, OC, bias=False)}

    def update_e_params():
        return {"lin_rbf1": _linear(ks, K, Bd, bias=False),
                "lin_rbf2": _linear(ks, Bd, H, bias=False),
                "lin_sbf1": _linear(ks, L * K, Ba, bias=False),
                "lin_sbf2": _linear(ks, Ba, I, bias=False),
                "lin_t1": _linear(ks, L * L * K, Bt, bias=False),
                "lin_t2": _linear(ks, Bt, I, bias=False),
                "lin_rbf": _linear(ks, K, H, bias=False),
                "lin_kj": _linear(ks, H, H),
                "lin_ji": _linear(ks, H, H),
                "lin_down": _linear(ks, H, I, bias=False),
                "lin_up": _linear(ks, I, H, bias=False),
                "before_skip": [[_linear(ks, H, H), _linear(ks, H, H)]
                                for _ in range(cfg["num_before_skip"])],
                "lin": _linear(ks, H, H),
                "after_skip": [[_linear(ks, H, H), _linear(ks, H, H)]
                               for _ in range(cfg["num_after_skip"])]}

    return {"init_e": {"emb_table": jax.random.uniform(ks.next(), (95, H), jnp.float32,
                                                       -np.sqrt(3.0), np.sqrt(3.0)),
                       "lin_rbf_0": _linear(ks, K, H),
                       "lin": _linear(ks, 3 * H, H),
                       "lin_rbf_1": _linear(ks, K, H, bias=False)},
            "init_v": update_v_params(),
            "update_es": [update_e_params() for _ in range(cfg["num_layers"])],
            "update_vs": [update_v_params() for _ in range(cfg["num_layers"])]}


def fold_params(params, cfg):
    """Pre-fold inference-time weight algebra once (exact: no bias/activation between pairs)."""
    H = cfg["hidden_channels"]
    pe = params["init_e"]
    w3 = pe["lin"]["w"]                      # [3H, H] -> split (no concat in kernel)
    folded = {
        "init_e": {"emb_table": pe["emb_table"],
                   "lin_rbf_0": pe["lin_rbf_0"],
                   "w_i": w3[:H], "w_j": w3[H:2 * H], "w_r": w3[2 * H:],
                   "b_lin": pe["lin"]["b"],
                   "w_rbf_1": pe["lin_rbf_1"]["w"]},
        "init_v": params["init_v"],
        "update_vs": params["update_vs"],
        "update_es": [],
    }
    for p in params["update_es"]:
        folded["update_es"].append({
            "lin_ji": p["lin_ji"], "lin_kj": p["lin_kj"],
            "w_rbf12": p["lin_rbf1"]["w"] @ p["lin_rbf2"]["w"],     # [K, H]
            "w_sbf12": p["lin_sbf1"]["w"] @ p["lin_sbf2"]["w"],     # [L*K, I]
            "w_t12":   p["lin_t1"]["w"] @ p["lin_t2"]["w"],         # [L*L*K, I]
            "w_down": p["lin_down"]["w"],
            "w_up": p["lin_up"]["w"],
            "before_skip": p["before_skip"],
            "lin": p["lin"],
            "after_skip": p["after_skip"],
            "w_rbf": p["lin_rbf"]["w"],
        })
    return folded


# ----------------------------------------------------------------------------
# Forward (jitted)
# ----------------------------------------------------------------------------
def spherenet_forward(fparams, z, pos, batch, idxs, cfg, num_graphs):
    # TODO(synk): energy_and_force=True (forces = -dE/dpos via autograd) not implemented.
    j_idx, i_idx, t_k, t_j, t_i, idx_kj, idx_ji = idxs
    N = z.shape[0]
    E = j_idx.shape[0]

    dist, angle, torsion = xyz_to_dat_geometry(pos, idxs)
    rbf, sbf, tbf = emb_fn(dist, angle, torsion, idx_kj, cfg)

    # One-hot gather/scatter selection matrices: built ONCE, reused by every layer.
    sel_z = jax.nn.one_hot(z, 95, dtype=jnp.float32)                   # [N, 95]
    sel_i = jax.nn.one_hot(i_idx, N, dtype=jnp.float32)                # [E, N]
    sel_j = jax.nn.one_hot(j_idx, N, dtype=jnp.float32)                # [E, N]
    sel_iT = sel_i.T                                                   # [N, E]  scatter(e2, i)
    sel_kj = jax.nn.one_hot(idx_kj, E, dtype=jnp.float32)              # [T, E]  gather x_kj[idx_kj]
    sel_jiT = jax.nn.one_hot(idx_ji, E, dtype=jnp.float32).T           # [E, T]  scatter over idx_ji
    sel_bT = jax.nn.one_hot(batch, num_graphs, dtype=jnp.float32).T    # [G, N]  scatter(v, batch)

    e1, e2 = init_e_block(fparams["init_e"], sel_z, rbf, sel_i, sel_j)
    u = update_v_block(fparams["init_v"], e2, sel_iT, sel_bT, cfg)     # init_u

    for l in range(cfg["num_layers"]):
        e1, e2 = update_e_block(fparams["update_es"][l], e1, rbf, sbf, tbf,
                                sel_kj, sel_jiT, cfg)
        u = u + update_v_block(fparams["update_vs"][l], e2, sel_iT, sel_bT, cfg)
    return u


# ----------------------------------------------------------------------------
if __name__ == "__main__":
    cfg = dict(cutoff=5.0, num_layers=2, hidden_channels=32, out_channels=1,
               int_emb_size=16, basis_emb_size_dist=8, basis_emb_size_angle=8,
               basis_emb_size_torsion=8, out_emb_channels=32, num_spherical=3,
               num_radial=4, envelope_exponent=5, num_before_skip=1,
               num_after_skip=2, num_output_layers=2, use_node_features=True,
               energy_and_force=False)

    key = jax.random.PRNGKey(0)
    k_pos, k_z, k_par = jax.random.split(key, 3)

    N = 6
    pos = jax.random.normal(k_pos, (N, 3), jnp.float32)
    # Scale so every pairwise distance < cutoff -> radius_graph == complete graph.
    d2 = jnp.sum((pos[:, None, :] - pos[None, :, :]) ** 2, -1)
    pos = pos * (0.6 * cfg["cutoff"] / jnp.sqrt(d2.max()))
    z = jax.random.randint(k_z, (N,), 1, 10)             # atomic numbers (< 95)
    batch = jnp.zeros((N,), jnp.int32)                    # one molecule
    num_graphs = 1

    idxs_np = build_graph_indices(N)
    idxs = tuple(jnp.asarray(a) for a in idxs_np)

    params = make_params(k_par, cfg)
    fparams = fold_params(params, cfg)                    # weight algebra folded once

    fwd = jax.jit(functools.partial(spherenet_forward, cfg=cfg, num_graphs=num_graphs))
    u = fwd(fparams, z, pos, batch, idxs)
    u = jax.block_until_ready(u)

    assert u.shape == (num_graphs, cfg["out_channels"])
    assert bool(jnp.all(jnp.isfinite(u)))
    print("KERNEL_OK")
</pallas_src>

<mosaic_0001>
module attributes {stable_mosaic.version = 11 : i64} {
  func.func @_init_e_kernel(%arg0: memref<6x95xf32, #tpu.memory_space<vmem>>, %arg1: memref<95x32xf32, #tpu.memory_space<vmem>>, %arg2: memref<30x4xf32, #tpu.memory_space<vmem>>, %arg3: memref<30x6xf32, #tpu.memory_space<vmem>>, %arg4: memref<30x6xf32, #tpu.memory_space<vmem>>, %arg5: memref<4x32xf32, #tpu.memory_space<vmem>>, %arg6: memref<1x32xf32, #tpu.memory_space<vmem>>, %arg7: memref<32x32xf32, #tpu.memory_space<vmem>>, %arg8: memref<32x32xf32, #tpu.memory_space<vmem>>, %arg9: memref<32x32xf32, #tpu.memory_space<vmem>>, %arg10: memref<1x32xf32, #tpu.memory_space<vmem>>, %arg11: memref<4x32xf32, #tpu.memory_space<vmem>>, %arg12: memref<30x32xf32, #tpu.memory_space<vmem>>, %arg13: memref<30x32xf32, #tpu.memory_space<vmem>>) attributes {dimension_semantics = [], scalar_prefetch = 0 : i64, scratch_operands = 0 : i64, tpu.core_type = #tpu.core_type<tc>} {
    %c0 = arith.constant 0 : index
    %c0_0 = arith.constant 0 : index
    %0 = vector.load %arg0[%c0, %c0_0] : memref<6x95xf32, #tpu.memory_space<vmem>>, vector<6x95xf32>
    %c0_1 = arith.constant 0 : index
    %c0_2 = arith.constant 0 : index
    %1 = vector.load %arg1[%c0_1, %c0_2] : memref<95x32xf32, #tpu.memory_space<vmem>>, vector<95x32xf32>
    %cst = arith.constant dense<0.000000e+00> : vector<6x32xf32>
    %2 = tpu.matmul %0, %1, %cst {dimension_numbers = #tpu.dot_dimension_numbers<[1], [0], [0], [1], [0, 0, 1, 1], [], []>} : vector<6x95xf32>, vector<95x32xf32>, vector<6x32xf32> -> vector<6x32xf32>
    %c0_3 = arith.constant 0 : index
    %c0_4 = arith.constant 0 : index
    %3 = vector.load %arg2[%c0_3, %c0_4] : memref<30x4xf32, #tpu.memory_space<vmem>>, vector<30x4xf32>
    %c0_5 = arith.constant 0 : index
    %c0_6 = arith.constant 0 : index
    %4 = vector.load %arg5[%c0_5, %c0_6] : memref<4x32xf32, #tpu.memory_space<vmem>>, vector<4x32xf32>
    %cst_7 = arith.constant dense<0.000000e+00> : vector<30x32xf32>
    %5 = tpu.matmul %3, %4, %cst_7 {dimension_numbers = #tpu.dot_dimension_numbers<[1], [0], [0], [1], [0, 0, 1, 1], [], []>} : vector<30x4xf32>, vector<4x32xf32>, vector<30x32xf32> -> vector<30x32xf32>
    %c0_8 = arith.constant 0 : index
    %c0_9 = arith.constant 0 : index
    %6 = vector.load %arg6[%c0_8, %c0_9] : memref<1x32xf32, #tpu.memory_space<vmem>>, vector<1x32xf32>
    %7 = vector.broadcast %6 : vector<1x32xf32> to vector<30x32xf32>
    %8 = arith.addf %5, %7 : vector<30x32xf32>
    %9 = arith.negf %8 : vector<30x32xf32>
    %10 = math.exp %9 : vector<30x32xf32>
    %cst_10 = arith.constant 1.000000e+00 : f32
    %11 = vector.broadcast %cst_10 : f32 to vector<30x32xf32>
    %12 = arith.addf %11, %10 : vector<30x32xf32>
    %13 = arith.divf %11, %12 : vector<30x32xf32>
    %14 = arith.mulf %8, %13 : vector<30x32xf32>
    %c0_11 = arith.constant 0 : index
    %c0_12 = arith.constant 0 : index
    %15 = vector.load %arg3[%c0_11, %c0_12] : memref<30x6xf32, #tpu.memory_space<vmem>>, vector<30x6xf32>
    %cst_13 = arith.constant dense<0.000000e+00> : vector<30x32xf32>
    %16 = tpu.matmul %15, %2, %cst_13 {dimension_numbers = #tpu.dot_dimension_numbers<[1], [0], [0], [1], [0, 0, 1, 1], [], []>} : vector<30x6xf32>, vector<6x32xf32>, vector<30x32xf32> -> vector<30x32xf32>
    %c0_14 = arith.constant 0 : index
    %c0_15 = arith.constant 0 : index
    %17 = vector.load %arg4[%c0_14, %c0_15] : memref<30x6xf32, #tpu.memory_space<vmem>>, vector<30x6xf32>
    %cst_16 = arith.constant dense<0.000000e+00> : vector<30x32xf32>
    %18 = tpu.matmul %17, %2, %cst_16 {dimension_numbers = #tpu.dot_dimension_numbers<[1], [0], [0], [1], [0, 0, 1, 1], [], []>} : vector<30x6xf32>, vector<6x32xf32>, vector<30x32xf32> -> vector<30x32xf32>
    %c0_17 = arith.constant 0 : index
    %c0_18 = arith.constant 0 : index
    %19 = vector.load %arg7[%c0_17, %c0_18] : memref<32x32xf32, #tpu.memory_space<vmem>>, vector<32x32xf32>
    %cst_19 = arith.constant dense<0.000000e+00> : vector<30x32xf32>
    %20 = tpu.matmul %16, %19, %cst_19 {dimension_numbers = #tpu.dot_dimension_numbers<[1], [0], [0], [1], [0, 0, 1, 1], [], []>} : vector<30x32xf32>, vector<32x32xf32>, vector<30x32xf32> -> vector<30x32xf32>
    %c0_20 = arith.constant 0 : index
    %c0_21 = arith.constant 0 : index
    %21 = vector.load %arg8[%c0_20, %c0_21] : memref<32x32xf32, #tpu.memory_space<vmem>>, vector<32x32xf32>
    %cst_22 = arith.constant dense<0.000000e+00> : vector<30x32xf32>
    %22 = tpu.matmul %18, %21, %cst_22 {dimension_numbers = #tpu.dot_dimension_numbers<[1], [0], [0], [1], [0, 0, 1, 1], [], []>} : vector<30x32xf32>, vector<32x32xf32>, vector<30x32xf32> -> vector<30x32xf32>
    %23 = arith.addf %20, %22 : vector<30x32xf32>
    %c0_23 = arith.constant 0 : index
    %c0_24 = arith.constant 0 : index
    %24 = vector.load %arg9[%c0_23, %c0_24] : memref<32x32xf32, #tpu.memory_space<vmem>>, vector<32x32xf32>
    %cst_25 = arith.constant dense<0.000000e+00> : vector<30x32xf32>
    %25 = tpu.matmul %14, %24, %cst_25 {dimension_numbers = #tpu.dot_dimension_numbers<[1], [0], [0], [1], [0, 0, 1, 1], [], []>} : vector<30x32xf32>, vector<32x32xf32>, vector<30x32xf32> -> vector<30x32xf32>
    %26 = arith.addf %23, %25 : vector<30x32xf32>
    %c0_26 = arith.constant 0 : index
    %c0_27 = arith.constant 0 : index
    %27 = vector.load %arg10[%c0_26, %c0_27] : memref<1x32xf32, #tpu.memory_space<vmem>>, vector<1x32xf32>
    %28 = vector.broadcast %27 : vector<1x32xf32> to vector<30x32xf32>
    %29 = arith.addf %26, %28 : vector<30x32xf32>
    %30 = arith.negf %29 : vector<30x32xf32>
    %31 = math.exp %30 : vector<30x32xf32>
    %cst_28 = arith.constant 1.000000e+00 : f32
    %32 = vector.broadcast %cst_28 : f32 to vector<30x32xf32>
    %33 = arith.addf %32, %31 : vector<30x32xf32>
    %34 = arith.divf %32, %33 : vector<30x32xf32>
    %35 = arith.mulf %29, %34 : vector<30x32xf32>
    %c0_29 = arith.constant 0 : index
    %c0_30 = arith.constant 0 : index
    %36 = vector.load %arg12[%c0_29, %c0_30] : memref<30x32xf32, #tpu.memory_space<vmem>>, vector<30x32xf32>
    tpu.vector_store %arg12[%c0_29, %c0_30], %35 {strides = array<i32>} : memref<30x32xf32, #tpu.memory_space<vmem>>, vector<30x32xf32>,
    %c0_31 = arith.constant 0 : index
    %c0_32 = arith.constant 0 : index
    %37 = vector.load %arg11[%c0_31, %c0_32] : memref<4x32xf32, #tpu.memory_space<vmem>>, vector<4x32xf32>
    %cst_33 = arith.constant dense<0.000000e+00> : vector<30x32xf32>
    %38 = tpu.matmul %3, %37, %cst_33 {dimension_numbers = #tpu.dot_dimension_numbers<[1], [0], [0], [1], [0, 0, 1, 1], [], []>} : vector<30x4xf32>, vector<4x32xf32>, vector<30x32xf32> -> vector<30x32xf32>
    %39 = arith.mulf %38, %35 : vector<30x32xf32>
    %c0_34 = arith.constant 0 : index
    %c0_35 = arith.constant 0 : index
    %40 = vector.load %arg13[%c0_34, %c0_35] : memref<30x32xf32, #tpu.memory_space<vmem>>, vector<30x32xf32>
    tpu.vector_store %arg13[%c0_34, %c0_35], %39 {strides = array<i32>} : memref<30x32xf32, #tpu.memory_space<vmem>>, vector<30x32xf32>,
    return
  }
}

module attributes {stable_mosaic.version = 11 : i64} {
  func.func @_update_v_kernel(%arg0: memref<30x32xf32, #tpu.memory_space<vmem>>, %arg1: memref<6x30xf32, #tpu.memory_space<vmem>>, %arg2: memref<1x6xf32, #tpu.memory_space<vmem>>, %arg3: memref<32x32xf32, #tpu.memory_space<vmem>>, %arg4: memref<1x32xf32, #tpu.memory_space<vmem>>, %arg5: memref<32x32xf32, #tpu.memory_space<vmem>>, %arg6: memref<1x32xf32, #tpu.memory_space<vmem>>, %arg7: memref<32x32xf32, #tpu.memory_space<vmem>>, %arg8: memref<1x32xf32, #tpu.memory_space<vmem>>, %arg9: memref<32x1xf32, #tpu.memory_space<vmem>>, %arg10: memref<1x1xf32, #tpu.memory_space<vmem>>) attributes {dimension_semantics = [], scalar_prefetch = 0 : i64, scratch_operands = 0 : i64, tpu.core_type = #tpu.core_type<tc>} {
    %c0 = arith.constant 0 : index
    %c0_0 = arith.constant 0 : index
    %0 = vector.load %arg1[%c0, %c0_0] : memref<6x30xf32, #tpu.memory_space<vmem>>, vector<6x30xf32>
    %c0_1 = arith.constant 0 : index
    %c0_2 = arith.constant 0 : index
    %1 = vector.load %arg0[%c0_1, %c0_2] : memref<30x32xf32, #tpu.memory_space<vmem>>, vector<30x32xf32>
    %cst = arith.constant dense<0.000000e+00> : vector<6x32xf32>
    %2 = tpu.matmul %0, %1, %cst {dimension_numbers = #tpu.dot_dimension_numbers<[1], [0], [0], [1], [0, 0, 1, 1], [], []>} : vector<6x30xf32>, vector<30x32xf32>, vector<6x32xf32> -> vector<6x32xf32>
    %c0_3 = arith.constant 0 : index
    %c0_4 = arith.constant 0 : index
    %3 = vector.load %arg3[%c0_3, %c0_4] : memref<32x32xf32, #tpu.memory_space<vmem>>, vector<32x32xf32>
    %cst_5 = arith.constant dense<0.000000e+00> : vector<6x32xf32>
    %4 = tpu.matmul %2, %3, %cst_5 {dimension_numbers = #tpu.dot_dimension_numbers<[1], [0], [0], [1], [0, 0, 1, 1], [], []>} : vector<6x32xf32>, vector<32x32xf32>, vector<6x32xf32> -> vector<6x32xf32>
    %c0_6 = arith.constant 0 : index
    %c0_7 = arith.constant 0 : index
    %5 = vector.load %arg4[%c0_6, %c0_7] : memref<1x32xf32, #tpu.memory_space<vmem>>, vector<1x32xf32>
    %6 = vector.broadcast %5 : vector<1x32xf32> to vector<6x32xf32>
    %7 = arith.addf %4, %6 : vector<6x32xf32>
    %c0_8 = arith.constant 0 : index
    %c0_9 = arith.constant 0 : index
    %8 = vector.load %arg5[%c0_8, %c0_9] : memref<32x32xf32, #tpu.memory_space<vmem>>, vector<32x32xf32>
    %cst_10 = arith.constant dense<0.000000e+00> : vector<6x32xf32>
    %9 = tpu.matmul %7, %8, %cst_10 {dimension_numbers = #tpu.dot_dimension_numbers<[1], [0], [0], [1], [0, 0, 1, 1], [], []>} : vector<6x32xf32>, vector<32x32xf32>, vector<6x32xf32> -> vector<6x32xf32>
    %c0_11 = arith.constant 0 : index
    %c0_12 = arith.constant 0 : index
    %10 = vector.load %arg6[%c0_11, %c0_12] : memref<1x32xf32, #tpu.memory_space<vmem>>, vector<1x32xf32>
    %11 = vector.broadcast %10 : vector<1x32xf32> to vector<6x32xf32>
    %12 = arith.addf %9, %11 : vector<6x32xf32>
    %13 = arith.negf %12 : vector<6x32xf32>
    %14 = math.exp %13 : vector<6x32xf32>
    %cst_13 = arith.constant 1.000000e+00 : f32
    %15 = vector.broadcast %cst_13 : f32 to vector<6x32xf32>
    %16 = arith.addf %15, %14 : vector<6x32xf32>
    %17 = arith.divf %15, %16 : vector<6x32xf32>
    %18 = arith.mulf %12, %17 : vector<6x32xf32>
    %c0_14 = arith.constant 0 : index
    %c0_15 = arith.constant 0 : index
    %19 = vector.load %arg7[%c0_14, %c0_15] : memref<32x32xf32, #tpu.memory_space<vmem>>, vector<32x32xf32>
    %cst_16 = arith.constant dense<0.000000e+00> : vector<6x32xf32>
    %20 = tpu.matmul %18, %19, %cst_16 {dimension_numbers = #tpu.dot_dimension_numbers<[1], [0], [0], [1], [0, 0, 1, 1], [], []>} : vector<6x32xf32>, vector<32x32xf32>, vector<6x32xf32> -> vector<6x32xf32>
    %c0_17 = arith.constant 0 : index
    %c0_18 = arith.constant 0 : index
    %21 = vector.load %arg8[%c0_17, %c0_18] : memref<1x32xf32, #tpu.memory_space<vmem>>, vector<1x32xf32>
    %22 = vector.broadcast %21 : vector<1x32xf32> to vector<6x32xf32>
    %23 = arith.addf %20, %22 : vector<6x32xf32>
    %24 = arith.negf %23 : vector<6x32xf32>
    %25 = math.exp %24 : vector<6x32xf32>
    %cst_19 = arith.constant 1.000000e+00 : f32
    %26 = vector.broadcast %cst_19 : f32 to vector<6x32xf32>
    %27 = arith.addf %26, %25 : vector<6x32xf32>
    %28 = arith.divf %26, %27 : vector<6x32xf32>
    %29 = arith.mulf %23, %28 : vector<6x32xf32>
    %c0_20 = arith.constant 0 : index
    %c0_21 = arith.constant 0 : index
    %30 = vector.load %arg9[%c0_20, %c0_21] : memref<32x1xf32, #tpu.memory_space<vmem>>, vector<32x1xf32>
    %cst_22 = arith.constant dense<0.000000e+00> : vector<6x1xf32>
    %31 = tpu.matmul %29, %30, %cst_22 {dimension_numbers = #tpu.dot_dimension_numbers<[1], [0], [0], [1], [0, 0, 1, 1], [], []>} : vector<6x32xf32>, vector<32x1xf32>, vector<6x1xf32> -> vector<6x1xf32>
    %c0_23 = arith.constant 0 : index
    %c0_24 = arith.constant 0 : index
    %32 = vector.load %arg2[%c0_23, %c0_24] : memref<1x6xf32, #tpu.memory_space<vmem>>, vector<1x6xf32>
    %cst_25 = arith.constant dense<0.000000e+00> : vector<1x1xf32>
    %33 = tpu.matmul %32, %31, %cst_25 {dimension_numbers = #tpu.dot_dimension_numbers<[1], [0], [0], [1], [0, 0, 1, 1], [], []>} : vector<1x6xf32>, vector<6x1xf32>, vector<1x1xf32> -> vector<1x1xf32>
    %c0_26 = arith.constant 0 : index
    %c0_27 = arith.constant 0 : index
    %34 = vector.load %arg10[%c0_26, %c0_27] : memref<1x1xf32, #tpu.memory_space<vmem>>, vector<1x1xf32>
    tpu.vector_store %arg10[%c0_26, %c0_27], %33 {strides = array<i32>} : memref<1x1xf32, #tpu.memory_space<vmem>>, vector<1x1xf32>,
    return
  }
}

module attributes {stable_mosaic.version = 11 : i64} {
  func.func @_update_e_kernel(%arg0: memref<30x32xf32, #tpu.memory_space<vmem>>, %arg1: memref<30x4xf32, #tpu.memory_space<vmem>>, %arg2: memref<120x12xf32, #tpu.memory_space<vmem>>, %arg3: memref<120x36xf32, #tpu.memory_space<vmem>>, %arg4: memref<120x30xf32, #tpu.memory_space<vmem>>, %arg5: memref<30x120xf32, #tpu.memory_space<vmem>>, %arg6: memref<32x32xf32, #tpu.memory_space<vmem>>, %arg7: memref<1x32xf32, #tpu.memory_space<vmem>>, %arg8: memref<32x32xf32, #tpu.memory_space<vmem>>, %arg9: memref<1x32xf32, #tpu.memory_space<vmem>>, %arg10: memref<4x32xf32, #tpu.memory_space<vmem>>, %arg11: memref<32x16xf32, #tpu.memory_space<vmem>>, %arg12: memref<12x16xf32, #tpu.memory_space<vmem>>, %arg13: memref<36x16xf32, #tpu.memory_space<vmem>>, %arg14: memref<16x32xf32, #tpu.memory_space<vmem>>, %arg15: memref<32x32xf32, #tpu.memory_space<vmem>>, %arg16: memref<1x32xf32, #tpu.memory_space<vmem>>, %arg17: memref<32x32xf32, #tpu.memory_space<vmem>>, %arg18: memref<1x32xf32, #tpu.memory_space<vmem>>, %arg19: memref<32x32xf32, #tpu.memory_space<vmem>>, %arg20: memref<1x32xf32, #tpu.memory_space<vmem>>, %arg21: memref<32x32xf32, #tpu.memory_space<vmem>>, %arg22: memref<1x32xf32, #tpu.memory_space<vmem>>, %arg23: memref<32x32xf32, #tpu.memory_space<vmem>>, %arg24: memref<1x32xf32, #tpu.memory_space<vmem>>, %arg25: memref<32x32xf32, #tpu.memory_space<vmem>>, %arg26: memref<1x32xf32, #tpu.memory_space<vmem>>, %arg27: memref<32x32xf32, #tpu.memory_space<vmem>>, %arg28: memref<1x32xf32, #tpu.memory_space<vmem>>, %arg29: memref<4x32xf32, #tpu.memory_space<vmem>>, %arg30: memref<30x32xf32, #tpu.memory_space<vmem>>, %arg31: memref<30x32xf32, #tpu.memory_space<vmem>>) attributes {dimension_semantics = [], scalar_prefetch = 0 : i64, scratch_operands = 0 : i64, tpu.core_type = #tpu.core_type<tc>} {
    %c0 = arith.constant 0 : index
    %c0_0 = arith.constant 0 : index
    %0 = vector.load %arg0[%c0, %c0_0] : memref<30x32xf32, #tpu.memory_space<vmem>>, vector<30x32xf32>
    %c0_1 = arith.constant 0 : index
    %c0_2 = arith.constant 0 : index
    %1 = vector.load %arg1[%c0_1, %c0_2] : memref<30x4xf32, #tpu.memory_space<vmem>>, vector<30x4xf32>
    %c0_3 = arith.constant 0 : index
    %c0_4 = arith.constant 0 : index
    %2 = vector.load %arg6[%c0_3, %c0_4] : memref<32x32xf32, #tpu.memory_space<vmem>>, vector<32x32xf32>
    %cst = arith.constant dense<0.000000e+00> : vector<30x32xf32>
    %3 = tpu.matmul %0, %2, %cst {dimension_numbers = #tpu.dot_dimension_numbers<[1], [0], [0], [1], [0, 0, 1, 1], [], []>} : vector<30x32xf32>, vector<32x32xf32>, vector<30x32xf32> -> vector<30x32xf32>
    %c0_5 = arith.constant 0 : index
    %c0_6 = arith.constant 0 : index
    %4 = vector.load %arg7[%c0_5, %c0_6] : memref<1x32xf32, #tpu.memory_space<vmem>>, vector<1x32xf32>
    %5 = vector.broadcast %4 : vector<1x32xf32> to vector<30x32xf32>
    %6 = arith.addf %3, %5 : vector<30x32xf32>
    %7 = arith.negf %6 : vector<30x32xf32>
    %8 = math.exp %7 : vector<30x32xf32>
    %cst_7 = arith.constant 1.000000e+00 : f32
    %9 = vector.broadcast %cst_7 : f32 to vector<30x32xf32>
    %10 = arith.addf %9, %8 : vector<30x32xf32>
    %11 = arith.divf %9, %10 : vector<30x32xf32>
    %12 = arith.mulf %6, %11 : vector<30x32xf32>
    %c0_8 = arith.constant 0 : index
    %c0_9 = arith.constant 0 : index
    %13 = vector.load %arg8[%c0_8, %c0_9] : memref<32x32xf32, #tpu.memory_space<vmem>>, vector<32x32xf32>
    %cst_10 = arith.constant dense<0.000000e+00> : vector<30x32xf32>
    %14 = tpu.matmul %0, %13, %cst_10 {dimension_numbers = #tpu.dot_dimension_numbers<[1], [0], [0], [1], [0, 0, 1, 1], [], []>} : vector<30x32xf32>, vector<32x32xf32>, vector<30x32xf32> -> vector<30x32xf32>
    %c0_11 = arith.constant 0 : index
    %c0_12 = arith.constant 0 : index
    %15 = vector.load %arg9[%c0_11, %c0_12] : memref<1x32xf32, #tpu.memory_space<vmem>>, vector<1x32xf32>
    %16 = vector.broadcast %15 : vector<1x32xf32> to vector<30x32xf32>
    %17 = arith.addf %14, %16 : vector<30x32xf32>
    %18 = arith.negf %17 : vector<30x32xf32>
    %19 = math.exp %18 : vector<30x32xf32>
    %cst_13 = arith.constant 1.000000e+00 : f32
    %20 = vector.broadcast %cst_13 : f32 to vector<30x32xf32>
    %21 = arith.addf %20, %19 : vector<30x32xf32>
    %22 = arith.divf %20, %21 : vector<30x32xf32>
    %23 = arith.mulf %17, %22 : vector<30x32xf32>
    %c0_14 = arith.constant 0 : index
    %c0_15 = arith.constant 0 : index
    %24 = vector.load %arg10[%c0_14, %c0_15] : memref<4x32xf32, #tpu.memory_space<vmem>>, vector<4x32xf32>
    %cst_16 = arith.constant dense<0.000000e+00> : vector<30x32xf32>
    %25 = tpu.matmul %1, %24, %cst_16 {dimension_numbers = #tpu.dot_dimension_numbers<[1], [0], [0], [1], [0, 0, 1, 1], [], []>} : vector<30x4xf32>, vector<4x32xf32>, vector<30x32xf32> -> vector<30x32xf32>
    %26 = arith.mulf %23, %25 : vector<30x32xf32>
    %c0_17 = arith.constant 0 : index
    %c0_18 = arith.constant 0 : index
    %27 = vector.load %arg11[%c0_17, %c0_18] : memref<32x16xf32, #tpu.memory_space<vmem>>, vector<32x16xf32>
    %cst_19 = arith.constant dense<0.000000e+00> : vector<30x16xf32>
    %28 = tpu.matmul %26, %27, %cst_19 {dimension_numbers = #tpu.dot_dimension_numbers<[1], [0], [0], [1], [0, 0, 1, 1], [], []>} : vector<30x32xf32>, vector<32x16xf32>, vector<30x16xf32> -> vector<30x16xf32>
    %29 = arith.negf %28 : vector<30x16xf32>
    %30 = math.exp %29 : vector<30x16xf32>
    %cst_20 = arith.constant 1.000000e+00 : f32
    %31 = vector.broadcast %cst_20 : f32 to vector<30x16xf32>
    %32 = arith.addf %31, %30 : vector<30x16xf32>
    %33 = arith.divf %31, %32 : vector<30x16xf32>
    %34 = arith.mulf %28, %33 : vector<30x16xf32>
    %c0_21 = arith.constant 0 : index
    %c0_22 = arith.constant 0 : index
    %35 = vector.load %arg4[%c0_21, %c0_22] : memref<120x30xf32, #tpu.memory_space<vmem>>, vector<120x30xf32>
    %cst_23 = arith.constant dense<0.000000e+00> : vector<120x16xf32>
    %36 = tpu.matmul %35, %34, %cst_23 {dimension_numbers = #tpu.dot_dimension_numbers<[1], [0], [0], [1], [0, 0, 1, 1], [], []>} : vector<120x30xf32>, vector<30x16xf32>, vector<120x16xf32> -> vector<120x16xf32>
    %c0_24 = arith.constant 0 : index
    %c0_25 = arith.constant 0 : index
    %37 = vector.load %arg2[%c0_24, %c0_25] : memref<120x12xf32, #tpu.memory_space<vmem>>, vector<120x12xf32>
    %c0_26 = arith.constant 0 : index
    %c0_27 = arith.constant 0 : index
    %38 = vector.load %arg12[%c0_26, %c0_27] : memref<12x16xf32, #tpu.memory_space<vmem>>, vector<12x16xf32>
    %cst_28 = arith.constant dense<0.000000e+00> : vector<120x16xf32>
    %39 = tpu.matmul %37, %38, %cst_28 {dimension_numbers = #tpu.dot_dimension_numbers<[1], [0], [0], [1], [0, 0, 1, 1], [], []>} : vector<120x12xf32>, vector<12x16xf32>, vector<120x16xf32> -> vector<120x16xf32>
    %40 = arith.mulf %36, %39 : vector<120x16xf32>
    %c0_29 = arith.constant 0 : index
    %c0_30 = arith.constant 0 : index
    %41 = vector.load %arg3[%c0_29, %c0_30] : memref<120x36xf32, #tpu.memory_space<vmem>>, vector<120x36xf32>
    %c0_31 = arith.constant 0 : index
    %c0_32 = arith.constant 0 : index
    %42 = vector.load %arg13[%c0_31, %c0_32] : memref<36x16xf32, #tpu.memory_space<vmem>>, vector<36x16xf32>
    %cst_33 = arith.constant dense<0.000000e+00> : vector<120x16xf32>
    %43 = tpu.matmul %41, %42, %cst_33 {dimension_numbers = #tpu.dot_dimension_numbers<[1], [0], [0], [1], [0, 0, 1, 1], [], []>} : vector<120x36xf32>, vector<36x16xf32>, vector<120x16xf32> -> vector<120x16xf32>
    %44 = arith.mulf %40, %43 : vector<120x16xf32>
    %c0_34 = arith.constant 0 : index
    %c0_35 = arith.constant 0 : index
    %45 = vector.load %arg5[%c0_34, %c0_35] : memref<30x120xf32, #tpu.memory_space<vmem>>, vector<30x120xf32>
    %cst_36 = arith.constant dense<0.000000e+00> : vector<30x16xf32>
    %46 = tpu.matmul %45, %44, %cst_36 {dimension_numbers = #tpu.dot_dimension_numbers<[1], [0], [0], [1], [0, 0, 1, 1], [], []>} : vector<30x120xf32>, vector<120x16xf32>, vector<30x16xf32> -> vector<30x16xf32>
    %c0_37 = arith.constant 0 : index
    %c0_38 = arith.constant 0 : index
    %47 = vector.load %arg14[%c0_37, %c0_38] : memref<16x32xf32, #tpu.memory_space<vmem>>, vector<16x32xf32>
    %cst_39 = arith.constant dense<0.000000e+00> : vector<30x32xf32>
    %48 = tpu.matmul %46, %47, %cst_39 {dimension_numbers = #tpu.dot_dimension_numbers<[1], [0], [0], [1], [0, 0, 1, 1], [], []>} : vector<30x16xf32>, vector<16x32xf32>, vector<30x32xf32> -> vector<30x32xf32>
    %49 = arith.negf %48 : vector<30x32xf32>
    %50 = math.exp %49 : vector<30x32xf32>
    %cst_40 = arith.constant 1.000000e+00 : f32
    %51 = vector.broadcast %cst_40 : f32 to vector<30x32xf32>
    %52 = arith.addf %51, %50 : vector<30x32xf32>
    %53 = arith.divf %51, %52 : vector<30x32xf32>
    %54 = arith.mulf %48, %53 : vector<30x32xf32>
    %55 = arith.addf %12, %54 : vector<30x32xf32>
    %c0_41 = arith.constant 0 : index
    %c0_42 = arith.constant 0 : index
    %56 = vector.load %arg15[%c0_41, %c0_42] : memref<32x32xf32, #tpu.memory_space<vmem>>, vector<32x32xf32>
    %cst_43 = arith.constant dense<0.000000e+00> : vector<30x32xf32>
    %57 = tpu.matmul %55, %56, %cst_43 {dimension_numbers = #tpu.dot_dimension_numbers<[1], [0], [0], [1], [0, 0, 1, 1], [], []>} : vector<30x32xf32>, vector<32x32xf32>, vector<30x32xf32> -> vector<30x32xf32>
    %c0_44 = arith.constant 0 : index
    %c0_45 = arith.constant 0 : index
    %58 = vector.load %arg16[%c0_44, %c0_45] : memref<1x32xf32, #tpu.memory_space<vmem>>, vector<1x32xf32>
    %59 = vector.broadcast %58 : vector<1x32xf32> to vector<30x32xf32>
    %60 = arith.addf %57, %59 : vector<30x32xf32>
    %61 = arith.negf %60 : vector<30x32xf32>
    %62 = math.exp %61 : vector<30x32xf32>
    %cst_46 = arith.constant 1.000000e+00 : f32
    %63 = vector.broadcast %cst_46 : f32 to vector<30x32xf32>
    %64 = arith.addf %63, %62 : vector<30x32xf32>
    %65 = arith.divf %63, %64 : vector<30x32xf32>
    %66 = arith.mulf %60, %65 : vector<30x32xf32>
    %c0_47 = arith.constant 0 : index
    %c0_48 = arith.constant 0 : index
    %67 = vector.load %arg17[%c0_47, %c0_48] : memref<32x32xf32, #tpu.memory_space<vmem>>, vector<32x32xf32>
    %cst_49 = arith.constant dense<0.000000e+00> : vector<30x32xf32>
    %68 = tpu.matmul %66, %67, %cst_49 {dimension_numbers = #tpu.dot_dimension_numbers<[1], [0], [0], [1], [0, 0, 1, 1], [], []>} : vector<30x32xf32>, vector<32x32xf32>, vector<30x32xf32> -> vector<30x32xf32>
    %c0_50 = arith.constant 0 : index
    %c0_51 = arith.constant 0 : index
    %69 = vector.load %arg18[%c0_50, %c0_51] : memref<1x32xf32, #tpu.memory_space<vmem>>, vector<1x32xf32>
    %70 = vector.broadcast %69 : vector<1x32xf32> to vector<30x32xf32>
    %71 = arith.addf %68, %70 : vector<30x32xf32>
    %72 = arith.negf %71 : vector<30x32xf32>
    %73 = math.exp %72 : vector<30x32xf32>
    %cst_52 = arith.constant 1.000000e+00 : f32
    %74 = vector.broadcast %cst_52 : f32 to vector<30x32xf32>
    %75 = arith.addf %74, %73 : vector<30x32xf32>
    %76 = arith.divf %74, %75 : vector<30x32xf32>
    %77 = arith.mulf %71, %76 : vector<30x32xf32>
    %78 = arith.addf %55, %77 : vector<30x32xf32>
    %c0_53 = arith.constant 0 : index
    %c0_54 = arith.constant 0 : index
    %79 = vector.load %arg19[%c0_53, %c0_54] : memref<32x32xf32, #tpu.memory_space<vmem>>, vector<32x32xf32>
    %cst_55 = arith.constant dense<0.000000e+00> : vector<30x32xf32>
    %80 = tpu.matmul %78, %79, %cst_55 {dimension_numbers = #tpu.dot_dimension_numbers<[1], [0], [0], [1], [0, 0, 1, 1], [], []>} : vector<30x32xf32>, vector<32x32xf32>, vector<30x32xf32> -> vector<30x32xf32>
    %c0_56 = arith.constant 0 : index
    %c0_57 = arith.constant 0 : index
    %81 = vector.load %arg20[%c0_56, %c0_57] : memref<1x32xf32, #tpu.memory_space<vmem>>, vector<1x32xf32>
    %82 = vector.broadcast %81 : vector<1x32xf32> to vector<30x32xf32>
    %83 = arith.addf %80, %82 : vector<30x32xf32>
    %84 = arith.negf %83 : vector<30x32xf32>
    %85 = math.exp %84 : vector<30x32xf32>
    %cst_58 = arith.constant 1.000000e+00 : f32
    %86 = vector.broadcast %cst_58 : f32 to vector<30x32xf32>
    %87 = arith.addf %86, %85 : vector<30x32xf32>
    %88 = arith.divf %86, %87 : vector<30x32xf32>
    %89 = arith.mulf %83, %88 : vector<30x32xf32>
    %90 = arith.addf %89, %0 : vector<30x32xf32>
    %c0_59 = arith.constant 0 : index
    %c0_60 = arith.constant 0 : index
    %91 = vector.load %arg21[%c0_59, %c0_60] : memref<32x32xf32, #tpu.memory_space<vmem>>, vector<32x32xf32>
    %cst_61 = arith.constant dense<0.000000e+00> : vector<30x32xf32>
    %92 = tpu.matmul %90, %91, %cst_61 {dimension_numbers = #tpu.dot_dimension_numbers<[1], [0], [0], [1], [0, 0, 1, 1], [], []>} : vector<30x32xf32>, vector<32x32xf32>, vector<30x32xf32> -> vector<30x32xf32>
    %c0_62 = arith.constant 0 : index
    %c0_63 = arith.constant 0 : index
    %93 = vector.load %arg22[%c0_62, %c0_63] : memref<1x32xf32, #tpu.memory_space<vmem>>, vector<1x32xf32>
    %94 = vector.broadcast %93 : vector<1x32xf32> to vector<30x32xf32>
    %95 = arith.addf %92, %94 : vector<30x32xf32>
    %96 = arith.negf %95 : vector<30x32xf32>
    %97 = math.exp %96 : vector<30x32xf32>
    %cst_64 = arith.constant 1.000000e+00 : f32
    %98 = vector.broadcast %cst_64 : f32 to vector<30x32xf32>
    %99 = arith.addf %98, %97 : vector<30x32xf32>
    %100 = arith.divf %98, %99 : vector<30x32xf32>
    %101 = arith.mulf %95, %100 : vector<30x32xf32>
    %c0_65 = arith.constant 0 : index
    %c0_66 = arith.constant 0 : index
    %102 = vector.load %arg23[%c0_65, %c0_66] : memref<32x32xf32, #tpu.memory_space<vmem>>, vector<32x32xf32>
    %cst_67 = arith.constant dense<0.000000e+00> : vector<30x32xf32>
    %103 = tpu.matmul %101, %102, %cst_67 {dimension_numbers = #tpu.dot_dimension_numbers<[1], [0], [0], [1], [0, 0, 1, 1], [], []>} : vector<30x32xf32>, vector<32x32xf32>, vector<30x32xf32> -> vector<30x32xf32>
    %c0_68 = arith.constant 0 : index
    %c0_69 = arith.constant 0 : index
    %104 = vector.load %arg24[%c0_68, %c0_69] : memref<1x32xf32, #tpu.memory_space<vmem>>, vector<1x32xf32>
    %105 = vector.broadcast %104 : vector<1x32xf32> to vector<30x32xf32>
    %106 = arith.addf %103, %105 : vector<30x32xf32>
    %107 = arith.negf %106 : vector<30x32xf32>
    %108 = math.exp %107 : vector<30x32xf32>
    %cst_70 = arith.constant 1.000000e+00 : f32
    %109 = vector.broadcast %cst_70 : f32 to vector<30x32xf32>
    %110 = arith.addf %109, %108 : vector<30x32xf32>
    %111 = arith.divf %109, %110 : vector<30x32xf32>
    %112 = arith.mulf %106, %111 : vector<30x32xf32>
    %113 = arith.addf %90, %112 : vector<30x32xf32>
    %c0_71 = arith.constant 0 : index
    %c0_72 = arith.constant 0 : index
    %114 = vector.load %arg25[%c0_71, %c0_72] : memref<32x32xf32, #tpu.memory_space<vmem>>, vector<32x32xf32>
    %cst_73 = arith.constant dense<0.000000e+00> : vector<30x32xf32>
    %115 = tpu.matmul %113, %114, %cst_73 {dimension_numbers = #tpu.dot_dimension_numbers<[1], [0], [0], [1], [0, 0, 1, 1], [], []>} : vector<30x32xf32>, vector<32x32xf32>, vector<30x32xf32> -> vector<30x32xf32>
    %c0_74 = arith.constant 0 : index
    %c0_75 = arith.constant 0 : index
    %116 = vector.load %arg26[%c0_74, %c0_75] : memref<1x32xf32, #tpu.memory_space<vmem>>, vector<1x32xf32>
    %117 = vector.broadcast %116 : vector<1x32xf32> to vector<30x32xf32>
    %118 = arith.addf %115, %117 : vector<30x32xf32>
    %119 = arith.negf %118 : vector<30x32xf32>
    %120 = math.exp %119 : vector<30x32xf32>
    %cst_76 = arith.constant 1.000000e+00 : f32
    %121 = vector.broadcast %cst_76 : f32 to vector<30x32xf32>
    %122 = arith.addf %121, %120 : vector<30x32xf32>
    %123 = arith.divf %121, %122 : vector<30x32xf32>
    %124 = arith.mulf %118, %123 : vector<30x32xf32>
    %c0_77 = arith.constant 0 : index
    %c0_78 = arith.constant 0 : index
    %125 = vector.load %arg27[%c0_77, %c0_78] : memref<32x32xf32, #tpu.memory_space<vmem>>, vector<32x32xf32>
    %cst_79 = arith.constant dense<0.000000e+00> : vector<30x32xf32>
    %126 = tpu.matmul %124, %125, %cst_79 {dimension_numbers = #tpu.dot_dimension_numbers<[1], [0], [0], [1], [0, 0, 1, 1], [], []>} : vector<30x32xf32>, vector<32x32xf32>, vector<30x32xf32> -> vector<30x32xf32>
    %c0_80 = arith.constant 0 : index
    %c0_81 = arith.constant 0 : index
    %127 = vector.load %arg28[%c0_80, %c0_81] : memref<1x32xf32, #tpu.memory_space<vmem>>, vector<1x32xf32>
    %128 = vector.broadcast %127 : vector<1x32xf32> to vector<30x32xf32>
    %129 = arith.addf %126, %128 : vector<30x32xf32>
    %130 = arith.negf %129 : vector<30x32xf32>
    %131 = math.exp %130 : vector<30x32xf32>
    %cst_82 = arith.constant 1.000000e+00 : f32
    %132 = vector.broadcast %cst_82 : f32 to vector<30x32xf32>
    %133 = arith.addf %132, %131 : vector<30x32xf32>
    %134 = arith.divf %132, %133 : vector<30x32xf32>
    %135 = arith.mulf %129, %134 : vector<30x32xf32>
    %136 = arith.addf %113, %135 : vector<30x32xf32>
    %c0_83 = arith.constant 0 : index
    %c0_84 = arith.constant 0 : index
    %137 = vector.load %arg30[%c0_83, %c0_84] : memref<30x32xf32, #tpu.memory_space<vmem>>, vector<30x32xf32>
    tpu.vector_store %arg30[%c0_83, %c0_84], %136 {strides = array<i32>} : memref<30x32xf32, #tpu.memory_space<vmem>>, vector<30x32xf32>,
    %c0_85 = arith.constant 0 : index
    %c0_86 = arith.constant 0 : index
    %138 = vector.load %arg29[%c0_85, %c0_86] : memref<4x32xf32, #tpu.memory_space<vmem>>, vector<4x32xf32>
    %cst_87 = arith.constant dense<0.000000e+00> : vector<30x32xf32>
    %139 = tpu.matmul %1, %138, %cst_87 {dimension_numbers = #tpu.dot_dimension_numbers<[1], [0], [0], [1], [0, 0, 1, 1], [], []>} : vector<30x4xf32>, vector<4x32xf32>, vector<30x32xf32> -> vector<30x32xf32>
    %140 = arith.mulf %139, %136 : vector<30x32xf32>
    %c0_88 = arith.constant 0 : index
    %c0_89 = arith.constant 0 : index
    %141 = vector.load %arg31[%c0_88, %c0_89] : memref<30x32xf32, #tpu.memory_space<vmem>>, vector<30x32xf32>
    tpu.vector_store %arg31[%c0_88, %c0_89], %140 {strides = array<i32>} : memref<30x32xf32, #tpu.memory_space<vmem>>, vector<30x32xf32>,
    return
  }
}

</mosaic_0001>

<bundles_post_ra>
// kernel: spherenet_forward.7
= control target key start
LH: loop header
LB: loop body
LE: loop exit
PB: predicated region body
PF: predicated region fallthrough
CT: control target
= control target key end

     0   :  { %15 = vsyncpa [#allocation3], 0  ;;  %s1349_s0 = inlined_call_operand.hbm [shape: f32[30,32], index: 0, kind: input, shape index: {}]   ;;  %s1350_s1 = inlined_call_operand.hbm [shape: f32[6,30], index: 1, kind: input, shape index: {}]   ;;  %s1351_s2 = inlined_call_operand.hbm [shape: f32[1,6], index: 2, kind: input, shape index: {}]   ;;  %s1352_s3 = inlined_call_operand.hbm [shape: f32[32,32], index: 3, kind: input, shape index: {}]   ;;  %s1353_s4 = inlined_call_operand.hbm [shape: f32[1,32], index: 4, kind: input, shape index: {}]   ;;  %s1354_s5 = inlined_call_operand.hbm [shape: f32[32,32], index: 5, kind: input, shape index: {}]   ;;  %s1355_s6 = inlined_call_operand.hbm [shape: f32[1,32], index: 6, kind: input, shape index: {}]   ;;  %s1356_s7 = inlined_call_operand.hbm [shape: f32[32,32], index: 7, kind: input, shape index: {}]   ;;  %s1357_s8 = inlined_call_operand.hbm [shape: f32[1,32], index: 8, kind: input, shape index: {}]   ;;  %s1358_s9 = inlined_call_operand.hbm [shape: f32[32,1], index: 9, kind: input, shape index: {}]   ;;  %s1359_s10 = inlined_call_operand.hbm [shape: f32[1,1], index: 10, kind: output, shape index: {}]  }
   0x1   :  { %16 = vsyncpa [#allocation6], 0 }
   0x2   :  { %17 = vsyncpa [#allocation9], 0 }
   0x3   :  { %18 = vsyncpa [#allocation12], 0 }
   0x4   :  { %19 = vsyncpa [#allocation15], 0 }
   0x5   :  { %20 = vsyncpa [#allocation18], 0 }
   0x6   :  { %21 = vsyncpa [#allocation4], 0  ;;  %s1101_s13 = smov [#allocation5]   ;;  %s845_s17 = scalar_lea.hbm %s1350_s1, 128 }
   0x7   :  { %s40_s14 = sshll.u32 %s1101_s13, 4  ;;  %p846_p0 = scmp.ne.s32.totalorder %s1350_s1, %s845_s17  ;;  %s41_s14 = int_to_ptr.vmem [resolvable:$true] %s40_s14 }
   0x8   :  { %p849_p1 = scmp.lt.u32.totalorder %s845_s17, %s1350_s1 }
   0xa   :  { %p851_p2 = pnand %p849_p1, %p846_p0 }
   0xc   :  { %854 = shalt.err (!%p851_p2)
}
   0xd   :  { %s855_s22 = scalar_lea.vmem %s41_s14, 128  ;;  %p860_p4 = scmp.lt.s32.totalorder %s41_s14, %s41_s14 }
   0xe   :  { %p856_p3 = scmp.ne.s32.totalorder %s41_s14, %s855_s22  ;;  %p861_p5 = scmp.lt.s32.totalorder %s855_s22, %s855_s22 }
  0x10   :  { %p862_p6 = por %p861_p5, %p860_p4 }
  0x12   :  { %p863_p7 = pnand %p862_p6, %p856_p3 }
  0x14   :  { %866 = shalt.err (!%p863_p7)
}
  0x15   :  { %43 = dma.hbm_to_vmem [thread:$0]  %s1350_s1, 128, %s41_s14, [#allocation6]  }
  0x16   :  { %s1102_s25 = smov [#allocation8]   ;;  %s1103_s27 = smov [#allocation11]  }
  0x17   :  { %s59_s26 = sshll.u32 %s1102_s25, 4  ;;  %s81_s28 = sshll.u32 %s1103_s27, 4  ;;  %s60_s26 = int_to_ptr.vmem [resolvable:$true] %s59_s26  ;;  %s82_s28 = int_to_ptr.vmem [resolvable:$true] %s81_s28 }
  0x18   :  { %s867_s11 = scalar_lea.hbm %s1352_s3, 512 }
  0x19   :  { %p868_p8 = scmp.ne.s32.totalorder %s1352_s3, %s867_s11  ;;  %p871_p9 = scmp.lt.u32.totalorder %s867_s11, %s1352_s3 }
  0x1b   :  { %p873_p10 = pnand %p871_p9, %p868_p8 }
  0x1d   :  { %876 = shalt.err (!%p873_p10)
}
  0x1e   :  { %s877_s1 = scalar_lea.vmem %s60_s26, 512  ;;  %p882_p12 = scmp.lt.s32.totalorder %s60_s26, %s60_s26 }
  0x1f   :  { %p878_p11 = scmp.ne.s32.totalorder %s60_s26, %s877_s1  ;;  %p883_p13 = scmp.lt.s32.totalorder %s877_s1, %s877_s1 }
  0x21   :  { %p884_p0 = por %p883_p13, %p882_p12 }
  0x23   :  { %p885_p1 = pnand %p884_p0, %p878_p11 }
  0x25   :  { %888 = shalt.err (!%p885_p1)
}
  0x26   :  { %s1104_s14 = smov 128   ;;  %s1105_s17 = smov 8  }
  0x27   :  { %65 = dma.hbm_to_vmem [thread:$0]  %s1352_s3, 512, %s60_s26, [#allocation9], %s1104_s14, %s1104_s14, %s1105_s17  }
  0x28   :  { %s889_s22 = scalar_lea.hbm %s1354_s5, 512 }
  0x29   :  { %p890_p2 = scmp.ne.s32.totalorder %s1354_s5, %s889_s22  ;;  %p893_p3 = scmp.lt.u32.totalorder %s889_s22, %s1354_s5 }
  0x2b   :  { %p895_p4 = pnand %p893_p3, %p890_p2 }
  0x2d   :  { %898 = shalt.err (!%p895_p4)
}
  0x2e   :  { %s899_s29 = scalar_lea.vmem %s82_s28, 512  ;;  %p904_p6 = scmp.lt.s32.totalorder %s82_s28, %s82_s28 }
  0x2f   :  { %p900_p5 = scmp.ne.s32.totalorder %s82_s28, %s899_s29  ;;  %p905_p7 = scmp.lt.s32.totalorder %s899_s29, %s899_s29 }
  0x31   :  { %p906_p8 = por %p905_p7, %p904_p6 }
  0x33   :  { %p907_p9 = pnand %p906_p8, %p900_p5 }
  0x35   :  { %910 = shalt.err (!%p907_p9)
}
  0x36   :  { %87 = dma.hbm_to_vmem [thread:$0]  %s1354_s5, 512, %s82_s28, [#allocation12], %s1104_s14, %s1104_s14, %s1105_s17  }
  0x37   :  { %s1106_s30 = smov [#allocation14]   ;;  %s1107_s12 = smov [#allocation2]  }
  0x38   :  { %s103_s11 = sshll.u32 %s1106_s30, 4  ;;  %s27_s13 = sshll.u32 %s1107_s12, 4  ;;  %s104_s11 = int_to_ptr.vmem [resolvable:$true] %s103_s11  ;;  %s28_s13 = int_to_ptr.vmem [resolvable:$true] %s27_s13 }
  0x39   :  { %s911_s1 = scalar_lea.hbm %s1356_s7, 512 }
  0x3a   :  { %p912_p10 = scmp.ne.s32.totalorder %s1356_s7, %s911_s1  ;;  %p915_p11 = scmp.lt.u32.totalorder %s911_s1, %s1356_s7 }
  0x3c   :  { %p917_p12 = pnand %p915_p11, %p912_p10 }
  0x3e   :  { %920 = shalt.err (!%p917_p12)
}
  0x3f   :  { %s921_s5 = scalar_lea.vmem %s104_s11, 512  ;;  %p926_p0 = scmp.lt.s32.totalorder %s104_s11, %s104_s11 }
  0x40   :  { %p922_p13 = scmp.ne.s32.totalorder %s104_s11, %s921_s5  ;;  %p927_p1 = scmp.lt.s32.totalorder %s921_s5, %s921_s5 }
  0x42   :  { %p928_p2 = por %p927_p1, %p926_p0 }
  0x44   :  { %p929_p3 = pnand %p928_p2, %p922_p13 }
  0x46   :  { %932 = shalt.err (!%p929_p3)
}
  0x47   :  { %109 = dma.hbm_to_vmem [thread:$0]  %s1356_s7, 512, %s104_s11, [#allocation15], %s1104_s14, %s1104_s14, %s1105_s17  }
  0x48   :  { %s933_s25 = scalar_lea.hbm %s1349_s0, 512 }
  0x49   :  { %p934_p4 = scmp.ne.s32.totalorder %s1349_s0, %s933_s25  ;;  %p937_p5 = scmp.lt.u32.totalorder %s933_s25, %s1349_s0 }
  0x4b   :  { %p939_p6 = pnand %p937_p5, %p934_p4 }
  0x4d   :  { %942 = shalt.err (!%p939_p6)
}
  0x4e   :  { %s943_s30 = scalar_lea.vmem %s28_s13, 512  ;;  %p948_p8 = scmp.lt.s32.totalorder %s28_s13, %s28_s13 }
  0x4f   :  { %p944_p7 = scmp.ne.s32.totalorder %s28_s13, %s943_s30  ;;  %p949_p9 = scmp.lt.s32.totalorder %s943_s30, %s943_s30 }
  0x51   :  { %p950_p10 = por %p949_p9, %p948_p8 }
  0x53   :  { %p951_p11 = pnand %p950_p10, %p944_p7 }
  0x55   :  { %954 = shalt.err (!%p951_p11)
}
  0x56   :  { %33 = dma.hbm_to_vmem [thread:$0]  %s1349_s0, 512, %s28_s13, [#allocation3], %s1104_s14, %s1104_s14, %s1105_s17  }
  0x57   :  { %s1108_s12 = smov [#allocation7]   ;;  %s1109_s16 = smov [#allocation10]  }
  0x58   :  { %s50_s15 = sshll.u32 %s1108_s12, 4  ;;  %s72_s1 = sshll.u32 %s1109_s16, 4  ;;  %s51_s15 = int_to_ptr.vmem [resolvable:$true] %s50_s15  ;;  %s73_s1 = int_to_ptr.vmem [resolvable:$true] %s72_s1 }
  0x59   :  { %s955_s20 = scalar_lea.hbm %s1351_s2, 16 }
  0x5a   :  { %p956_p12 = scmp.ne.s32.totalorder %s1351_s2, %s955_s20  ;;  %p959_p13 = scmp.lt.u32.totalorder %s955_s20, %s1351_s2 }
  0x5c   :  { %p961_p0 = pnand %p959_p13, %p956_p12 }
  0x5e   :  { %964 = shalt.err (!%p961_p0)
}
  0x5f   :  { %s965_s0 = scalar_lea.vmem %s51_s15, 16  ;;  %s969_s13 = scalar_lea.vmem %s51_s15, 32 }
  0x60   :  { %p966_p1 = scmp.ne.s32.totalorder %s51_s15, %s965_s0  ;;  %p970_p2 = scmp.lt.s32.totalorder %s51_s15, %s51_s15 }
  0x61   :  { %p971_p3 = scmp.lt.s32.totalorder %s969_s13, %s965_s0 }
  0x63   :  { %p972_p4 = por %p971_p3, %p970_p2 }
  0x65   :  { %p973_p5 = pnand %p972_p4, %p966_p1 }
  0x67   :  { %976 = shalt.err (!%p973_p5)
}
  0x68   :  { %53 = dma.hbm_to_vmem [thread:$0]  %s1351_s2, 16, %s51_s15, [#allocation6]  }
  0x69   :  { %s977_s29 = scalar_lea.hbm %s1353_s4, 16 }
  0x6a   :  { %p978_p6 = scmp.ne.s32.totalorder %s1353_s4, %s977_s29  ;;  %p981_p7 = scmp.lt.u32.totalorder %s977_s29, %s1353_s4 }
  0x6c   :  { %p983_p8 = pnand %p981_p7, %p978_p6 }
  0x6e   :  { %986 = shalt.err (!%p983_p8)
}
  0x6f   :  { %s987_s11 = scalar_lea.vmem %s73_s1, 16  ;;  %s991_s12 = scalar_lea.vmem %s73_s1, 32 }
  0x70   :  { %p988_p9 = scmp.ne.s32.totalorder %s73_s1, %s987_s11  ;;  %p992_p10 = scmp.lt.s32.totalorder %s73_s1, %s73_s1 }
  0x71   :  { %p993_p11 = scmp.lt.s32.totalorder %s991_s12, %s987_s11 }
  0x73   :  { %p994_p12 = por %p993_p11, %p992_p10 }
  0x75   :  { %p995_p13 = pnand %p994_p12, %p988_p9 }
  0x77   :  { %998 = shalt.err (!%p995_p13)
}
  0x78   :  { %75 = dma.hbm_to_vmem [thread:$0]  %s1353_s4, 16, %s73_s1, [#allocation9]  }
  0x79   :  { %s1110_s16 = smov [#allocation13]   ;;  %s1111_s19 = smov [#allocation16]  }
  0x7a   :  { %s94_s18 = sshll.u32 %s1110_s16, 4  ;;  %s116_s20 = sshll.u32 %s1111_s19, 4  ;;  %s95_s18 = int_to_ptr.vmem [resolvable:$true] %s94_s18  ;;  %s117_s20 = int_to_ptr.vmem [resolvable:$true] %s116_s20 }
  0x7b   :  { %s999_s28 = scalar_lea.hbm %s1355_s6, 16 }
  0x7c   :  { %p1000_p0 = scmp.ne.s32.totalorder %s1355_s6, %s999_s28  ;;  %p1003_p1 = scmp.lt.u32.totalorder %s999_s28, %s1355_s6 }
  0x7e   :  { %p1005_p2 = pnand %p1003_p1, %p1000_p0 }
  0x80   :  { %1008 = shalt.err (!%p1005_p2)
}
  0x81   :  { %s1009_s4 = scalar_lea.vmem %s95_s18, 16  ;;  %s1013_s1 = scalar_lea.vmem %s95_s18, 32 }
  0x82   :  { %p1010_p3 = scmp.ne.s32.totalorder %s95_s18, %s1009_s4  ;;  %p1014_p4 = scmp.lt.s32.totalorder %s95_s18, %s95_s18 }
  0x83   :  { %p1015_p5 = scmp.lt.s32.totalorder %s1013_s1, %s1009_s4 }
  0x85   :  { %p1016_p6 = por %p1015_p5, %p1014_p4 }
  0x87   :  { %p1017_p7 = pnand %p1016_p6, %p1010_p3 }
  0x89   :  { %1020 = shalt.err (!%p1017_p7)
}
  0x8a   :  { %97 = dma.hbm_to_vmem [thread:$0]  %s1355_s6, 16, %s95_s18, [#allocation12]  }
  0x8b   :  { %s1021_s3 = scalar_lea.hbm %s1357_s8, 16 }
  0x8c   :  { %p1022_p8 = scmp.ne.s32.totalorder %s1357_s8, %s1021_s3  ;;  %p1025_p9 = scmp.lt.u32.totalorder %s1021_s3, %s1357_s8 }
  0x8e   :  { %p1027_p10 = pnand %p1025_p9, %p1022_p8 }
  0x90   :  { %1030 = shalt.err (!%p1027_p10)
}
  0x91   :  { %s1031_s12 = scalar_lea.vmem %s117_s20, 16  ;;  %s1035_s2 = scalar_lea.vmem %s117_s20, 32 }
  0x92   :  { %p1032_p11 = scmp.ne.s32.totalorder %s117_s20, %s1031_s12  ;;  %p1036_p12 = scmp.lt.s32.totalorder %s117_s20, %s117_s20 }
  0x93   :  { %p1037_p13 = scmp.lt.s32.totalorder %s1035_s2, %s1031_s12 }
  0x95   :  { %p1038_p0 = por %p1037_p13, %p1036_p12 }
  0x97   :  { %p1039_p1 = pnand %p1038_p0, %p1032_p11 }
  0x99   :  { %1042 = shalt.err (!%p1039_p1)
}
  0x9a   :  { %119 = dma.hbm_to_vmem [thread:$0]  %s1357_s8, 16, %s117_s20, [#allocation15]  }
  0x9b   :  { %s1112_s16 = smov [#allocation17]   ;;  %s1043_s5 = scalar_lea.hbm %s1358_s9, 512 }
  0x9c   :  { %s125_s18 = sshll.u32 %s1112_s16, 4  ;;  %p1044_p2 = scmp.ne.s32.totalorder %s1358_s9, %s1043_s5  ;;  %s126_s18 = int_to_ptr.vmem [resolvable:$true] %s125_s18 }
  0x9d   :  { %p1047_p3 = scmp.lt.u32.totalorder %s1043_s5, %s1358_s9 }
  0x9f   :  { %p1049_p4 = pnand %p1047_p3, %p1044_p2 }
  0xa1   :  { %1052 = shalt.err (!%p1049_p4)
}
  0xa2   :  { %s1053_s23 = scalar_lea.vmem %s126_s18, 512  ;;  %p1058_p6 = scmp.lt.s32.totalorder %s126_s18, %s126_s18 }
  0xa3   :  { %p1054_p5 = scmp.ne.s32.totalorder %s126_s18, %s1053_s23  ;;  %p1059_p7 = scmp.lt.s32.totalorder %s1053_s23, %s1053_s23 }
  0xa5   :  { %p1060_p8 = por %p1059_p7, %p1058_p6 }
  0xa7   :  { %p1061_p9 = pnand %p1060_p8, %p1054_p5 }
  0xa9   :  { %1064 = shalt.err (!%p1061_p9)
}
  0xaa   :  { %131 = dma.hbm_to_vmem [thread:$0]  %s1358_s9, 512, %s126_s18, [#allocation18], %s1104_s14, %s1104_s14, %s1105_s17  }
  0xab   :  { %1087 = dma.done.wait [#allocation3], 512  }
  0xac   :  { %1088 = vsyncadd [#allocation3], 4294966784 }
  0xad   :  { %1089 = dma.done.wait [#allocation6], 144  }
  0xae   :  { %1090 = vsyncadd [#allocation6], 4294967152 }
  0xaf   :  { %1091 = dma.done.wait [#allocation9], 528  }
  0xb0   :  { %1092 = vsyncadd [#allocation9], 4294966768 }
  0xb1   :  { %1093 = dma.done.wait [#allocation12], 528  }
  0xb2   :  { %1094 = vsyncadd [#allocation12], 4294966768 }
  0xb3   :  { %1095 = dma.done.wait [#allocation15], 528  }
  0xb4   :  { %1096 = vsyncadd [#allocation15], 4294966768 }
  0xb5   :  { %1097 = dma.done.wait [#allocation18], 512  }
  0xb6   :  { %1098 = vsyncadd [#allocation18], 4294966784  ;;  %v1113_v0 = vmov 0.0|0.0   ;;  %vm1114_vm0 = vmmov 0   ;;  %v1115_v1 = vmov 0.0   ;;  %v163_v2 = vld [vmem:[#allocation2] sm:$0xff] }
  0xb7   :  { %789 = vmatprep.subr.bf16.mxu0 %v1113_v0  ;;  %796 = vmatprep.subr.bf16.mxu1 %v1113_v0  ;;  %v164_v3 = vld [vmem:[#allocation2 + $0x8] sm:$0xff]  ;;  %v165_v4 = vld [vmem:[#allocation2 + $0x10] sm:$0xff]  ;;  %v166_v6 = vld [vmem:[#allocation2 + $0x18] sm:$0x3f]  ;;  %vm171_vm1 = vcmask 1045504   ;;  %vm1116_vm2 = vmmov 1  }
  0xb8   :  { %737 = vmatprep.mubr.msk.f32.mxu0 %vm1114_vm0, %v1115_v1  ;;  %748 = vmatprep.mubr.msk.f32.mxu1 %vm1114_vm0, %v1115_v1  ;;  %v790_v5 = vpack.c.bf16 %v164_v3, %v163_v2  ;;  %v245_v7 = vld [vmem:[#allocation8] sm:$0xff]  ;;  %v246_v8 = vld [vmem:[#allocation8 + $0x8] sm:$0xff]  ;;  %v247_v9 = vld [vmem:[#allocation8 + $0x10] sm:$0xff]  ;;  %v793_v11 = vpack.c.bf16 %v166_v6, %v165_v4  ;;  %vm167_vm4 = vcmask 244736   ;;  %vm256_vm5 = vcmask 261120   ;;  %s1117_s9 = smov [#allocation19]  }
  0xb9   :  { %v248_v10 = vld [vmem:[#allocation8 + $0x18] sm:$0xff]  ;;  %v797_v12 = vpack.c.bf16 %v246_v8, %v245_v7  ;;  %vm794_vm3 = vmpackc.low %vm171_vm1, %vm1116_vm2  ;;  %v330_v15 = vld [vmem:[#allocation11] sm:$0xff]  ;;  %vm590_vm6 = vcmask 48128   ;;  %s675_s14 = sshll.u32 %s1117_s9, 4  ;;  %vm667_vm7 = vcmask 0   ;;  %s676_s14 = int_to_ptr.vmem [resolvable:$true] %s675_s14 }
  0xba   :  { %791 = vmatpush3.bf16.msra.mxu0 %v790_v5  ;;  %v800_v13 = vpack.c.bf16 %v248_v10, %v247_v9  ;;  %v162_v14 = vld [vmem:[#allocation5] sm:$0x3f]  ;;  %v331_v16 = vld [vmem:[#allocation11 + $0x8] sm:$0xff]  ;;  %v691_v23 = vld [vmem:[#allocation10] ss:$0 sm:$0xff]  ;;  %s1065_s17 = scalar_lea.vmem %s676_s14, 16  ;;  %p1070_p11 = scmp.lt.s32.totalorder %s676_s14, %s676_s14 }
  0xbb   :  { %792 = vmatprep.subr.bf16.mxu0 %v1113_v0  ;;  %798 = vmatpush3.bf16.msra.mxu1 %v797_v12  ;;  %v803_v17 = vpack.c.bf16 %v331_v16, %v330_v15  ;;  %v332_v20 = vld [vmem:[#allocation11 + $0x10] sm:$0xff]  ;;  %v333_v21 = vld [vmem:[#allocation11 + $0x18] sm:$0xff]  ;;  %v421_v27 = vld [vmem:[#allocation14] sm:$0xff]  ;;  %p1066_p10 = scmp.ne.s32.totalorder %s676_s14, %s1065_s17  ;;  %s1069_s4 = scalar_lea.vmem %s676_s14, 32 }
  0xbc   :  { %799 = vmatprep.subr.bf16.mxu1 %v1113_v0  ;;  %v806_v22 = vpack.c.bf16 %v333_v21, %v332_v20  ;;  %v422_v28 = vld [vmem:[#allocation14 + $0x8] sm:$0xff]  ;;  %v423_v30 = vld [vmem:[#allocation14 + $0x10] sm:$0xff]  ;;  %v424_v31 = vld [vmem:[#allocation14 + $0x18] sm:$0xff]  ;;  %p1071_p12 = scmp.lt.s32.totalorder %s1069_s4, %s1065_s17 }
  0xbd   :  { %v809_v29 = vpack.c.bf16 %v422_v28, %v421_v27  ;;  %v812_v32 = vpack.c.bf16 %v424_v31, %v423_v30  ;;  %v693_v33 = vld [vmem:[#allocation13] ss:$0 sm:$0xff]  ;;  %v512_v42 = vld [vmem:[#allocation17] sm:$0xff]  ;;  %v513_v43 = vld [vmem:[#allocation17 + $0x8] sm:$0xff] }
  0xbe   :  { %795 = vmatpush3.bf16.msk.msra.mxu0 %vm794_vm3, %v793_v11  ;;  %v815_v44 = vpack.c.bf16 %v513_v43, %v512_v42  ;;  %v514_v45 = vld [vmem:[#allocation17 + $0x10] sm:$0xff]  ;;  %v515_v46 = vld [vmem:[#allocation17 + $0x18] sm:$0xff]  ;;  %p1072_p13 = por %p1071_p12, %p1070_p11 }
  0xbf   :  { %802 = vmatprep.subr.bf16.mxu0 %v1113_v0  ;;  %801 = vmatpush3.bf16.msra.mxu1 %v800_v13  ;;  %v818_v47 = vpack.c.bf16 %v515_v46, %v514_v45  ;;  %v696_v48 = vld [vmem:[#allocation16] ss:$0 sm:$0xff]  ;;  %v589_v57 = vld [vmem:[#allocation7] sm:$0x1] }
  0xc0   :  { %808 = vmatprep.subr.bf16.mxu1 %v1113_v0  ;;  %p1073_p0 = pnand %p1072_p13, %p1066_p10 }
  0xc1   :  { %738 = vmatmul.mubr.msk.f32.vlgmr.msra.gmra.mrb[0].mxu0 %vm167_vm4, %v162_v14 }
  0xc2   :  { %759 = vmatprep.mubr.msk.f32.mxu0 %vm1114_vm0, %v1115_v1  ;;  %804 = vmatpush3.bf16.msra.mxu0 %v803_v17 }
  0xc3   :  { %805 = vmatprep.subr.bf16.mxu0 %v1113_v0 }
  0xc6   :  { %807 = vmatpush3.bf16.msra.mxu0 %v806_v22 }
  0xc7   :  { %814 = vmatprep.subr.bf16.mxu0 %v1113_v0 }
 0x194   :  { %v241_v18 = vpop.f32.mrb[0].mxu0 }
 0x195   :  { %v739_v19 = vpop.f32.mrb[1].mxu0  ;;  %749 = vmatmul.mubr.msk.f32.vlgmr.msra.gmra.mrb[0].mxu1 %vm256_vm5, %v241_v18 }
 0x196   :  { %770 = vmatprep.mubr.msk.f32.mxu1 %vm1114_vm0, %v1115_v1  ;;  %810 = vmatpush3.bf16.msra.mxu1 %v809_v29 }
 0x197   :  { %811 = vmatprep.subr.bf16.mxu1 %v1113_v0 }
 0x19a   :  { %813 = vmatpush3.bf16.msra.mxu1 %v812_v32 }
 0x19b   :  { %784 = vmatprep.subr.mxu1 %v1115_v1 }
 0x268   :  { %v326_v24 = vpop.f32.mrb[0].mxu1 }
 0x269   :  { %v327_v25 = vadd.f32 %v691_v23, %v326_v24  ;;  %v750_v26 = vpop.f32.mrb[1].mxu1 }
 0x26b   :  { %760 = vmatmul.mubr.msk.f32.vlgmr.msra.gmra.mrb[2].mxu0 %vm256_vm5, %v327_v25 }
 0x26c   :  { %781 = vmatprep.mubr.msk.f32.mxu0 %vm1114_vm0, %v1115_v1  ;;  %816 = vmatpush3.bf16.msra.mxu0 %v815_v44 }
 0x26d   :  { %817 = vmatprep.subr.bf16.mxu0 %v1113_v0 }
 0x270   :  { %819 = vmatpush3.bf16.msra.mxu0 %v818_v47 }
 0x33e   :  { %v410_v34 = vpop.f32.mrb[2].mxu0 }
 0x33f   :  { %v411_v35 = vadd.f32 %v693_v33, %v410_v34  ;;  %v761_v36 = vpop.f32.mrb[3].mxu0 }
 0x341   :  { %v695_v37 = vmul.f32 -1.442695, %v411_v35 }
 0x343   :  { %837 = vpow2.f32 %v695_v37 }
 0x34d   :  { %v838_v38 = vpop.eup %837 }
 0x34e   :  { %v417_v39 = vadd.f32 1.0, %v838_v38 }
 0x350   :  { %839 = vrcp.f32 %v417_v39 }
 0x35a   :  { %v840_v40 = vpop.eup %839 }
 0x35b   :  { %v420_v41 = vmul.f32 %v840_v40, %v411_v35 }
 0x35d   :  { %771 = vmatmul.mubr.msk.f32.vlgmr.msra.gmra.mrb[2].mxu1 %vm256_vm5, %v420_v41 }
 0x35e   :  { %786 = vmatprep.mubr.msk.f32.mxu1 %vm1114_vm0, %v1115_v1 }
 0x430   :  { %v501_v49 = vpop.f32.mrb[2].mxu1 }
 0x431   :  { %v502_v50 = vadd.f32 %v696_v48, %v501_v49  ;;  %v772_v51 = vpop.f32.mrb[3].mxu1 }
 0x433   :  { %v698_v52 = vmul.f32 -1.442695, %v502_v50 }
 0x435   :  { %841 = vpow2.f32 %v698_v52 }
 0x43f   :  { %v842_v53 = vpop.eup %841 }
 0x440   :  { %v508_v54 = vadd.f32 1.0, %v842_v53 }
 0x442   :  { %843 = vrcp.f32 %v508_v54 }
 0x44c   :  { %v844_v55 = vpop.eup %843 }
 0x44d   :  { %v511_v56 = vmul.f32 %v844_v55, %v502_v50 }
 0x44f   :  { %782 = vmatmul.mubr.msk.f32.vlgmr.msra.gmra.mrb[4].mxu0 %vm256_vm5, %v511_v56 }
 0x522   :  { %v585_v58 = vpop.f32.mrb[4].mxu0 }
 0x523   :  { %v783_v59 = vpop.f32.mrb[5].mxu0  ;;  %785 = vmatpush3.msk.msra.mxu1 %vm171_vm1, %v585_v58 }
 0x524   :  { %787 = vmatmul.mubr.msk.f32.vlgmr.msra.gmra.mrb[4].mxu1 %vm590_vm6, %v589_v57 }
 0x5f7   :  { %v663_v60 = vpop.f32.mrb[4].mxu1 }
 0x5f8   :  { %v788_v61 = vpop.f32.mrb[5].mxu1  ;;  %668 = vst.msk [vmem:[#allocation19] sm:$0x1] %vm667_vm7, %v663_v60 }
 0x5f9   :  { %1076 = shalt.err (!%p1073_p0)
}
 0x5fa   :  { %s1077_s25 = scalar_lea.hbm %s1359_s10, 16 }
 0x5fb   :  { %p1078_p1 = scmp.ne.s32.totalorder %s1359_s10, %s1077_s25  ;;  %p1081_p2 = scmp.lt.u32.totalorder %s1077_s25, %s1359_s10 }
 0x5fd   :  { %p1083_p3 = pnand %p1081_p2, %p1078_p1 }
 0x5ff   :  { %1086 = shalt.err (!%p1083_p3)
}
 0x600   :  { %678 = dma.vmem_to_hbm [thread:$0]  %s676_s14, 16, %s1359_s10, [#allocation4]  }
 0x601   :  { %1099 = dma.done.wait [#allocation4], 16  }
 0x602   :  { %1100 = vsyncadd [#allocation4], 4294967280 }
 0x603   :  { %682 = vsyncpa [#allocation3], 1 }
 0x604   :  { %683 = vsyncpa [#allocation6], 1 }
 0x605   :  { %684 = vsyncpa [#allocation9], 1 }
 0x606   :  { %685 = vsyncpa [#allocation12], 1 }
 0x607   :  { %686 = vsyncpa [#allocation15], 1 }
 0x608   :  { %687 = vsyncpa [#allocation18], 1 }
 0x609   :  { %688 = vsyncpa [#allocation4], 1 }

// kernel: spherenet_forward.6
= control target key start
LH: loop header
LB: loop body
LE: loop exit
PB: predicated region body
PF: predicated region fallthrough
CT: control target
= control target key end

     0   :  { %19 = vsyncpa [#allocation3], 0  ;;  %s2087_s0 = inlined_call_operand.hbm [shape: f32[6,95], index: 0, kind: input, shape index: {}]   ;;  %s2088_s1 = inlined_call_operand.hbm [shape: f32[95,32], index: 1, kind: input, shape index: {}]   ;;  %s2089_s2 = inlined_call_operand.hbm [shape: f32[30,4], index: 2, kind: input, shape index: {}]   ;;  %s2090_s3 = inlined_call_operand.hbm [shape: f32[30,6], index: 3, kind: input, shape index: {}]   ;;  %s2091_s4 = inlined_call_operand.hbm [shape: f32[30,6], index: 4, kind: input, shape index: {}]   ;;  %s2092_s5 = inlined_call_operand.hbm [shape: f32[4,32], index: 5, kind: input, shape index: {}]   ;;  %s2093_s6 = inlined_call_operand.hbm [shape: f32[1,32], index: 6, kind: input, shape index: {}]   ;;  %s2094_s7 = inlined_call_operand.hbm [shape: f32[32,32], index: 7, kind: input, shape index: {}]   ;;  %s2095_s8 = inlined_call_operand.hbm [shape: f32[32,32], index: 8, kind: input, shape index: {}]   ;;  %s2096_s9 = inlined_call_operand.hbm [shape: f32[32,32], index: 9, kind: input, shape index: {}]   ;;  %s2097_s10 = inlined_call_operand.hbm [shape: f32[1,32], index: 10, kind: input, shape index: {}]   ;;  %s2098_s11 = inlined_call_operand.hbm [shape: f32[4,32], index: 11, kind: input, shape index: {}]   ;;  %s2099_s12 = inlined_call_operand.hbm [shape: f32[30,32], index: 12, kind: output, shape index: {0}]   ;;  %s2100_s13 = inlined_call_operand.hbm [shape: f32[30,32], index: 13, kind: output, shape index: {1}]  }
   0x1   :  { %20 = vsyncpa [#allocation6], 0 }
   0x2   :  { %21 = vsyncpa [#allocation9], 0 }
   0x3   :  { %22 = vsyncpa [#allocation12], 0 }
   0x4   :  { %23 = vsyncpa [#allocation15], 0 }
   0x5   :  { %24 = vsyncpa [#allocation18], 0 }
   0x6   :  { %25 = vsyncpa [#allocation21], 0 }
   0x7   :  { %26 = vsyncpa [#allocation4], 0 }
   0x8   :  { %27 = vsyncpa [#allocation24], 0  ;;  %s1757_s25 = smov [#allocation5]   ;;  %s1431_s29 = scalar_lea.hbm %s2088_s1, 1536 }
   0x9   :  { %s43_s26 = sshll.u32 %s1757_s25, 4  ;;  %p1432_p0 = scmp.ne.s32.totalorder %s2088_s1, %s1431_s29  ;;  %s44_s26 = int_to_ptr.vmem [resolvable:$true] %s43_s26 }
   0xa   :  { %p1435_p1 = scmp.lt.u32.totalorder %s1431_s29, %s2088_s1 }
   0xc   :  { %p1437_p2 = pnand %p1435_p1, %p1432_p0 }
   0xe   :  { %1440 = shalt.err (!%p1437_p2)
}
   0xf   :  { %s1441_s17 = scalar_lea.vmem %s44_s26, 1536  ;;  %p1446_p4 = scmp.lt.s32.totalorder %s44_s26, %s44_s26 }
  0x10   :  { %p1442_p3 = scmp.ne.s32.totalorder %s44_s26, %s1441_s17  ;;  %p1447_p5 = scmp.lt.s32.totalorder %s1441_s17, %s1441_s17 }
  0x12   :  { %p1448_p6 = por %p1447_p5, %p1446_p4 }
  0x14   :  { %p1449_p7 = pnand %p1448_p6, %p1442_p3 }
  0x16   :  { %1452 = shalt.err (!%p1449_p7)
}
  0x17   :  { %s1758_s18 = smov 128   ;;  %s1759_s19 = smov 8  }
  0x18   :  { %49 = dma.hbm_to_vmem [thread:$0]  %s2088_s1, 1536, %s44_s26, [#allocation6], %s1758_s18, %s1758_s18, %s1759_s19  }
  0x19   :  { %s1760_s22 = smov [#allocation8]   ;;  %s1761_s24 = smov [#allocation11]  }
  0x1a   :  { %s67_s23 = sshll.u32 %s1760_s22, 4  ;;  %s92_s25 = sshll.u32 %s1761_s24, 4  ;;  %s68_s23 = int_to_ptr.vmem [resolvable:$true] %s67_s23  ;;  %s93_s25 = int_to_ptr.vmem [resolvable:$true] %s92_s25 }
  0x1b   :  { %s1453_s29 = scalar_lea.hbm %s2090_s3, 512 }
  0x1c   :  { %p1454_p8 = scmp.ne.s32.totalorder %s2090_s3, %s1453_s29  ;;  %p1457_p9 = scmp.lt.u32.totalorder %s1453_s29, %s2090_s3 }
  0x1e   :  { %p1459_p10 = pnand %p1457_p9, %p1454_p8 }
  0x20   :  { %1462 = shalt.err (!%p1459_p10)
}
  0x21   :  { %s1463_s1 = scalar_lea.vmem %s68_s23, 512  ;;  %p1468_p12 = scmp.lt.s32.totalorder %s68_s23, %s68_s23 }
  0x22   :  { %p1464_p11 = scmp.ne.s32.totalorder %s68_s23, %s1463_s1  ;;  %p1469_p13 = scmp.lt.s32.totalorder %s1463_s1, %s1463_s1 }
  0x24   :  { %p1470_p0 = por %p1469_p13, %p1468_p12 }
  0x26   :  { %p1471_p1 = pnand %p1470_p0, %p1464_p11 }
  0x28   :  { %1474 = shalt.err (!%p1471_p1)
}
  0x29   :  { %73 = dma.hbm_to_vmem [thread:$0]  %s2090_s3, 512, %s68_s23, [#allocation9], %s1758_s18, %s1758_s18, %s1759_s19  }
  0x2a   :  { %s1475_s22 = scalar_lea.hbm %s2092_s5, 64 }
  0x2b   :  { %p1476_p2 = scmp.ne.s32.totalorder %s2092_s5, %s1475_s22  ;;  %p1479_p3 = scmp.lt.u32.totalorder %s1475_s22, %s2092_s5 }
  0x2d   :  { %p1481_p4 = pnand %p1479_p3, %p1476_p2 }
  0x2f   :  { %1484 = shalt.err (!%p1481_p4)
}
  0x30   :  { %s1485_s30 = scalar_lea.vmem %s93_s25, 64  ;;  %p1490_p6 = scmp.lt.s32.totalorder %s93_s25, %s93_s25 }
  0x31   :  { %p1486_p5 = scmp.ne.s32.totalorder %s93_s25, %s1485_s30  ;;  %p1491_p7 = scmp.lt.s32.totalorder %s1485_s30, %s1485_s30 }
  0x33   :  { %p1492_p8 = por %p1491_p7, %p1490_p6 }
  0x35   :  { %p1493_p9 = pnand %p1492_p8, %p1486_p5 }
  0x37   :  { %1496 = shalt.err (!%p1493_p9)
}
  0x38   :  { %95 = dma.hbm_to_vmem [thread:$0]  %s2092_s5, 64, %s93_s25, [#allocation12]  }
  0x39   :  { %s1762_s14 = smov [#allocation14]   ;;  %s1763_s16 = smov [#allocation17]  }
  0x3a   :  { %s111_s15 = sshll.u32 %s1762_s14, 4  ;;  %s135_s1 = sshll.u32 %s1763_s16, 4  ;;  %s112_s15 = int_to_ptr.vmem [resolvable:$true] %s111_s15  ;;  %s136_s1 = int_to_ptr.vmem [resolvable:$true] %s135_s1 }
  0x3b   :  { %s1497_s20 = scalar_lea.hbm %s2094_s7, 512 }
  0x3c   :  { %p1498_p10 = scmp.ne.s32.totalorder %s2094_s7, %s1497_s20  ;;  %p1501_p11 = scmp.lt.u32.totalorder %s1497_s20, %s2094_s7 }
  0x3e   :  { %p1503_p12 = pnand %p1501_p11, %p1498_p10 }
  0x40   :  { %1506 = shalt.err (!%p1503_p12)
}
  0x41   :  { %s1507_s5 = scalar_lea.vmem %s112_s15, 512  ;;  %p1512_p0 = scmp.lt.s32.totalorder %s112_s15, %s112_s15 }
  0x42   :  { %p1508_p13 = scmp.ne.s32.totalorder %s112_s15, %s1507_s5  ;;  %p1513_p1 = scmp.lt.s32.totalorder %s1507_s5, %s1507_s5 }
  0x44   :  { %p1514_p2 = por %p1513_p1, %p1512_p0 }
  0x46   :  { %p1515_p3 = pnand %p1514_p2, %p1508_p13 }
  0x48   :  { %1518 = shalt.err (!%p1515_p3)
}
  0x49   :  { %117 = dma.hbm_to_vmem [thread:$0]  %s2094_s7, 512, %s112_s15, [#allocation15], %s1758_s18, %s1758_s18, %s1759_s19  }
  0x4a   :  { %s1519_s3 = scalar_lea.hbm %s2096_s9, 512 }
  0x4b   :  { %p1520_p4 = scmp.ne.s32.totalorder %s2096_s9, %s1519_s3  ;;  %p1523_p5 = scmp.lt.u32.totalorder %s1519_s3, %s2096_s9 }
  0x4d   :  { %p1525_p6 = pnand %p1523_p5, %p1520_p4 }
  0x4f   :  { %1528 = shalt.err (!%p1525_p6)
}
  0x50   :  { %s1529_s17 = scalar_lea.vmem %s136_s1, 512  ;;  %p1534_p8 = scmp.lt.s32.totalorder %s136_s1, %s136_s1 }
  0x51   :  { %p1530_p7 = scmp.ne.s32.totalorder %s136_s1, %s1529_s17  ;;  %p1535_p9 = scmp.lt.s32.totalorder %s1529_s17, %s1529_s17 }
  0x53   :  { %p1536_p10 = por %p1535_p9, %p1534_p8 }
  0x55   :  { %p1537_p11 = pnand %p1536_p10, %p1530_p7 }
  0x57   :  { %1540 = shalt.err (!%p1537_p11)
}
  0x58   :  { %141 = dma.hbm_to_vmem [thread:$0]  %s2096_s9, 512, %s136_s1, [#allocation18], %s1758_s18, %s1758_s18, %s1759_s19  }
  0x59   :  { %s1764_s20 = smov [#allocation2]   ;;  %s1765_s22 = smov [#allocation7]  }
  0x5a   :  { %s34_s21 = sshll.u32 %s1764_s20, 4  ;;  %s55_s24 = sshll.u32 %s1765_s22, 4  ;;  %s35_s21 = int_to_ptr.vmem [resolvable:$true] %s34_s21  ;;  %s56_s24 = int_to_ptr.vmem [resolvable:$true] %s55_s24 }
  0x5b   :  { %s1541_s25 = scalar_lea.hbm %s2087_s0, 128 }
  0x5c   :  { %p1542_p12 = scmp.ne.s32.totalorder %s2087_s0, %s1541_s25  ;;  %p1545_p13 = scmp.lt.u32.totalorder %s1541_s25, %s2087_s0 }
  0x5e   :  { %p1547_p0 = pnand %p1545_p13, %p1542_p12 }
  0x60   :  { %1550 = shalt.err (!%p1547_p0)
}
  0x61   :  { %s1551_s9 = scalar_lea.vmem %s35_s21, 128  ;;  %p1556_p2 = scmp.lt.s32.totalorder %s35_s21, %s35_s21 }
  0x62   :  { %p1552_p1 = scmp.ne.s32.totalorder %s35_s21, %s1551_s9  ;;  %p1557_p3 = scmp.lt.s32.totalorder %s1551_s9, %s1551_s9 }
  0x64   :  { %p1558_p4 = por %p1557_p3, %p1556_p2 }
  0x66   :  { %p1559_p5 = pnand %p1558_p4, %p1552_p1 }
  0x68   :  { %1562 = shalt.err (!%p1559_p5)
}
  0x69   :  { %37 = dma.hbm_to_vmem [thread:$0]  %s2087_s0, 128, %s35_s21, [#allocation3]  }
  0x6a   :  { %s1563_s26 = scalar_lea.hbm %s2089_s2, 512 }
  0x6b   :  { %p1564_p6 = scmp.ne.s32.totalorder %s2089_s2, %s1563_s26  ;;  %p1567_p7 = scmp.lt.u32.totalorder %s1563_s26, %s2089_s2 }
  0x6d   :  { %p1569_p8 = pnand %p1567_p7, %p1564_p6 }
  0x6f   :  { %1572 = shalt.err (!%p1569_p8)
}
  0x70   :  { %s1573_s22 = scalar_lea.vmem %s56_s24, 512  ;;  %p1578_p10 = scmp.lt.s32.totalorder %s56_s24, %s56_s24 }
  0x71   :  { %p1574_p9 = scmp.ne.s32.totalorder %s56_s24, %s1573_s22  ;;  %p1579_p11 = scmp.lt.s32.totalorder %s1573_s22, %s1573_s22 }
  0x73   :  { %p1580_p12 = por %p1579_p11, %p1578_p10 }
  0x75   :  { %p1581_p13 = pnand %p1580_p12, %p1574_p9 }
  0x77   :  { %1584 = shalt.err (!%p1581_p13)
}
  0x78   :  { %61 = dma.hbm_to_vmem [thread:$0]  %s2089_s2, 512, %s56_s24, [#allocation6], %s1758_s18, %s1758_s18, %s1759_s19  }
  0x79   :  { %s1766_s27 = smov [#allocation10]   ;;  %s1767_s25 = smov [#allocation13]  }
  0x7a   :  { %s79_s5 = sshll.u32 %s1766_s27, 4  ;;  %s102_s28 = sshll.u32 %s1767_s25, 4  ;;  %s80_s5 = int_to_ptr.vmem [resolvable:$true] %s79_s5  ;;  %s103_s28 = int_to_ptr.vmem [resolvable:$true] %s102_s28 }
  0x7b   :  { %s1585_s3 = scalar_lea.hbm %s2091_s4, 512 }
  0x7c   :  { %p1586_p0 = scmp.ne.s32.totalorder %s2091_s4, %s1585_s3  ;;  %p1589_p1 = scmp.lt.u32.totalorder %s1585_s3, %s2091_s4 }
  0x7e   :  { %p1591_p2 = pnand %p1589_p1, %p1586_p0 }
  0x80   :  { %1594 = shalt.err (!%p1591_p2)
}
  0x81   :  { %s1595_s2 = scalar_lea.vmem %s80_s5, 512  ;;  %p1600_p4 = scmp.lt.s32.totalorder %s80_s5, %s80_s5 }
  0x82   :  { %p1596_p3 = scmp.ne.s32.totalorder %s80_s5, %s1595_s2  ;;  %p1601_p5 = scmp.lt.s32.totalorder %s1595_s2, %s1595_s2 }
  0x84   :  { %p1602_p6 = por %p1601_p5, %p1600_p4 }
  0x86   :  { %p1603_p7 = pnand %p1602_p6, %p1596_p3 }
  0x88   :  { %1606 = shalt.err (!%p1603_p7)
}
  0x89   :  { %85 = dma.hbm_to_vmem [thread:$0]  %s2091_s4, 512, %s80_s5, [#allocation9], %s1758_s18, %s1758_s18, %s1759_s19  }
  0x8a   :  { %s1607_s7 = scalar_lea.hbm %s2093_s6, 16 }
  0x8b   :  { %p1608_p8 = scmp.ne.s32.totalorder %s2093_s6, %s1607_s7  ;;  %p1611_p9 = scmp.lt.u32.totalorder %s1607_s7, %s2093_s6 }
  0x8d   :  { %p1613_p10 = pnand %p1611_p9, %p1608_p8 }
  0x8f   :  { %1616 = shalt.err (!%p1613_p10)
}
  0x90   :  { %s1617_s21 = scalar_lea.vmem %s103_s28, 16  ;;  %s1621_s27 = scalar_lea.vmem %s103_s28, 32 }
  0x91   :  { %p1618_p11 = scmp.ne.s32.totalorder %s103_s28, %s1617_s21  ;;  %p1622_p12 = scmp.lt.s32.totalorder %s103_s28, %s103_s28 }
  0x92   :  { %p1623_p13 = scmp.lt.s32.totalorder %s1621_s27, %s1617_s21 }
  0x94   :  { %p1624_p0 = por %p1623_p13, %p1622_p12 }
  0x96   :  { %p1625_p1 = pnand %p1624_p0, %p1618_p11 }
  0x98   :  { %1628 = shalt.err (!%p1625_p1)
}
  0x99   :  { %105 = dma.hbm_to_vmem [thread:$0]  %s2093_s6, 16, %s103_s28, [#allocation12]  }
  0x9a   :  { %s1768_s25 = smov [#allocation16]   ;;  %s1769_s30 = smov [#allocation19]  }
  0x9b   :  { %s123_s29 = sshll.u32 %s1768_s25, 4  ;;  %s148_s3 = sshll.u32 %s1769_s30, 4  ;;  %s124_s29 = int_to_ptr.vmem [resolvable:$true] %s123_s29  ;;  %s149_s3 = int_to_ptr.vmem [resolvable:$true] %s148_s3 }
  0x9c   :  { %s1629_s23 = scalar_lea.hbm %s2095_s8, 512 }
  0x9d   :  { %p1630_p2 = scmp.ne.s32.totalorder %s2095_s8, %s1629_s23  ;;  %p1633_p3 = scmp.lt.u32.totalorder %s1629_s23, %s2095_s8 }
  0x9f   :  { %p1635_p4 = pnand %p1633_p3, %p1630_p2 }
  0xa1   :  { %1638 = shalt.err (!%p1635_p4)
}
  0xa2   :  { %s1639_s6 = scalar_lea.vmem %s124_s29, 512  ;;  %p1644_p6 = scmp.lt.s32.totalorder %s124_s29, %s124_s29 }
  0xa3   :  { %p1640_p5 = scmp.ne.s32.totalorder %s124_s29, %s1639_s6  ;;  %p1645_p7 = scmp.lt.s32.totalorder %s1639_s6, %s1639_s6 }
  0xa5   :  { %p1646_p8 = por %p1645_p7, %p1644_p6 }
  0xa7   :  { %p1647_p9 = pnand %p1646_p8, %p1640_p5 }
  0xa9   :  { %1650 = shalt.err (!%p1647_p9)
}
  0xaa   :  { %129 = dma.hbm_to_vmem [thread:$0]  %s2095_s8, 512, %s124_s29, [#allocation15], %s1758_s18, %s1758_s18, %s1759_s19  }
  0xab   :  { %s1651_s15 = scalar_lea.hbm %s2097_s10, 16 }
  0xac   :  { %p1652_p10 = scmp.ne.s32.totalorder %s2097_s10, %s1651_s15  ;;  %p1655_p11 = scmp.lt.u32.totalorder %s1651_s15, %s2097_s10 }
  0xae   :  { %p1657_p12 = pnand %p1655_p11, %p1652_p10 }
  0xb0   :  { %1660 = shalt.err (!%p1657_p12)
}
  0xb1   :  { %s1661_s27 = scalar_lea.vmem %s149_s3, 16  ;;  %s1665_s4 = scalar_lea.vmem %s149_s3, 32 }
  0xb2   :  { %p1662_p13 = scmp.ne.s32.totalorder %s149_s3, %s1661_s27  ;;  %p1666_p0 = scmp.lt.s32.totalorder %s149_s3, %s149_s3 }
  0xb3   :  { %p1667_p1 = scmp.lt.s32.totalorder %s1665_s4, %s1661_s27 }
  0xb5   :  { %p1668_p2 = por %p1667_p1, %p1666_p0 }
  0xb7   :  { %p1669_p3 = pnand %p1668_p2, %p1662_p13 }
  0xb9   :  { %1672 = shalt.err (!%p1669_p3)
}
  0xba   :  { %151 = dma.hbm_to_vmem [thread:$0]  %s2097_s10, 16, %s149_s3, [#allocation18]  }
  0xbb   :  { %s1770_s25 = smov [#allocation20]   ;;  %s1673_s1 = scalar_lea.hbm %s2098_s11, 64 }
  0xbc   :  { %s158_s29 = sshll.u32 %s1770_s25, 4  ;;  %p1674_p4 = scmp.ne.s32.totalorder %s2098_s11, %s1673_s1  ;;  %s159_s29 = int_to_ptr.vmem [resolvable:$true] %s158_s29 }
  0xbd   :  { %p1677_p5 = scmp.lt.u32.totalorder %s1673_s1, %s2098_s11 }
  0xbf   :  { %p1679_p6 = pnand %p1677_p5, %p1674_p4 }
  0xc1   :  { %1682 = shalt.err (!%p1679_p6)
}
  0xc2   :  { %s1683_s16 = scalar_lea.vmem %s159_s29, 64  ;;  %p1688_p8 = scmp.lt.s32.totalorder %s159_s29, %s159_s29 }
  0xc3   :  { %p1684_p7 = scmp.ne.s32.totalorder %s159_s29, %s1683_s16  ;;  %p1689_p9 = scmp.lt.s32.totalorder %s1683_s16, %s1683_s16 }
  0xc5   :  { %p1690_p10 = por %p1689_p9, %p1688_p8 }
  0xc7   :  { %p1691_p11 = pnand %p1690_p10, %p1684_p7 }
  0xc9   :  { %1694 = shalt.err (!%p1691_p11)
}
  0xca   :  { %161 = dma.hbm_to_vmem [thread:$0]  %s2098_s11, 64, %s159_s29, [#allocation21]  }
  0xcb   :  { %1739 = dma.done.wait [#allocation3], 128  }
  0xcc   :  { %1740 = vsyncadd [#allocation3], 4294967168 }
  0xcd   :  { %1741 = dma.done.wait [#allocation6], 2048  }
  0xce   :  { %1742 = vsyncadd [#allocation6], 4294965248 }
  0xcf   :  { %1743 = dma.done.wait [#allocation9], 1024  }
  0xd0   :  { %1744 = vsyncadd [#allocation9], 4294966272 }
  0xd1   :  { %1745 = dma.done.wait [#allocation12], 80  }
  0xd2   :  { %1746 = vsyncadd [#allocation12], 4294967216 }
  0xd3   :  { %1747 = dma.done.wait [#allocation15], 1024  }
  0xd4   :  { %1748 = vsyncadd [#allocation15], 4294966272 }
  0xd5   :  { %1749 = dma.done.wait [#allocation18], 528  }
  0xd6   :  { %1750 = vsyncadd [#allocation18], 4294966768 }
  0xd7   :  { %1751 = dma.done.wait [#allocation21], 64  }
  0xd8   :  { %1752 = vsyncadd [#allocation21], 4294967232  ;;  %v1771_v0 = vmov 0.0|0.0   ;;  %vm1772_vm0 = vmmov 0   ;;  %v1773_v1 = vmov 0.0   ;;  %v199_v2 = vld [vmem:[#allocation5] sm:$0xff] }
  0xd9   :  { %1328 = vmatprep.subr.bf16.mxu0 %v1771_v0  ;;  %1251 = vmatprep.mubr.msk.f32.mxu0 %vm1772_vm0, %v1773_v1  ;;  %v200_v3 = vld [vmem:[#allocation5 + $0x8] sm:$0xff]  ;;  %v201_v4 = vld [vmem:[#allocation5 + $0x10] sm:$0xff]  ;;  %v202_v6 = vld [vmem:[#allocation5 + $0x18] sm:$0xff]  ;;  %vm215_vm1 = vcmask 1046528   ;;  %vm1774_vm2 = vmmov 1   ;;  %vm314_vm4 = vcmask 1043456  }
  0xda   :  { %v1329_v5 = vpack.c.bf16 %v200_v3, %v199_v2  ;;  %v1332_v7 = vpack.c.bf16 %v202_v6, %v201_v4  ;;  %v203_v8 = vld [vmem:[#allocation5 + $0x20] sm:$0xff]  ;;  %v204_v9 = vld [vmem:[#allocation5 + $0x28] sm:$0xff]  ;;  %v205_v11 = vld [vmem:[#allocation5 + $0x30] sm:$0xff]  ;;  %vm211_vm5 = vcmask 777216   ;;  %vm301_vm6 = vcmask 31744   ;;  %s1775_s11 = smov [#allocation22]  }
  0xdb   :  { %v1335_v10 = vpack.c.bf16 %v204_v9, %v203_v8  ;;  %v206_v12 = vld [vmem:[#allocation5 + $0x38] sm:$0xff]  ;;  %v207_v14 = vld [vmem:[#allocation5 + $0x40] sm:$0xff]  ;;  %v208_v15 = vld [vmem:[#allocation5 + $0x48] sm:$0xff]  ;;  %vm435_vm7 = vcmask 48128   ;;  %vm448_vm8 = vcmask 1045504   ;;  %vm646_vm9 = vcmask 261120  }
  0xdc   :  { %1330 = vmatpush3.bf16.msra.mxu0 %v1329_v5  ;;  %v1338_v13 = vpack.c.bf16 %v206_v12, %v205_v11  ;;  %v1341_v16 = vpack.c.bf16 %v208_v15, %v207_v14  ;;  %v209_v17 = vld [vmem:[#allocation5 + $0x50] sm:$0xff]  ;;  %v210_v18 = vld [vmem:[#allocation5 + $0x58] sm:$0x7f]  ;;  %vm1345_vm3 = vmpackc.low %vm215_vm1, %vm1774_vm2  ;;  %s1092_s6 = sshll.u32 %s1775_s11, 4  ;;  %vm988_vm10 = vcmask 259072   ;;  %s1776_s28 = smov [#allocation23]   ;;  %s1093_s6 = int_to_ptr.vmem [resolvable:$true] %s1092_s6 }
  0xdd   :  { %1331 = vmatprep.subr.bf16.mxu0 %v1771_v0  ;;  %v1344_v19 = vpack.c.bf16 %v210_v18, %v209_v17  ;;  %v293_v20 = vld [vmem:[#allocation11] sm:$0xf]  ;;  %v198_v21 = vld [vmem:[#allocation2] sm:$0x3f]  ;;  %v290_v23 = vld [vmem:[#allocation7 + $0x8] sm:$0xff]  ;;  %s1104_s26 = sshll.u32 %s1776_s28, 4  ;;  %p1700_p13 = scmp.lt.s32.totalorder %s1093_s6, %s1093_s6  ;;  %s2049_s26 = int_to_ptr.vmem [resolvable:$true] %s1104_s26 }
  0xde   :  { %v289_v22 = vld [vmem:[#allocation7] sm:$0xff]  ;;  %v291_v24 = vld [vmem:[#allocation7 + $0x10] sm:$0xff]  ;;  %v292_v25 = vld [vmem:[#allocation7 + $0x18] sm:$0x3f]  ;;  %s1695_s17 = scalar_lea.vmem %s1093_s6, 512 }
  0xdf   :  { %v431_v26 = vld [vmem:[#allocation8] sm:$0xff]  ;;  %v432_v28 = vld [vmem:[#allocation8 + $0x8] sm:$0xff]  ;;  %v433_v30 = vld [vmem:[#allocation8 + $0x10] sm:$0xff]  ;;  %p1696_p12 = scmp.ne.s32.totalorder %s1093_s6, %s1695_s17  ;;  %p1701_p0 = scmp.lt.s32.totalorder %s1695_s17, %s1695_s17 }
  0xe0   :  { %1333 = vmatpush3.bf16.msra.mxu0 %v1332_v7  ;;  %1264 = vmatprep.mubr.msk.f32.mxu1 %vm435_vm7, %v431_v26  ;;  %v434_v31 = vld [vmem:[#allocation8 + $0x18] sm:$0x3f]  ;;  %v537_v33 = vld [vmem:[#allocation10] sm:$0xff]  ;;  %v538_v35 = vld [vmem:[#allocation10 + $0x8] sm:$0xff] }
  0xe1   :  { %1334 = vmatprep.subr.bf16.mxu0 %v1771_v0  ;;  %v539_v37 = vld [vmem:[#allocation10 + $0x10] sm:$0xff]  ;;  %v540_v39 = vld [vmem:[#allocation10 + $0x18] sm:$0x3f]  ;;  %v642_v40 = vld [vmem:[#allocation16] sm:$0xff]  ;;  %p1702_p1 = por %p1701_p0, %p1700_p13 }
  0xe2   :  { %v643_v41 = vld [vmem:[#allocation16 + $0x8] sm:$0xff]  ;;  %v644_v43 = vld [vmem:[#allocation16 + $0x10] sm:$0xff]  ;;  %v645_v44 = vld [vmem:[#allocation16 + $0x18] sm:$0xff] }
  0xe3   :  { %v1347_v42 = vpack.c.bf16 %v643_v41, %v642_v40  ;;  %v1351_v45 = vpack.c.bf16 %v645_v44, %v644_v43  ;;  %v638_v46 = vld [vmem:[#allocation14] sm:$0xff]  ;;  %v639_v47 = vld [vmem:[#allocation14 + $0x8] sm:$0xff]  ;;  %v1128_v50 = vld [vmem:[#allocation13] ss:$0 sm:$0xff]  ;;  %p1703_p2 = pnand %p1702_p1, %p1696_p12 }
  0xe4   :  { %1336 = vmatpush3.bf16.msra.mxu0 %v1335_v10  ;;  %v1355_v48 = vpack.c.bf16 %v639_v47, %v638_v46  ;;  %v990_v49 = vld [vmem:[#allocation20] sm:$0xf]  ;;  %v640_v3 = vld [vmem:[#allocation14 + $0x10] sm:$0xff]  ;;  %v641_v4 = vld [vmem:[#allocation14 + $0x18] sm:$0xff] }
  0xe5   :  { %1337 = vmatprep.subr.bf16.mxu0 %v1771_v0  ;;  %v1359_v10 = vpack.c.bf16 %v641_v4, %v640_v3  ;;  %v841_v11 = vld [vmem:[#allocation17] sm:$0xff]  ;;  %v842_v12 = vld [vmem:[#allocation17 + $0x8] sm:$0xff]  ;;  %v843_v17 = vld [vmem:[#allocation17 + $0x10] sm:$0xff] }
  0xe6   :  { %v844_v18 = vld [vmem:[#allocation17 + $0x18] sm:$0xff] }
  0xe8   :  { %1339 = vmatpush3.bf16.msra.mxu0 %v1338_v13 }
  0xe9   :  { %1340 = vmatprep.subr.bf16.mxu0 %v1771_v0 }
  0xec   :  { %1342 = vmatpush3.bf16.msra.mxu0 %v1341_v16  ;;  %v1363_v16 = vpack.c.bf16 %v842_v12, %v841_v11 }
  0xed   :  { %1343 = vmatprep.subr.bf16.mxu0 %v1771_v0 }
  0xf0   :  { %1346 = vmatpush3.bf16.msk.msra.mxu0 %vm1345_vm3, %v1344_v19  ;;  %v1367_v19 = vpack.c.bf16 %v844_v18, %v843_v17 }
  0xf1   :  { %1254 = vmatprep.subr.msk.mxu0 %vm314_vm4, %v293_v20 }
  0xf3   :  { %1252 = vmatmul.mubr.msk.f32.vlgmr.msra.gmra.mrb[0].mxu0 %vm211_vm5, %v198_v21 }
  0xf4   :  { %1255 = vmatpush3.msk.msra.mxu0 %vm314_vm4, %v293_v20  ;;  %1256 = vmatprep.mubr.msk.f32.mxu0 %vm301_vm6, %v289_v22 }
  0xf5   :  { %1320 = vmatprep.subr.msk.mxu0 %vm314_vm4, %v990_v49 }
  0xf7   :  { %1257 = vmatmul.mubr.msk.f32.vlgmr.msra.gmra.mrb[2].mxu0 %vm301_vm6, %v290_v23 }
  0xf8   :  { %1259 = vmatprep.mubr.msk.f32.mxu0 %vm301_vm6, %v291_v24  ;;  %1321 = vmatpush3.msk.msra.mxu0 %vm314_vm4, %v990_v49 }
  0xfb   :  { %1260 = vmatmul.mubr.msk.f32.gmra.mrb[4].mxu0 %vm301_vm6, %v292_v25 }
  0xfc   :  { %1322 = vmatprep.mubr.msk.f32.mxu0 %vm301_vm6, %v289_v22 }
  0xff   :  { %1323 = vmatmul.mubr.msk.f32.vlgmr.msra.gmra.mrb[6].mxu0 %vm301_vm6, %v290_v23 }
 0x100   :  { %1325 = vmatprep.mubr.msk.f32.mxu0 %vm301_vm6, %v291_v24 }
 0x103   :  { %1326 = vmatmul.mubr.msk.f32.gmra.mrb[8].mxu0 %vm301_vm6, %v292_v25 }
 0x1c6   :  { %v285_v27 = vpop.f32.mrb[0].mxu0 }
 0x1c7   :  { %v1253_v29 = vpop.f32.mrb[1].mxu0  ;;  %1262 = vmatprep.subr.msk.mxu1 %vm448_vm8, %v285_v27 }
 0x1c8   :  { %1263 = vmatpush3.msk.msra.mxu1 %vm448_vm8, %v285_v27 }
 0x1c9   :  { %1265 = vmatmul.mubr.msk.f32.vlgmr.msra.gmra.mrb[0].mxu1 %vm435_vm7, %v432_v28  ;;  %1270 = vmatprep.subr.msk.mxu1 %vm448_vm8, %v285_v27 }
 0x1ca   :  { %1271 = vmatpush3.msk.msra.mxu1 %vm448_vm8, %v285_v27  ;;  %1267 = vmatprep.mubr.msk.f32.mxu1 %vm435_vm7, %v433_v30  ;;  %v1258_v32 = vpop.f32.mrb[2].mxu0 }
 0x1cb   :  { %v384_v34 = vpop.f32.mrb[3].mxu0  ;;  %1348 = vmatprep.subr.bf16.mxu1 %v1347_v42  ;;  %v390_v52 = vadd.f32 %v1258_v32, %v1128_v50  ;;  %v1160_v32 = vld [vmem:[#allocation19] ss:$0 sm:$0xff] }
 0x1cc   :  { %v385_v51 = vadd.f32 %v1128_v50, %v384_v34 }
 0x1cd   :  { %1268 = vmatmul.mubr.msk.f32.gmra.mrb[2].mxu1 %vm435_vm7, %v434_v31  ;;  %v1135_v55 = vmul.f32 -1.442695, %v390_v52 }
 0x1ce   :  { %1272 = vmatprep.mubr.msk.f32.mxu1 %vm435_vm7, %v537_v33  ;;  %v1261_v36 = vpop.f32.mrb[4].mxu0  ;;  %v1134_v53 = vmul.f32 -1.442695, %v385_v51 }
 0x1cf   :  { %v394_v38 = vpop.f32.mrb[5].mxu0  ;;  %v400_v56 = vadd.f32 %v1261_v36, %v1128_v50 }
 0x1d0   :  { %v395_v54 = vadd.f32 %v1128_v50, %v394_v38  ;;  %1399 = vpow2.f32 %v1134_v53 }
 0x1d1   :  { %1273 = vmatmul.mubr.msk.f32.vlgmr.msra.gmra.mrb[4].mxu1 %vm435_vm7, %v538_v35  ;;  %1401 = vpow2.f32 %v1135_v55  ;;  %v1137_v58 = vmul.f32 -1.442695, %v400_v56 }
 0x1d2   :  { %1275 = vmatprep.mubr.msk.f32.mxu1 %vm435_vm7, %v539_v37  ;;  %1350 = vmatpush3.bf16.msra.mxu1 %v1347_v42  ;;  %v1136_v57 = vmul.f32 -1.442695, %v395_v54  ;;  %v1324_v28 = vpop.f32.mrb[6].mxu0 }
 0x1d3   :  { %1352 = vmatprep.subr.bf16.mxu1 %v1351_v45  ;;  %v1060_v29 = vpop.f32.mrb[7].mxu0 }
 0x1d4   :  { %1403 = vpow2.f32 %v1136_v57 }
 0x1d5   :  { %1276 = vmatmul.mubr.msk.f32.gmra.mrb[6].mxu1 %vm435_vm7, %v540_v39  ;;  %1405 = vpow2.f32 %v1137_v58 }
 0x1d6   :  { %1354 = vmatpush3.bf16.msra.mxu1 %v1351_v45  ;;  %v1327_v30 = vpop.f32.mrb[8].mxu0 }
 0x1d7   :  { %1356 = vmatprep.subr.bf16.mxu1 %v1355_v48  ;;  %v1070_v31 = vpop.f32.mrb[9].mxu0 }
 0x1da   :  { %v1400_v61 = vpop.eup %1399 }
 0x1db   :  { %v1402_v63 = vpop.eup %1401  ;;  %v415_v0 = vadd.f32 1.0, %v1400_v61 }
 0x1dc   :  { %v416_v5 = vadd.f32 1.0, %v1402_v63 }
 0x1dd   :  { %1407 = vrcp.f32 %v415_v0 }
 0x1de   :  { %v1404_v2 = vpop.eup %1403  ;;  %1409 = vrcp.f32 %v416_v5 }
 0x1df   :  { %v1406_v7 = vpop.eup %1405  ;;  %v417_v8 = vadd.f32 1.0, %v1404_v2 }
 0x1e0   :  { %v418_v13 = vadd.f32 1.0, %v1406_v7 }
 0x1e1   :  { %1411 = vrcp.f32 %v417_v8 }
 0x1e2   :  { %1413 = vrcp.f32 %v418_v13 }
 0x1e7   :  { %v1408_v20 = vpop.eup %1407 }
 0x1e8   :  { %v1410_v21 = vpop.eup %1409  ;;  %v427_v22 = vmul.f32 %v1408_v20, %v385_v51 }
 0x1e9   :  { %v428_v24 = vmul.f32 %v1410_v21, %v390_v52 }
 0x1eb   :  { %v1412_v23 = vpop.eup %1411 }
 0x1ec   :  { %v1414_v25 = vpop.eup %1413  ;;  %v429_v26 = vmul.f32 %v1412_v23, %v395_v54 }
 0x1ed   :  { %v430_v27 = vmul.f32 %v1414_v25, %v400_v56 }
 0x29c   :  { %v1266_v59 = vpop.f32.mrb[0].mxu1 }
 0x29d   :  { %v518_v60 = vpop.f32.mrb[1].mxu1 }
 0x2a0   :  { %v1269_v62 = vpop.f32.mrb[2].mxu1 }
 0x2a1   :  { %v528_v1 = vpop.f32.mrb[3].mxu1 }
 0x2a4   :  { %v1274_v6 = vpop.f32.mrb[4].mxu1 }
 0x2a5   :  { %v619_v9 = vpop.f32.mrb[5].mxu1 }
 0x2a6   :  { %1286 = vmatprep.mubr.msk.f32.mxu1 %vm646_vm9, %v619_v9 }
 0x2a7   :  { %1287 = vmatmul.mubr.msk.f32.vlgmr.msra.gmra.mrb[8].mxu1 %vm646_vm9, %v1274_v6 }
 0x2a8   :  { %v1277_v14 = vpop.f32.mrb[6].mxu1  ;;  %1358 = vmatpush3.bf16.msra.mxu1 %v1355_v48 }
 0x2a9   :  { %v629_v15 = vpop.f32.mrb[7].mxu1  ;;  %1360 = vmatprep.subr.bf16.mxu1 %v1359_v10 }
 0x2aa   :  { %1289 = vmatprep.mubr.msk.f32.mxu1 %vm646_vm9, %v629_v15 }
 0x2ab   :  { %1290 = vmatmul.mubr.msk.f32.gmra.mrb[10].mxu1 %vm646_vm9, %v1277_v14 }
 0x2ac   :  { %1362 = vmatpush3.bf16.msra.mxu1 %v1359_v10  ;;  %1300 = vmatprep.mubr.msk.f32.mxu1 %vm646_vm9, %v518_v60 }
 0x2ad   :  { %1364 = vmatprep.subr.bf16.mxu1 %v1363_v16 }
 0x2af   :  { %1301 = vmatmul.mubr.msk.f32.vlgmr.msra.gmra.mrb[8].mxu1 %vm646_vm9, %v1266_v59 }
 0x2b0   :  { %1303 = vmatprep.mubr.msk.f32.mxu1 %vm646_vm9, %v528_v1  ;;  %1366 = vmatpush3.bf16.msra.mxu1 %v1363_v16 }
 0x2b1   :  { %1368 = vmatprep.subr.bf16.mxu1 %v1367_v19 }
 0x2b3   :  { %1304 = vmatmul.mubr.msk.f32.gmra.mrb[10].mxu1 %vm646_vm9, %v1269_v62 }
 0x2b4   :  { %1370 = vmatpush3.bf16.msra.mxu1 %v1367_v19  ;;  %1314 = vmatprep.mubr.msk.f32.mxu1 %vm646_vm9, %v427_v22 }
 0x2b7   :  { %1315 = vmatmul.mubr.msk.f32.vlgmr.msra.gmra.mrb[8].mxu1 %vm646_vm9, %v428_v24 }
 0x2b8   :  { %1317 = vmatprep.mubr.msk.f32.mxu1 %vm646_vm9, %v429_v26 }
 0x2bb   :  { %1318 = vmatmul.mubr.msk.f32.gmra.mrb[10].mxu1 %vm646_vm9, %v430_v27 }
 0x38a   :  { %v1316_v33 = vpop.f32.mrb[8].mxu1 }
 0x38b   :  { %v954_v34 = vadd.f32 %v1316_v33, %v1160_v32  ;;  %v923_v35 = vpop.f32.mrb[9].mxu1 }
 0x38c   :  { %v953_v36 = vadd.f32 %v1160_v32, %v923_v35 }
 0x38d   :  { %v1162_v37 = vmul.f32 -1.442695, %v954_v34 }
 0x38e   :  { %v1161_v38 = vmul.f32 -1.442695, %v953_v36  ;;  %v1319_v39 = vpop.f32.mrb[10].mxu1 }
 0x38f   :  { %1415 = vpow2.f32 %v1162_v37  ;;  %v956_v40 = vadd.f32 %v1319_v39, %v1160_v32  ;;  %v933_v41 = vpop.f32.mrb[11].mxu1 }
 0x390   :  { %1417 = vpow2.f32 %v1161_v38  ;;  %v955_v42 = vadd.f32 %v1160_v32, %v933_v41 }
 0x391   :  { %v1164_v43 = vmul.f32 -1.442695, %v956_v40 }
 0x392   :  { %v1163_v44 = vmul.f32 -1.442695, %v955_v42 }
 0x393   :  { %1419 = vpow2.f32 %v1164_v43 }
 0x394   :  { %1421 = vpow2.f32 %v1163_v44 }
 0x399   :  { %v1416_v45 = vpop.eup %1415 }
 0x39a   :  { %v1418_v46 = vpop.eup %1417  ;;  %v970_v47 = vadd.f32 1.0, %v1416_v45 }
 0x39b   :  { %v969_v48 = vadd.f32 1.0, %v1418_v46 }
 0x39c   :  { %1423 = vrcp.f32 %v970_v47 }
 0x39d   :  { %v1420_v49 = vpop.eup %1419  ;;  %1425 = vrcp.f32 %v969_v48 }
 0x39e   :  { %v1422_v50 = vpop.eup %1421  ;;  %v972_v51 = vadd.f32 1.0, %v1420_v49 }
 0x39f   :  { %v971_v52 = vadd.f32 1.0, %v1422_v50 }
 0x3a0   :  { %1427 = vrcp.f32 %v972_v51 }
 0x3a1   :  { %1429 = vrcp.f32 %v971_v52 }
 0x3a6   :  { %v1424_v53 = vpop.eup %1423 }
 0x3a7   :  { %v1426_v54 = vpop.eup %1425  ;;  %v982_v55 = vmul.f32 %v1424_v53, %v954_v34 }
 0x3a8   :  { %v981_v56 = vmul.f32 %v1426_v54, %v953_v36 }
 0x3a9   :  { %986 = vst.msk [vmem:[#allocation22 + $0x8] sm:$0xff] %vm646_vm9, %v982_v55  ;;  %v1080_v57 = vmul.f32 %v1324_v28, %v982_v55 }
 0x3aa   :  { %v1428_v58 = vpop.eup %1427  ;;  %985 = vst.msk [vmem:[#allocation22] sm:$0xff] %vm646_vm9, %v981_v56  ;;  %v1079_v59 = vmul.f32 %v1060_v29, %v981_v56 }
 0x3ab   :  { %v1430_v60 = vpop.eup %1429  ;;  %1084 = vst.msk [vmem:[#allocation23 + $0x8] sm:$0xff] %vm646_vm9, %v1080_v57  ;;  %v984_v61 = vmul.f32 %v1428_v58, %v956_v40 }
 0x3ac   :  { %1083 = vst.msk [vmem:[#allocation23] sm:$0xff] %vm646_vm9, %v1079_v59  ;;  %v983_v62 = vmul.f32 %v1430_v60, %v955_v42 }
 0x3ad   :  { %989 = vst.msk [vmem:[#allocation22 + $0x18] sm:$0x3f] %vm988_vm10, %v984_v61  ;;  %v1082_v63 = vmul.f32 %v1327_v30, %v984_v61 }
 0x3ae   :  { %987 = vst.msk [vmem:[#allocation22 + $0x10] sm:$0xff] %vm646_vm9, %v983_v62  ;;  %v1081_v0 = vmul.f32 %v1070_v31, %v983_v62 }
 0x3af   :  { %1086 = vst.msk [vmem:[#allocation23 + $0x18] sm:$0x3f] %vm988_vm10, %v1082_v63 }
 0x3b0   :  { %1706 = shalt.err (!%p1703_p2)
}
 0x3b1   :  { %s1707_s20 = scalar_lea.hbm %s2099_s12, 512 }
 0x3b2   :  { %p1708_p3 = scmp.ne.s32.totalorder %s2099_s12, %s1707_s20  ;;  %p1711_p4 = scmp.lt.u32.totalorder %s1707_s20, %s2099_s12 }
 0x3b4   :  { %p1713_p5 = pnand %p1711_p4, %p1708_p3 }
 0x3b6   :  { %1716 = shalt.err (!%p1713_p5)
}
 0x3b7   :  { %1098 = dma.vmem_to_hbm [thread:$0]  %s1093_s6, 512, %s2099_s12, [#allocation4], %s1758_s18, %s1758_s18, %s1759_s19   ;;  %1085 = vst.msk [vmem:[#allocation23 + $0x10] sm:$0xff] %vm646_vm9, %v1081_v0 }
 0x3b8   :  { %s1717_s5 = scalar_lea.vmem %s2049_s26, 512  ;;  %p1722_p7 = scmp.lt.s32.totalorder %s2049_s26, %s2049_s26 }
 0x3b9   :  { %p1718_p6 = scmp.ne.s32.totalorder %s2049_s26, %s1717_s5  ;;  %p1723_p8 = scmp.lt.s32.totalorder %s1717_s5, %s1717_s5 }
 0x3bb   :  { %p1724_p9 = por %p1723_p8, %p1722_p7 }
 0x3bd   :  { %p1725_p10 = pnand %p1724_p9, %p1718_p6 }
 0x3bf   :  { %1728 = shalt.err (!%p1725_p10)
}
 0x3c0   :  { %s1729_s30 = scalar_lea.hbm %s2100_s13, 512 }
 0x3c1   :  { %p1730_p11 = scmp.ne.s32.totalorder %s2100_s13, %s1729_s30  ;;  %p1733_p12 = scmp.lt.u32.totalorder %s1729_s30, %s2100_s13 }
 0x3c3   :  { %p1735_p13 = pnand %p1733_p12, %p1730_p11 }
 0x3c5   :  { %1738 = shalt.err (!%p1735_p13)
}
 0x3c6   :  { %1110 = dma.vmem_to_hbm [thread:$0]  %s2049_s26, 512, %s2100_s13, [#allocation24], %s1758_s18, %s1758_s18, %s1759_s19  }
 0x3c7   :  { %1753 = dma.done.wait [#allocation4], 512  }
 0x3c8   :  { %1754 = vsyncadd [#allocation4], 4294966784 }
 0x3c9   :  { %1755 = dma.done.wait [#allocation24], 512  }
 0x3ca   :  { %1756 = vsyncadd [#allocation24], 4294966784 }
 0x3cb   :  { %1117 = vsyncpa [#allocation3], 1 }
 0x3cc   :  { %1118 = vsyncpa [#allocation6], 1 }
 0x3cd   :  { %1119 = vsyncpa [#allocation9], 1 }
 0x3ce   :  { %1120 = vsyncpa [#allocation12], 1 }
 0x3cf   :  { %1121 = vsyncpa [#allocation15], 1 }
 0x3d0   :  { %1122 = vsyncpa [#allocation18], 1 }
 0x3d1   :  { %1123 = vsyncpa [#allocation21], 1 }
 0x3d2   :  { %1124 = vsyncpa [#allocation4], 1 }
 0x3d3   :  { %1125 = vsyncpa [#allocation24], 1 }

// kernel: mul.101
= control target key start
LH: loop header
LB: loop body
LE: loop exit
PB: predicated region body
PF: predicated region fallthrough
CT: control target
= control target key end

     0   :  { %3 = vsyncpa [#allocation1], 0  ;;  %s218_s5 = smov [#allocation0]   ;;  %s338_s0 = inlined_call_operand.vmem [shape: f32[120,12], index: 0, kind: input, shape index: {}]   ;;  %s339_s1 = inlined_call_operand.vmem [shape: f32[120,12], index: 1, kind: input, shape index: {}]   ;;  %s340_s2 = inlined_call_operand.hbm [shape: f32[120,12], index: 2, kind: output, shape index: {}]  }
   0x1   :  { %v4_v0 = vld [vmem:[%s338_s0] sm:$0xff]  ;;  %v163_v3 = vld [vmem:[%s338_s0 + $0x8] sm:$0xff]  ;;  %v165_v5 = vld [vmem:[%s338_s0 + $0x10] sm:$0xff]  ;;  %s154_s6 = sshll.u32 %s218_s5, 4  ;;  %s155_s6 = int_to_ptr.vmem [resolvable:$true] %s154_s6 }
   0x2   :  { %v5_v1 = vld [vmem:[%s339_s1] sm:$0xff]  ;;  %v164_v4 = vld [vmem:[%s339_s1 + $0x8] sm:$0xff]  ;;  %v166_v7 = vld [vmem:[%s339_s1 + $0x10] sm:$0xff]  ;;  %p199_p1 = scmp.lt.s32.totalorder %s155_s6, %s155_s6 }
   0x3   :  { %v8_v2 = vmul.f32 %v5_v1, %v4_v0  ;;  %v17_v6 = vmul.f32 %v164_v4, %v163_v3  ;;  %v167_v8 = vld [vmem:[%s338_s0 + $0x18] sm:$0xff]  ;;  %v27_v10 = vmul.f32 %v166_v7, %v165_v5  ;;  %v169_v12 = vld [vmem:[%s338_s0 + $0x20] sm:$0xff]  ;;  %v171_v14 = vld [vmem:[%s338_s0 + $0x28] sm:$0xff] }
   0x4   :  { %v168_v9 = vld [vmem:[%s339_s1 + $0x18] sm:$0xff]  ;;  %v170_v13 = vld [vmem:[%s339_s1 + $0x20] sm:$0xff]  ;;  %v172_v16 = vld [vmem:[%s339_s1 + $0x28] sm:$0xff] }
   0x5   :  { %10 = vst [vmem:[#allocation0] sm:$0xff] %v8_v2  ;;  %v37_v11 = vmul.f32 %v168_v9, %v167_v8  ;;  %20 = vst [vmem:[#allocation0 + $0x8] sm:$0xff] %v17_v6  ;;  %v47_v15 = vmul.f32 %v170_v13, %v169_v12  ;;  %v173_v17 = vld [vmem:[%s338_s0 + $0x30] sm:$0xff]  ;;  %v57_v19 = vmul.f32 %v172_v16, %v171_v14  ;;  %v175_v21 = vld [vmem:[%s338_s0 + $0x38] sm:$0xff] }
   0x6   :  { %v174_v18 = vld [vmem:[%s339_s1 + $0x30] sm:$0xff]  ;;  %30 = vst [vmem:[#allocation0 + $0x10] sm:$0xff] %v27_v10  ;;  %v176_v22 = vld [vmem:[%s339_s1 + $0x38] sm:$0xff]  ;;  %v177_v23 = vld [vmem:[%s338_s0 + $0x40] sm:$0xff] }
   0x7   :  { %40 = vst [vmem:[#allocation0 + $0x18] sm:$0xff] %v37_v11  ;;  %v67_v20 = vmul.f32 %v174_v18, %v173_v17  ;;  %50 = vst [vmem:[#allocation0 + $0x20] sm:$0xff] %v47_v15  ;;  %v77_v24 = vmul.f32 %v176_v22, %v175_v21  ;;  %v178_v25 = vld [vmem:[%s339_s1 + $0x40] sm:$0xff]  ;;  %v179_v26 = vld [vmem:[%s338_s0 + $0x48] sm:$0xff] }
   0x8   :  { %v180_v27 = vld [vmem:[%s339_s1 + $0x48] sm:$0xff]  ;;  %60 = vst [vmem:[#allocation0 + $0x28] sm:$0xff] %v57_v19  ;;  %v87_v28 = vmul.f32 %v178_v25, %v177_v23  ;;  %v181_v30 = vld [vmem:[%s338_s0 + $0x50] sm:$0xff]  ;;  %v183_v32 = vld [vmem:[%s338_s0 + $0x58] sm:$0xff] }
   0x9   :  { %70 = vst [vmem:[#allocation0 + $0x30] sm:$0xff] %v67_v20  ;;  %v97_v29 = vmul.f32 %v180_v27, %v179_v26  ;;  %v182_v31 = vld [vmem:[%s339_s1 + $0x50] sm:$0xff]  ;;  %80 = vst [vmem:[#allocation0 + $0x38] sm:$0xff] %v77_v24  ;;  %v184_v34 = vld [vmem:[%s339_s1 + $0x58] sm:$0xff] }
   0xa   :  { %v107_v33 = vmul.f32 %v182_v31, %v181_v30  ;;  %v185_v35 = vld [vmem:[%s338_s0 + $0x60] sm:$0xff]  ;;  %90 = vst [vmem:[#allocation0 + $0x40] sm:$0xff] %v87_v28  ;;  %v117_v37 = vmul.f32 %v184_v34, %v183_v32  ;;  %v187_v39 = vld [vmem:[%s338_s0 + $0x68] sm:$0xff]  ;;  %v189_v41 = vld [vmem:[%s338_s0 + $0x70] sm:$0xff] }
   0xb   :  { %v186_v36 = vld [vmem:[%s339_s1 + $0x60] sm:$0xff]  ;;  %100 = vst [vmem:[#allocation0 + $0x48] sm:$0xff] %v97_v29  ;;  %v188_v40 = vld [vmem:[%s339_s1 + $0x68] sm:$0xff]  ;;  %v190_v43 = vld [vmem:[%s339_s1 + $0x70] sm:$0xff]  ;;  %s194_s1 = scalar_lea.vmem %s155_s6, 1920 }
   0xc   :  { %v127_v38 = vmul.f32 %v186_v36, %v185_v35  ;;  %110 = vst [vmem:[#allocation0 + $0x50] sm:$0xff] %v107_v33  ;;  %v137_v42 = vmul.f32 %v188_v40, %v187_v39  ;;  %120 = vst [vmem:[#allocation0 + $0x58] sm:$0xff] %v117_v37  ;;  %v147_v44 = vmul.f32 %v190_v43, %v189_v41  ;;  %p195_p0 = scmp.ne.s32.totalorder %s155_s6, %s194_s1  ;;  %p200_p2 = scmp.lt.s32.totalorder %s194_s1, %s194_s1 }
   0xe   :  { %130 = vst [vmem:[#allocation0 + $0x60] sm:$0xff] %v127_v38  ;;  %140 = vst [vmem:[#allocation0 + $0x68] sm:$0xff] %v137_v42  ;;  %p201_p3 = por %p200_p2, %p199_p1 }
   0xf   :  { %150 = vst [vmem:[#allocation0 + $0x70] sm:$0xff] %v147_v44 }
  0x10   :  { %p202_p4 = pnand %p201_p3, %p195_p0 }
  0x12   :  { %205 = shalt.err (!%p202_p4)
}
  0x13   :  { %s206_s16 = scalar_lea.hbm %s340_s2, 1920 }
  0x14   :  { %p207_p5 = scmp.ne.s32.totalorder %s340_s2, %s206_s16  ;;  %p210_p6 = scmp.lt.u32.totalorder %s206_s16, %s340_s2 }
  0x16   :  { %p212_p7 = pnand %p210_p6, %p207_p5 }
  0x18   :  { %215 = shalt.err (!%p212_p7)
}
  0x19   :  { %s219_s21 = smov 128   ;;  %s220_s22 = smov 8  }
  0x1a   :  { %160 = dma.vmem_to_hbm [thread:$0]  %s155_s6, 1920, %s340_s2, [#allocation1], %s219_s21, %s219_s21, %s220_s22  }
  0x1b   :  { %216 = dma.done.wait [#allocation1], 1920  }
  0x1c   :  { %217 = vsyncadd [#allocation1], 4294965376 }
  0x1d   :  { %162 = vsyncpa [#allocation1], 1 }

// kernel: mul.261
= control target key start
LH: loop header
LB: loop body
LE: loop exit
PB: predicated region body
PF: predicated region fallthrough
CT: control target
= control target key end

     0   :  { %vm3_vm0 = vcmask 982016   ;;  %s60_s0 = inlined_call_operand.vmem [shape: f32[120,9], index: 0, kind: input, shape index: {}]   ;;  %s61_s1 = inlined_call_operand.vmem [shape: f32[120,3,3], index: 1, kind: output, shape index: {}]  }
   0x1   :  { %v2_v0 = vld [vmem:[%s60_s0] sm:$0xff]   ;;  %v32_v1 = vld [vmem:[%s60_s0 + $0x8] sm:$0x1]  }
   0x2   :  { %4 = vst.msk [vmem:[#allocation0] sm:$0x7] %vm3_vm0, %v2_v0   ;;  %6 = vst.msk [vmem:[#allocation0 + $0x5] sm:$0x38] %vm3_vm0, %v2_v0  }
   0x3   :  { %8 = vst.msk [vmem:[#allocation0 + $0xa] sm:$0xc0] %vm3_vm0, %v2_v0   ;;  %13 = vst.msk [vmem:[#allocation0 + $0x12] sm:$0x1] %vm3_vm0, %v32_v1  }
   0x9   :  { %v17_v2 = vld [vmem:[#allocation0] sm:$0xf]  ;;  %v21_v3 = vld [vmem:[#allocation0 + $0x8] sm:$0xf] }
   0xa   :  { %v26_v4 = vld [vmem:[#allocation0 + $0x10] sm:$0xf]  ;;  %19 = vst [vmem:[%s61_s1] sm:$0xf] %v17_v2  ;;  %33 = vst [vmem:[%s61_s1 + $0x4] sm:$0xf] %v21_v3 }
   0xb   :  { %34 = vst [vmem:[%s61_s1 + $0x8] sm:$0xf] %v26_v4 }

// kernel: mul.258
= control target key start
LH: loop header
LB: loop body
LE: loop exit
PB: predicated region body
PF: predicated region fallthrough
CT: control target
= control target key end

     0   :  { %vm3_vm0 = vcmask 982016   ;;  %s58_s0 = inlined_call_operand.vmem [shape: f32[120,12], index: 0, kind: input, shape index: {}]   ;;  %s59_s1 = inlined_call_operand.vmem [shape: f32[120,3,4], index: 1, kind: output, shape index: {}]  }
   0x1   :  { %v2_v0 = vld [vmem:[%s58_s0] sm:$0xff]   ;;  %v30_v1 = vld [vmem:[%s58_s0 + $0x8] sm:$0xf]  }
   0x2   :  { %4 = vst.msk [vmem:[#allocation0] sm:$0xf] %vm3_vm0, %v2_v0   ;;  %6 = vst.msk [vmem:[#allocation0 + $0x4] sm:$0xf0] %vm3_vm0, %v2_v0  }
   0x3   :  { %11 = vst.msk [vmem:[#allocation0 + $0x10] sm:$0xf] %vm3_vm0, %v30_v1  }
   0x9   :  { %v15_v2 = vld [vmem:[#allocation0] sm:$0xf]  ;;  %v19_v3 = vld [vmem:[#allocation0 + $0x8] sm:$0xf] }
   0xa   :  { %v24_v4 = vld [vmem:[#allocation0 + $0x10] sm:$0xf]  ;;  %17 = vst [vmem:[%s59_s1] sm:$0xf] %v15_v2  ;;  %31 = vst [vmem:[%s59_s1 + $0x4] sm:$0xf] %v19_v3 }
   0xb   :  { %32 = vst [vmem:[%s59_s1 + $0x8] sm:$0xf] %v24_v4 }

// kernel: spherenet_forward.8
= control target key start
LH: loop header
LB: loop body
LE: loop exit
PB: predicated region body
PF: predicated region fallthrough
CT: control target
= control target key end

     0   :  { %s4864_s6 = smov 1   ;;  %s4865_s10 = smov 2   ;;  %s5632_s0 = inlined_call_operand.smem [shape: u32[32], index: -1, kind: input, shape index: {}] }
   0x1   :  { %s4941_s5 = sld [smem:[%s5632_s0]]   ;;  %s4866_s14 = smov 3  }
   0x2   :  { %s4946_s9 = sld [smem:[%s5632_s0 + %s4864_s6]]   ;;  %s4867_s18 = smov 4  }
   0x3   :  { %s4951_s13 = sld [smem:[%s5632_s0 + %s4865_s10]]   ;;  %s4868_s22 = smov 5  }
   0x4   :  { %s4956_s17 = sld [smem:[%s5632_s0 + %s4866_s14]]   ;;  %s4869_s26 = smov 6  }
   0x5   :  { %s4961_s21 = sld [smem:[%s5632_s0 + %s4867_s18]]   ;;  %s4870_s30 = smov 7  }
   0x6   :  { %s4966_s25 = sld [smem:[%s5632_s0 + %s4868_s22]]   ;;  %s4871_s4 = smov 8  }
   0x7   :  { %5647 = sst [smem:[#allocation70_spill]] %s4941_s5  ;;  %s4872_s10 = smov 9  }
   0x8   :  { %s4971_s29 = sld [smem:[%s5632_s0 + %s4869_s26]]   ;;  %s4873_s15 = smov 10  }
   0x9   :  { %5648 = sst [smem:[#allocation71_spill]] %s4951_s13  ;;  %s4874_s20 = smov 11  }
   0xa   :  { %s4976_s3 = sld [smem:[%s5632_s0 + %s4870_s30]]   ;;  %s4875_s26 = smov 12  }
   0xb   :  { %5649 = sst [smem:[#allocation72_spill]] %s4961_s21  ;;  %s4876_s1 = smov 13  }
   0xc   :  { %s4981_s8 = sld [smem:[%s5632_s0 + %s4871_s4]]   ;;  %s4877_s7 = smov 14  }
   0xd   :  { %s4986_s14 = sld [smem:[%s5632_s0 + %s4872_s10]]   ;;  %s4879_s22 = smov 16  }
   0xe   :  { %5650 = sst [smem:[#allocation73_spill]] %s4971_s29  ;;  %s4880_s28 = smov 17  }
   0xf   :  { %s4991_s19 = sld [smem:[%s5632_s0 + %s4873_s15]]   ;;  %s4878_s15 = smov 15  }
  0x10   :  { %s4996_s24 = sld [smem:[%s5632_s0 + %s4874_s20]]  }
  0x11   :  { %s5001_s30 = sld [smem:[%s5632_s0 + %s4875_s26]]  }
  0x12   :  { %5651 = sst [smem:[#allocation74_spill]] %s4981_s8 }
  0x13   :  { %s5006_s6 = sld [smem:[%s5632_s0 + %s4876_s1]]  }
  0x14   :  { %s5011_s12 = sld [smem:[%s5632_s0 + %s4877_s7]]   ;;  %s4881_s7 = smov 18  }
  0x15   :  { %5652 = sst [smem:[#allocation75_spill]] %s4991_s19 }
  0x16   :  { %s5016_s20 = sld [smem:[%s5632_s0 + %s4878_s15]]   ;;  %s4882_s15 = smov 19  }
  0x17   :  { %5653 = sst [smem:[#allocation76_spill]] %s5001_s30 }
  0x18   :  { %s5021_s27 = sld [smem:[%s5632_s0 + %s4879_s22]]   ;;  %s4883_s22 = smov 20  }
  0x19   :  { %s5026_s4 = sld [smem:[%s5632_s0 + %s4880_s28]]   ;;  %s4884_s28 = smov 21  }
  0x1a   :  { %5654 = sst [smem:[#allocation77_spill]] %s5011_s12 }
  0x1b   :  { %s5031_s12 = sld [smem:[%s5632_s0 + %s4881_s7]]   ;;  %s4885_s7 = smov 22  }
  0x1c   :  { %s5036_s30 = sld [smem:[%s5632_s0 + %s4882_s15]]   ;;  %s4886_s15 = smov 23  }
  0x1d   :  { %s5046_s19 = sld [smem:[%s5632_s0 + %s4884_s28]]   ;;  %s4888_s28 = smov 25  }
  0x1e   :  { %5655 = sst [smem:[#allocation78_spill]] %s5021_s27 }
  0x1f   :  { %s5041_s27 = sld [smem:[%s5632_s0 + %s4883_s22]]   ;;  %s4887_s22 = smov 24  }
  0x20   :  { %s5056_s8 = sld [smem:[%s5632_s0 + %s4886_s15]]   ;;  %s4890_s15 = smov 27  }
  0x21   :  { %5656 = sst [smem:[#allocation79_spill]] %s5031_s12 }
  0x22   :  { %s5051_s12 = sld [smem:[%s5632_s0 + %s4885_s7]]   ;;  %s4889_s7 = smov 26  }
  0x23   :  { %s5066_s29 = sld [smem:[%s5632_s0 + %s4888_s28]]   ;;  %s4892_s28 = smov 29  }
  0x24   :  { %s5076_s21 = sld [smem:[%s5632_s0 + %s4890_s15]]   ;;  %s4894_s15 = smov 31  }
  0x25   :  { %5657 = sst [smem:[#allocation80_spill]] %s5041_s27 }
  0x26   :  { %s5061_s27 = sld [smem:[%s5632_s0 + %s4887_s22]]   ;;  %s4891_s22 = smov 28  }
  0x27   :  { %s5086_s13 = sld [smem:[%s5632_s0 + %s4892_s28]]  }
  0x28   :  { %5658 = sst [smem:[#allocation81_spill]] %s5051_s12 }
  0x29   :  { %s5071_s12 = sld [smem:[%s5632_s0 + %s4889_s7]]   ;;  %s4893_s7 = smov 30  }
  0x2a   :  { %s5096_s5 = sld [smem:[%s5632_s0 + %s4894_s15]]  }
  0x2c   :  { %5659 = sst [smem:[#allocation82_spill]] %s5061_s27 }
  0x2d   :  { %s5081_s27 = sld [smem:[%s5632_s0 + %s4891_s22]]  }
  0x2f   :  { %5660 = sst [smem:[#allocation83_spill]] %s5071_s12 }
  0x30   :  { %s5091_s12 = sld [smem:[%s5632_s0 + %s4893_s7]]  }
  0x31   :  { %69 = vsyncpa [#allocation3], 0 }
  0x32   :  { %70 = vsyncpa [#allocation6], 0 }
  0x33   :  { %71 = vsyncpa [#allocation9], 0 }
  0x34   :  { %72 = vsyncpa [#allocation12], 0 }
  0x35   :  { %73 = vsyncpa [#allocation15], 0 }
  0x36   :  { %74 = vsyncpa [#allocation18], 0 }
  0x37   :  { %75 = vsyncpa [#allocation21], 0 }
  0x38   :  { %76 = vsyncpa [#allocation24], 0 }
  0x39   :  { %77 = vsyncpa [#allocation27], 0 }
  0x3a   :  { %78 = vsyncpa [#allocation30], 0 }
  0x3b   :  { %79 = vsyncpa [#allocation33], 0 }
  0x3c   :  { %80 = vsyncpa [#allocation36], 0 }
  0x3d   :  { %81 = vsyncpa [#allocation39], 0 }
  0x3e   :  { %82 = vsyncpa [#allocation42], 0 }
  0x3f   :  { %83 = vsyncpa [#allocation45], 0 }
  0x40   :  { %84 = vsyncpa [#allocation48], 0 }
  0x41   :  { %85 = vsyncpa [#allocation4], 0 }
  0x42   :  { %86 = vsyncpa [#allocation51], 0  ;;  %s4895_s0 = smov [#allocation5]   ;;  %s4896_s23 = smov [#allocation8]  }
  0x43   :  { %s104_s22 = sshll.u32 %s4895_s0, 4  ;;  %s128_s26 = sshll.u32 %s4896_s23, 4  ;;  %s105_s22 = int_to_ptr.vmem [resolvable:$true] %s104_s22  ;;  %s5098_s26 = int_to_ptr.vmem [resolvable:$true] %s128_s26 }
  0x44   :  { %s4124_s28 = scalar_lea.hbm %s4946_s9, 512 }
  0x45   :  { %p4125_p0 = scmp.ne.s32.totalorder %s4946_s9, %s4124_s28  ;;  %p4128_p1 = scmp.lt.u32.totalorder %s4124_s28, %s4946_s9 }
  0x47   :  { %p4130_p2 = pnand %p4128_p1, %p4125_p0 }
  0x49   :  { %4133 = shalt.err (!%p4130_p2)
}
  0x4a   :  { %s4134_s1 = scalar_lea.vmem %s105_s22, 512  ;;  %p4139_p4 = scmp.lt.s32.totalorder %s105_s22, %s105_s22 }
  0x4b   :  { %p4135_p3 = scmp.ne.s32.totalorder %s105_s22, %s4134_s1  ;;  %p4140_p5 = scmp.lt.s32.totalorder %s4134_s1, %s4134_s1 }
  0x4d   :  { %p4141_p6 = por %p4140_p5, %p4139_p4 }
  0x4f   :  { %p4142_p7 = pnand %p4141_p6, %p4135_p3 }
  0x51   :  { %4145 = shalt.err (!%p4142_p7)
}
  0x52   :  { %s4897_s2 = smov 128   ;;  %s4898_s7 = smov 8  }
  0x53   :  { %110 = dma.hbm_to_vmem [thread:$0]  %s4946_s9, 512, %s105_s22, [#allocation6], %s4897_s2, %s4897_s2, %s4898_s7  }
  0x54   :  { %s4146_s10 = scalar_lea.hbm %s4956_s17, 1920 }
  0x55   :  { %p4147_p8 = scmp.ne.s32.totalorder %s4956_s17, %s4146_s10  ;;  %p4150_p9 = scmp.lt.u32.totalorder %s4146_s10, %s4956_s17 }
  0x57   :  { %p4152_p10 = pnand %p4150_p9, %p4147_p8 }
  0x59   :  { %4155 = shalt.err (!%p4152_p10)
}
  0x5a   :  { %s4156_s11 = scalar_lea.vmem %s5098_s26, 1920  ;;  %p4161_p12 = scmp.lt.s32.totalorder %s5098_s26, %s5098_s26 }
  0x5b   :  { %p4157_p11 = scmp.ne.s32.totalorder %s5098_s26, %s4156_s11  ;;  %p4162_p13 = scmp.lt.s32.totalorder %s4156_s11, %s4156_s11 }
  0x5d   :  { %p4163_p0 = por %p4162_p13, %p4161_p12 }
  0x5f   :  { %p4164_p1 = pnand %p4163_p0, %p4157_p11 }
  0x61   :  { %4167 = shalt.err (!%p4164_p1)
}
  0x62   :  { %134 = dma.hbm_to_vmem [thread:$0]  %s4956_s17, 1920, %s5098_s26, [#allocation9], %s4897_s2, %s4897_s2, %s4898_s7  }
  0x63   :  { %s4899_s9 = smov [#allocation11]   ;;  %s4900_s16 = smov [#allocation14]  }
  0x64   :  { %s152_s15 = sshll.u32 %s4899_s9, 4  ;;  %s177_s18 = sshll.u32 %s4900_s16, 4  ;;  %s153_s15 = int_to_ptr.vmem [resolvable:$true] %s152_s15  ;;  %s178_s18 = int_to_ptr.vmem [resolvable:$true] %s177_s18 }
  0x65   :  { %s4168_s0 = scalar_lea.hbm %s4966_s25, 512 }
  0x66   :  { %p4169_p2 = scmp.ne.s32.totalorder %s4966_s25, %s4168_s0  ;;  %p4172_p3 = scmp.lt.u32.totalorder %s4168_s0, %s4966_s25 }
  0x68   :  { %p4174_p4 = pnand %p4172_p3, %p4169_p2 }
  0x6a   :  { %4177 = shalt.err (!%p4174_p4)
}
  0x6b   :  { %s4178_s22 = scalar_lea.vmem %s153_s15, 512  ;;  %p4183_p6 = scmp.lt.s32.totalorder %s153_s15, %s153_s15 }
  0x6c   :  { %p4179_p5 = scmp.ne.s32.totalorder %s153_s15, %s4178_s22  ;;  %p4184_p7 = scmp.lt.s32.totalorder %s4178_s22, %s4178_s22 }
  0x6e   :  { %p4185_p8 = por %p4184_p7, %p4183_p6 }
  0x70   :  { %p4186_p9 = pnand %p4185_p8, %p4179_p5 }
  0x72   :  { %4189 = shalt.err (!%p4186_p9)
}
  0x73   :  { %158 = dma.hbm_to_vmem [thread:$0]  %s4966_s25, 512, %s153_s15, [#allocation12], %s4897_s2, %s4897_s2, %s4898_s7  }
  0x74   :  { %s4190_s17 = scalar_lea.hbm %s4976_s3, 16 }
  0x75   :  { %p4191_p10 = scmp.ne.s32.totalorder %s4976_s3, %s4190_s17  ;;  %p4194_p11 = scmp.lt.u32.totalorder %s4190_s17, %s4976_s3 }
  0x77   :  { %p4196_p12 = pnand %p4194_p11, %p4191_p10 }
  0x79   :  { %4199 = shalt.err (!%p4196_p12)
}
  0x7a   :  { %s4200_s23 = scalar_lea.vmem %s178_s18, 16  ;;  %s4204_s26 = scalar_lea.vmem %s178_s18, 32 }
  0x7b   :  { %p4201_p13 = scmp.ne.s32.totalorder %s178_s18, %s4200_s23  ;;  %p4205_p0 = scmp.lt.s32.totalorder %s178_s18, %s178_s18 }
  0x7c   :  { %p4206_p1 = scmp.lt.s32.totalorder %s4204_s26, %s4200_s23 }
  0x7e   :  { %p4207_p2 = por %p4206_p1, %p4205_p0 }
  0x80   :  { %p4208_p3 = pnand %p4207_p2, %p4201_p13 }
  0x82   :  { %4211 = shalt.err (!%p4208_p3)
}
  0x83   :  { %180 = dma.hbm_to_vmem [thread:$0]  %s4976_s3, 16, %s178_s18, [#allocation15]  }
  0x84   :  { %s4901_s28 = smov [#allocation17]   ;;  %s4902_s1 = smov [#allocation20]  }
  0x85   :  { %s199_s25 = sshll.u32 %s4901_s28, 4  ;;  %s218_s10 = sshll.u32 %s4902_s1, 4  ;;  %s200_s25 = int_to_ptr.vmem [resolvable:$true] %s199_s25  ;;  %s5130_s10 = int_to_ptr.vmem [resolvable:$true] %s218_s10 }
  0x86   :  { %s4212_s11 = scalar_lea.hbm %s4986_s14, 16 }
  0x87   :  { %p4213_p4 = scmp.ne.s32.totalorder %s4986_s14, %s4212_s11  ;;  %p4216_p5 = scmp.lt.u32.totalorder %s4212_s11, %s4986_s14 }
  0x89   :  { %p4218_p6 = pnand %p4216_p5, %p4213_p4 }
  0x8b   :  { %4221 = shalt.err (!%p4218_p6)
}
  0x8c   :  { %s4222_s9 = scalar_lea.vmem %s200_s25, 16  ;;  %s4226_s15 = scalar_lea.vmem %s200_s25, 32 }
  0x8d   :  { %p4223_p7 = scmp.ne.s32.totalorder %s200_s25, %s4222_s9  ;;  %p4227_p8 = scmp.lt.s32.totalorder %s200_s25, %s200_s25 }
  0x8e   :  { %p4228_p9 = scmp.lt.s32.totalorder %s4226_s15, %s4222_s9 }
  0x90   :  { %p4229_p10 = por %p4228_p9, %p4227_p8 }
  0x92   :  { %p4230_p11 = pnand %p4229_p10, %p4223_p7 }
  0x94   :  { %4233 = shalt.err (!%p4230_p11)
}
  0x95   :  { %202 = dma.hbm_to_vmem [thread:$0]  %s4986_s14, 16, %s200_s25, [#allocation18]  }
  0x96   :  { %s4234_s3 = scalar_lea.hbm %s4996_s24, 512 }
  0x97   :  { %p4235_p12 = scmp.ne.s32.totalorder %s4996_s24, %s4234_s3  ;;  %p4238_p13 = scmp.lt.u32.totalorder %s4234_s3, %s4996_s24 }
  0x99   :  { %p4240_p0 = pnand %p4238_p13, %p4235_p12 }
  0x9b   :  { %4243 = shalt.err (!%p4240_p0)
}
  0x9c   :  { %s4244_s16 = scalar_lea.vmem %s5130_s10, 512  ;;  %p4249_p2 = scmp.lt.s32.totalorder %s5130_s10, %s5130_s10 }
  0x9d   :  { %p4245_p1 = scmp.ne.s32.totalorder %s5130_s10, %s4244_s16  ;;  %p4250_p3 = scmp.lt.s32.totalorder %s4244_s16, %s4244_s16 }
  0x9f   :  { %p4251_p4 = por %p4250_p3, %p4249_p2 }
  0xa1   :  { %p4252_p5 = pnand %p4251_p4, %p4245_p1 }
  0xa3   :  { %4255 = shalt.err (!%p4252_p5)
}
  0xa4   :  { %224 = dma.hbm_to_vmem [thread:$0]  %s4996_s24, 512, %s5130_s10, [#allocation21], %s4897_s2, %s4897_s2, %s4898_s7  }
  0xa5   :  { %s4903_s14 = smov [#allocation23]   ;;  %s4904_s0 = smov [#allocation26]  }
  0xa6   :  { %s242_s18 = sshll.u32 %s4903_s14, 4  ;;  %s266_s22 = sshll.u32 %s4904_s0, 4  ;;  %s243_s18 = int_to_ptr.vmem [resolvable:$true] %s242_s18  ;;  %s5148_s22 = int_to_ptr.vmem [resolvable:$true] %s266_s22 }
  0xa7   :  { %s4256_s17 = scalar_lea.hbm %s5006_s6, 640 }
  0xa8   :  { %p4257_p6 = scmp.ne.s32.totalorder %s5006_s6, %s4256_s17  ;;  %p4260_p7 = scmp.lt.u32.totalorder %s4256_s17, %s5006_s6 }
  0xaa   :  { %p4262_p8 = pnand %p4260_p7, %p4257_p6 }
  0xac   :  { %4265 = shalt.err (!%p4262_p8)
}
  0xad   :  { %s4266_s23 = scalar_lea.vmem %s243_s18, 640  ;;  %p4271_p10 = scmp.lt.s32.totalorder %s243_s18, %s243_s18 }
  0xae   :  { %p4267_p9 = scmp.ne.s32.totalorder %s243_s18, %s4266_s23  ;;  %p4272_p11 = scmp.lt.s32.totalorder %s4266_s23, %s4266_s23 }
  0xb0   :  { %p4273_p12 = por %p4272_p11, %p4271_p10 }
  0xb2   :  { %p4274_p13 = pnand %p4273_p12, %p4267_p9 }
  0xb4   :  { %4277 = shalt.err (!%p4274_p13)
}
  0xb5   :  { %248 = dma.hbm_to_vmem [thread:$0]  %s5006_s6, 640, %s243_s18, [#allocation24], %s4897_s2, %s4897_s2, %s4898_s7  }
  0xb6   :  { %s4278_s24 = scalar_lea.hbm %s5016_s20, 512 }
  0xb7   :  { %p4279_p0 = scmp.ne.s32.totalorder %s5016_s20, %s4278_s24  ;;  %p4282_p1 = scmp.lt.u32.totalorder %s4278_s24, %s5016_s20 }
  0xb9   :  { %p4284_p2 = pnand %p4282_p1, %p4279_p0 }
  0xbb   :  { %4287 = shalt.err (!%p4284_p2)
}
  0xbc   :  { %s4288_s26 = scalar_lea.vmem %s5148_s22, 512  ;;  %p4293_p4 = scmp.lt.s32.totalorder %s5148_s22, %s5148_s22 }
  0xbd   :  { %p4289_p3 = scmp.ne.s32.totalorder %s5148_s22, %s4288_s26  ;;  %p4294_p5 = scmp.lt.s32.totalorder %s4288_s26, %s4288_s26 }
  0xbf   :  { %p4295_p6 = por %p4294_p5, %p4293_p4 }
  0xc1   :  { %p4296_p7 = pnand %p4295_p6, %p4289_p3 }
  0xc3   :  { %4299 = shalt.err (!%p4296_p7)
}
  0xc4   :  { %272 = dma.hbm_to_vmem [thread:$0]  %s5016_s20, 512, %s5148_s22, [#allocation27], %s4897_s2, %s4897_s2, %s4898_s7  }
  0xc5   :  { %s4905_s6 = smov [#allocation29]   ;;  %s4906_s25 = smov [#allocation32]  }
  0xc6   :  { %s288_s28 = sshll.u32 %s4905_s6, 4  ;;  %s310_s1 = sshll.u32 %s4906_s25, 4  ;;  %s289_s28 = int_to_ptr.vmem [resolvable:$true] %s288_s28  ;;  %s5169_s1 = int_to_ptr.vmem [resolvable:$true] %s310_s1 }
  0xc7   :  { %s4300_s10 = scalar_lea.hbm %s5026_s4, 512 }
  0xc8   :  { %p4301_p8 = scmp.ne.s32.totalorder %s5026_s4, %s4300_s10  ;;  %p4304_p9 = scmp.lt.u32.totalorder %s4300_s10, %s5026_s4 }
  0xca   :  { %p4306_p10 = pnand %p4304_p9, %p4301_p8 }
  0xcc   :  { %4309 = shalt.err (!%p4306_p10)
}
  0xcd   :  { %s4310_s11 = scalar_lea.vmem %s289_s28, 512  ;;  %p4315_p12 = scmp.lt.s32.totalorder %s289_s28, %s289_s28 }
  0xce   :  { %p4311_p11 = scmp.ne.s32.totalorder %s289_s28, %s4310_s11  ;;  %p4316_p13 = scmp.lt.s32.totalorder %s4310_s11, %s4310_s11 }
  0xd0   :  { %p4317_p0 = por %p4316_p13, %p4315_p12 }
  0xd2   :  { %p4318_p1 = pnand %p4317_p0, %p4311_p11 }
  0xd4   :  { %4321 = shalt.err (!%p4318_p1)
}
  0xd5   :  { %294 = dma.hbm_to_vmem [thread:$0]  %s5026_s4, 512, %s289_s28, [#allocation30], %s4897_s2, %s4897_s2, %s4898_s7  }
  0xd6   :  { %s4322_s20 = scalar_lea.hbm %s5036_s30, 512 }
  0xd7   :  { %p4323_p2 = scmp.ne.s32.totalorder %s5036_s30, %s4322_s20  ;;  %p4326_p3 = scmp.lt.u32.totalorder %s4322_s20, %s5036_s30 }
  0xd9   :  { %p4328_p4 = pnand %p4326_p3, %p4323_p2 }
  0xdb   :  { %4331 = shalt.err (!%p4328_p4)
}
  0xdc   :  { %s4332_s9 = scalar_lea.vmem %s5169_s1, 512  ;;  %p4337_p6 = scmp.lt.s32.totalorder %s5169_s1, %s5169_s1 }
  0xdd   :  { %p4333_p5 = scmp.ne.s32.totalorder %s5169_s1, %s4332_s9  ;;  %p4338_p7 = scmp.lt.s32.totalorder %s4332_s9, %s4332_s9 }
  0xdf   :  { %p4339_p8 = por %p4338_p7, %p4337_p6 }
  0xe1   :  { %p4340_p9 = pnand %p4339_p8, %p4333_p5 }
  0xe3   :  { %4343 = shalt.err (!%p4340_p9)
}
  0xe4   :  { %316 = dma.hbm_to_vmem [thread:$0]  %s5036_s30, 512, %s5169_s1, [#allocation33], %s4897_s2, %s4897_s2, %s4898_s7  }
  0xe5   :  { %s4907_s4 = smov [#allocation35]   ;;  %s4908_s3 = smov [#allocation38]  }
  0xe6   :  { %s332_s15 = sshll.u32 %s4907_s4, 4  ;;  %s354_s16 = sshll.u32 %s4908_s3, 4  ;;  %s333_s15 = int_to_ptr.vmem [resolvable:$true] %s332_s15  ;;  %s5190_s16 = int_to_ptr.vmem [resolvable:$true] %s354_s16 }
  0xe7   :  { %s4344_s14 = scalar_lea.hbm %s5046_s19, 512 }
  0xe8   :  { %p4345_p10 = scmp.ne.s32.totalorder %s5046_s19, %s4344_s14  ;;  %p4348_p11 = scmp.lt.u32.totalorder %s4344_s14, %s5046_s19 }
  0xea   :  { %p4350_p12 = pnand %p4348_p11, %p4345_p10 }
  0xec   :  { %4353 = shalt.err (!%p4350_p12)
}
  0xed   :  { %s4354_s18 = scalar_lea.vmem %s333_s15, 512  ;;  %p4359_p0 = scmp.lt.s32.totalorder %s333_s15, %s333_s15 }
  0xee   :  { %p4355_p13 = scmp.ne.s32.totalorder %s333_s15, %s4354_s18  ;;  %p4360_p1 = scmp.lt.s32.totalorder %s4354_s18, %s4354_s18 }
  0xf0   :  { %p4361_p2 = por %p4360_p1, %p4359_p0 }
  0xf2   :  { %p4362_p3 = pnand %p4361_p2, %p4355_p13 }
  0xf4   :  { %4365 = shalt.err (!%p4362_p3)
}
  0xf5   :  { %338 = dma.hbm_to_vmem [thread:$0]  %s5046_s19, 512, %s333_s15, [#allocation36], %s4897_s2, %s4897_s2, %s4898_s7  }
  0xf6   :  { %s4366_s30 = scalar_lea.hbm %s5056_s8, 512 }
  0xf7   :  { %p4367_p4 = scmp.ne.s32.totalorder %s5056_s8, %s4366_s30  ;;  %p4370_p5 = scmp.lt.u32.totalorder %s4366_s30, %s5056_s8 }
  0xf9   :  { %p4372_p6 = pnand %p4370_p5, %p4367_p4 }
  0xfb   :  { %4375 = shalt.err (!%p4372_p6)
}
  0xfc   :  { %s4376_s0 = scalar_lea.vmem %s5190_s16, 512  ;;  %p4381_p8 = scmp.lt.s32.totalorder %s5190_s16, %s5190_s16 }
  0xfd   :  { %p4377_p7 = scmp.ne.s32.totalorder %s5190_s16, %s4376_s0  ;;  %p4382_p9 = scmp.lt.s32.totalorder %s4376_s0, %s4376_s0 }
  0xff   :  { %p4383_p10 = por %p4382_p9, %p4381_p8 }
 0x101   :  { %p4384_p11 = pnand %p4383_p10, %p4377_p7 }
 0x103   :  { %4387 = shalt.err (!%p4384_p11)
}
 0x104   :  { %360 = dma.hbm_to_vmem [thread:$0]  %s5056_s8, 512, %s5190_s16, [#allocation39], %s4897_s2, %s4897_s2, %s4898_s7  }
 0x105   :  { %s4909_s19 = smov [#allocation41]   ;;  %s4910_s17 = smov [#allocation44]  }
 0x106   :  { %s376_s22 = sshll.u32 %s4909_s19, 4  ;;  %s398_s23 = sshll.u32 %s4910_s17, 4  ;;  %s377_s22 = int_to_ptr.vmem [resolvable:$true] %s376_s22  ;;  %s5211_s23 = int_to_ptr.vmem [resolvable:$true] %s398_s23 }
 0x107   :  { %s4388_s24 = scalar_lea.hbm %s5066_s29, 512 }
 0x108   :  { %p4389_p12 = scmp.ne.s32.totalorder %s5066_s29, %s4388_s24  ;;  %p4392_p13 = scmp.lt.u32.totalorder %s4388_s24, %s5066_s29 }
 0x10a   :  { %p4394_p0 = pnand %p4392_p13, %p4389_p12 }
 0x10c   :  { %4397 = shalt.err (!%p4394_p0)
}
 0x10d   :  { %s4398_s26 = scalar_lea.vmem %s377_s22, 512  ;;  %p4403_p2 = scmp.lt.s32.totalorder %s377_s22, %s377_s22 }
 0x10e   :  { %p4399_p1 = scmp.ne.s32.totalorder %s377_s22, %s4398_s26  ;;  %p4404_p3 = scmp.lt.s32.totalorder %s4398_s26, %s4398_s26 }
 0x110   :  { %p4405_p4 = por %p4404_p3, %p4403_p2 }
 0x112   :  { %p4406_p5 = pnand %p4405_p4, %p4399_p1 }
 0x114   :  { %4409 = shalt.err (!%p4406_p5)
}
 0x115   :  { %382 = dma.hbm_to_vmem [thread:$0]  %s5066_s29, 512, %s377_s22, [#allocation42], %s4897_s2, %s4897_s2, %s4898_s7  }
 0x116   :  { %s4410_s8 = scalar_lea.hbm %s5076_s21, 512 }
 0x117   :  { %p4411_p6 = scmp.ne.s32.totalorder %s5076_s21, %s4410_s8  ;;  %p4414_p7 = scmp.lt.u32.totalorder %s4410_s8, %s5076_s21 }
 0x119   :  { %p4416_p8 = pnand %p4414_p7, %p4411_p6 }
 0x11b   :  { %4419 = shalt.err (!%p4416_p8)
}
 0x11c   :  { %s4420_s6 = scalar_lea.vmem %s5211_s23, 512  ;;  %p4425_p10 = scmp.lt.s32.totalorder %s5211_s23, %s5211_s23 }
 0x11d   :  { %p4421_p9 = scmp.ne.s32.totalorder %s5211_s23, %s4420_s6  ;;  %p4426_p11 = scmp.lt.s32.totalorder %s4420_s6, %s4420_s6 }
 0x11f   :  { %p4427_p12 = por %p4426_p11, %p4425_p10 }
 0x121   :  { %p4428_p13 = pnand %p4427_p12, %p4421_p9 }
 0x123   :  { %4431 = shalt.err (!%p4428_p13)
}
 0x124   :  { %s5661_s29 = sld [smem:[#allocation70_spill]]  ;;  %s4911_s28 = smov [#allocation2]  }
 0x125   :  { %404 = dma.hbm_to_vmem [thread:$0]  %s5076_s21, 512, %s5211_s23, [#allocation45], %s4897_s2, %s4897_s2, %s4898_s7  }
 0x126   :  { %s92_s25 = sshll.u32 %s4911_s28, 4  ;;  %s4912_s1 = smov [#allocation7]   ;;  %s93_s25 = int_to_ptr.vmem [resolvable:$true] %s92_s25 }
 0x127   :  { %s116_s10 = sshll.u32 %s4912_s1, 4  ;;  %s5232_s10 = int_to_ptr.vmem [resolvable:$true] %s116_s10 }
 0x12a   :  { %s4432_s11 = scalar_lea.hbm %s5661_s29, 512 }
 0x12b   :  { %p4433_p0 = scmp.ne.s32.totalorder %s5661_s29, %s4432_s11  ;;  %p4436_p1 = scmp.lt.u32.totalorder %s4432_s11, %s5661_s29 }
 0x12d   :  { %p4438_p2 = pnand %p4436_p1, %p4433_p0 }
 0x12f   :  { %4441 = shalt.err (!%p4438_p2)
}
 0x130   :  { %s4442_s20 = scalar_lea.vmem %s93_s25, 512  ;;  %p4447_p4 = scmp.lt.s32.totalorder %s93_s25, %s93_s25 }
 0x131   :  { %p4443_p3 = scmp.ne.s32.totalorder %s93_s25, %s4442_s20  ;;  %p4448_p5 = scmp.lt.s32.totalorder %s4442_s20, %s4442_s20 }
 0x133   :  { %p4449_p6 = por %p4448_p5, %p4447_p4 }
 0x135   :  { %p4450_p7 = pnand %p4449_p6, %p4443_p3 }
 0x137   :  { %4453 = shalt.err (!%p4450_p7)
}
 0x138   :  { %s5662_s21 = sld [smem:[#allocation71_spill]] }
 0x139   :  { %98 = dma.hbm_to_vmem [thread:$0]  %s5661_s29, 512, %s93_s25, [#allocation3], %s4897_s2, %s4897_s2, %s4898_s7  }
 0x13e   :  { %s4454_s9 = scalar_lea.hbm %s5662_s21, 1920 }
 0x13f   :  { %p4455_p8 = scmp.ne.s32.totalorder %s5662_s21, %s4454_s9  ;;  %p4458_p9 = scmp.lt.u32.totalorder %s4454_s9, %s5662_s21 }
 0x141   :  { %p4460_p10 = pnand %p4458_p9, %p4455_p8 }
 0x143   :  { %4463 = shalt.err (!%p4460_p10)
}
 0x144   :  { %s4464_s4 = scalar_lea.vmem %s5232_s10, 1920  ;;  %p4469_p12 = scmp.lt.s32.totalorder %s5232_s10, %s5232_s10 }
 0x145   :  { %p4465_p11 = scmp.ne.s32.totalorder %s5232_s10, %s4464_s4  ;;  %p4470_p13 = scmp.lt.s32.totalorder %s4464_s4, %s4464_s4 }
 0x147   :  { %p4471_p0 = por %p4470_p13, %p4469_p12 }
 0x149   :  { %p4472_p1 = pnand %p4471_p0, %p4465_p11 }
 0x14b   :  { %4475 = shalt.err (!%p4472_p1)
}
 0x14c   :  { %s5663_s15 = sld [smem:[#allocation72_spill]]  ;;  %s4913_s3 = smov [#allocation10]  }
 0x14d   :  { %122 = dma.hbm_to_vmem [thread:$0]  %s5662_s21, 1920, %s5232_s10, [#allocation6], %s4897_s2, %s4897_s2, %s4898_s7  }
 0x14e   :  { %s140_s16 = sshll.u32 %s4913_s3, 4  ;;  %s4914_s14 = smov [#allocation13]   ;;  %s141_s16 = int_to_ptr.vmem [resolvable:$true] %s140_s16 }
 0x14f   :  { %s164_s18 = sshll.u32 %s4914_s14, 4  ;;  %s5253_s18 = int_to_ptr.vmem [resolvable:$true] %s164_s18 }
 0x152   :  { %s4476_s30 = scalar_lea.hbm %s5663_s15, 1920 }
 0x153   :  { %p4477_p2 = scmp.ne.s32.totalorder %s5663_s15, %s4476_s30  ;;  %p4480_p3 = scmp.lt.u32.totalorder %s4476_s30, %s5663_s15 }
 0x155   :  { %p4482_p4 = pnand %p4480_p3, %p4477_p2 }
 0x157   :  { %4485 = shalt.err (!%p4482_p4)
}
 0x158   :  { %s4486_s0 = scalar_lea.vmem %s141_s16, 1920  ;;  %p4491_p6 = scmp.lt.s32.totalorder %s141_s16, %s141_s16 }
 0x159   :  { %p4487_p5 = scmp.ne.s32.totalorder %s141_s16, %s4486_s0  ;;  %p4492_p7 = scmp.lt.s32.totalorder %s4486_s0, %s4486_s0 }
 0x15b   :  { %p4493_p8 = por %p4492_p7, %p4491_p6 }
 0x15d   :  { %p4494_p9 = pnand %p4493_p8, %p4487_p5 }
 0x15f   :  { %4497 = shalt.err (!%p4494_p9)
}
 0x160   :  { %s5664_s19 = sld [smem:[#allocation73_spill]] }
 0x161   :  { %146 = dma.hbm_to_vmem [thread:$0]  %s5663_s15, 1920, %s141_s16, [#allocation9], %s4897_s2, %s4897_s2, %s4898_s7  }
 0x166   :  { %s4498_s22 = scalar_lea.hbm %s5664_s19, 512 }
 0x167   :  { %p4499_p10 = scmp.ne.s32.totalorder %s5664_s19, %s4498_s22  ;;  %p4502_p11 = scmp.lt.u32.totalorder %s4498_s22, %s5664_s19 }
 0x169   :  { %p4504_p12 = pnand %p4502_p11, %p4499_p10 }
 0x16b   :  { %4507 = shalt.err (!%p4504_p12)
}
 0x16c   :  { %s4508_s17 = scalar_lea.vmem %s5253_s18, 512  ;;  %p4513_p0 = scmp.lt.s32.totalorder %s5253_s18, %s5253_s18 }
 0x16d   :  { %p4509_p13 = scmp.ne.s32.totalorder %s5253_s18, %s4508_s17  ;;  %p4514_p1 = scmp.lt.s32.totalorder %s4508_s17, %s4508_s17 }
 0x16f   :  { %p4515_p2 = por %p4514_p1, %p4513_p0 }
 0x171   :  { %p4516_p3 = pnand %p4515_p2, %p4509_p13 }
 0x173   :  { %4519 = shalt.err (!%p4516_p3)
}
 0x174   :  { %s5665_s23 = sld [smem:[#allocation74_spill]]  ;;  %s4915_s24 = smov [#allocation16]  }
 0x175   :  { %170 = dma.hbm_to_vmem [thread:$0]  %s5664_s19, 512, %s5253_s18, [#allocation12], %s4897_s2, %s4897_s2, %s4898_s7  }
 0x176   :  { %s186_s26 = sshll.u32 %s4915_s24, 4  ;;  %s4916_s8 = smov [#allocation19]   ;;  %s187_s26 = int_to_ptr.vmem [resolvable:$true] %s186_s26 }
 0x177   :  { %s209_s6 = sshll.u32 %s4916_s8, 4  ;;  %s210_s6 = int_to_ptr.vmem [resolvable:$true] %s209_s6 }
 0x17a   :  { %s4520_s29 = scalar_lea.hbm %s5665_s23, 512 }
 0x17b   :  { %p4521_p4 = scmp.ne.s32.totalorder %s5665_s23, %s4520_s29  ;;  %p4524_p5 = scmp.lt.u32.totalorder %s4520_s29, %s5665_s23 }
 0x17d   :  { %p4526_p6 = pnand %p4524_p5, %p4521_p4 }
 0x17f   :  { %4529 = shalt.err (!%p4526_p6)
}
 0x180   :  { %s4530_s28 = scalar_lea.vmem %s187_s26, 512  ;;  %p4535_p8 = scmp.lt.s32.totalorder %s187_s26, %s187_s26 }
 0x181   :  { %p4531_p7 = scmp.ne.s32.totalorder %s187_s26, %s4530_s28  ;;  %p4536_p9 = scmp.lt.s32.totalorder %s4530_s28, %s4530_s28 }
 0x183   :  { %p4537_p10 = por %p4536_p9, %p4535_p8 }
 0x185   :  { %p4538_p11 = pnand %p4537_p10, %p4531_p7 }
 0x187   :  { %4541 = shalt.err (!%p4538_p11)
}
 0x188   :  { %s5666_s25 = sld [smem:[#allocation75_spill]] }
 0x189   :  { %192 = dma.hbm_to_vmem [thread:$0]  %s5665_s23, 512, %s187_s26, [#allocation15], %s4897_s2, %s4897_s2, %s4898_s7  }
 0x18e   :  { %s4542_s1 = scalar_lea.hbm %s5666_s25, 64 }
 0x18f   :  { %p4543_p12 = scmp.ne.s32.totalorder %s5666_s25, %s4542_s1  ;;  %p4546_p13 = scmp.lt.u32.totalorder %s4542_s1, %s5666_s25 }
 0x191   :  { %p4548_p0 = pnand %p4546_p13, %p4543_p12 }
 0x193   :  { %4551 = shalt.err (!%p4548_p0)
}
 0x194   :  { %s4552_s10 = scalar_lea.vmem %s210_s6, 64  ;;  %p4557_p2 = scmp.lt.s32.totalorder %s210_s6, %s210_s6 }
 0x195   :  { %p4553_p1 = scmp.ne.s32.totalorder %s210_s6, %s4552_s10  ;;  %p4558_p3 = scmp.lt.s32.totalorder %s4552_s10, %s4552_s10 }
 0x197   :  { %p4559_p4 = por %p4558_p3, %p4557_p2 }
 0x199   :  { %p4560_p5 = pnand %p4559_p4, %p4553_p1 }
 0x19b   :  { %4563 = shalt.err (!%p4560_p5)
}
 0x19c   :  { %s5667_s11 = sld [smem:[#allocation76_spill]]  ;;  %s4917_s20 = smov [#allocation22]  }
 0x19d   :  { %212 = dma.hbm_to_vmem [thread:$0]  %s5666_s25, 64, %s210_s6, [#allocation18]  }
 0x19e   :  { %s230_s21 = sshll.u32 %s4917_s20, 4  ;;  %s4918_s9 = smov [#allocation25]   ;;  %s231_s21 = int_to_ptr.vmem [resolvable:$true] %s230_s21 }
 0x19f   :  { %s254_s4 = sshll.u32 %s4918_s9, 4  ;;  %s5285_s4 = int_to_ptr.vmem [resolvable:$true] %s254_s4 }
 0x1a2   :  { %s4564_s15 = scalar_lea.hbm %s5667_s11, 256 }
 0x1a3   :  { %p4565_p6 = scmp.ne.s32.totalorder %s5667_s11, %s4564_s15  ;;  %p4568_p7 = scmp.lt.u32.totalorder %s4564_s15, %s5667_s11 }
 0x1a5   :  { %p4570_p8 = pnand %p4568_p7, %p4565_p6 }
 0x1a7   :  { %4573 = shalt.err (!%p4570_p8)
}
 0x1a8   :  { %s4574_s3 = scalar_lea.vmem %s231_s21, 256  ;;  %p4579_p10 = scmp.lt.s32.totalorder %s231_s21, %s231_s21 }
 0x1a9   :  { %p4575_p9 = scmp.ne.s32.totalorder %s231_s21, %s4574_s3  ;;  %p4580_p11 = scmp.lt.s32.totalorder %s4574_s3, %s4574_s3 }
 0x1ab   :  { %p4581_p12 = por %p4580_p11, %p4579_p10 }
 0x1ad   :  { %p4582_p13 = pnand %p4581_p12, %p4575_p9 }
 0x1af   :  { %4585 = shalt.err (!%p4582_p13)
}
 0x1b0   :  { %s5668_s16 = sld [smem:[#allocation77_spill]] }
 0x1b1   :  { %236 = dma.hbm_to_vmem [thread:$0]  %s5667_s11, 256, %s231_s21, [#allocation21], %s4897_s2, %s4897_s2, %s4898_s7  }
 0x1b6   :  { %s4586_s14 = scalar_lea.hbm %s5668_s16, 256 }
 0x1b7   :  { %p4587_p0 = scmp.ne.s32.totalorder %s5668_s16, %s4586_s14  ;;  %p4590_p1 = scmp.lt.u32.totalorder %s4586_s14, %s5668_s16 }
 0x1b9   :  { %p4592_p2 = pnand %p4590_p1, %p4587_p0 }
 0x1bb   :  { %4595 = shalt.err (!%p4592_p2)
}
 0x1bc   :  { %s4596_s18 = scalar_lea.vmem %s5285_s4, 256  ;;  %p4601_p4 = scmp.lt.s32.totalorder %s5285_s4, %s5285_s4 }
 0x1bd   :  { %p4597_p3 = scmp.ne.s32.totalorder %s5285_s4, %s4596_s18  ;;  %p4602_p5 = scmp.lt.s32.totalorder %s4596_s18, %s4596_s18 }
 0x1bf   :  { %p4603_p6 = por %p4602_p5, %p4601_p4 }
 0x1c1   :  { %p4604_p7 = pnand %p4603_p6, %p4597_p3 }
 0x1c3   :  { %4607 = shalt.err (!%p4604_p7)
}
 0x1c4   :  { %s5669_s30 = sld [smem:[#allocation78_spill]]  ;;  %s4919_s0 = smov [#allocation28]  }
 0x1c5   :  { %260 = dma.hbm_to_vmem [thread:$0]  %s5668_s16, 256, %s5285_s4, [#allocation24], %s4897_s2, %s4897_s2, %s4898_s7  }
 0x1c6   :  { %s279_s19 = sshll.u32 %s4919_s0, 4  ;;  %s4920_s22 = smov [#allocation31]   ;;  %s280_s19 = int_to_ptr.vmem [resolvable:$true] %s279_s19 }
 0x1c7   :  { %s301_s17 = sshll.u32 %s4920_s22, 4  ;;  %s302_s17 = int_to_ptr.vmem [resolvable:$true] %s301_s17 }
 0x1ca   :  { %s4608_s23 = scalar_lea.hbm %s5669_s30, 16 }
 0x1cb   :  { %p4609_p8 = scmp.ne.s32.totalorder %s5669_s30, %s4608_s23  ;;  %p4612_p9 = scmp.lt.u32.totalorder %s4608_s23, %s5669_s30 }
 0x1cd   :  { %p4614_p10 = pnand %p4612_p9, %p4609_p8 }
 0x1cf   :  { %4617 = shalt.err (!%p4614_p10)
}
 0x1d0   :  { %s4618_s24 = scalar_lea.vmem %s280_s19, 16  ;;  %s4622_s26 = scalar_lea.vmem %s280_s19, 32 }
 0x1d1   :  { %p4619_p11 = scmp.ne.s32.totalorder %s280_s19, %s4618_s24  ;;  %p4623_p12 = scmp.lt.s32.totalorder %s280_s19, %s280_s19 }
 0x1d2   :  { %p4624_p13 = scmp.lt.s32.totalorder %s4622_s26, %s4618_s24 }
 0x1d4   :  { %p4625_p0 = por %p4624_p13, %p4623_p12 }
 0x1d6   :  { %p4626_p1 = pnand %p4625_p0, %p4619_p11 }
 0x1d8   :  { %4629 = shalt.err (!%p4626_p1)
}
 0x1d9   :  { %s5670_s8 = sld [smem:[#allocation79_spill]] }
 0x1da   :  { %282 = dma.hbm_to_vmem [thread:$0]  %s5669_s30, 16, %s280_s19, [#allocation27]  }
 0x1df   :  { %s4630_s6 = scalar_lea.hbm %s5670_s8, 16 }
 0x1e0   :  { %p4631_p2 = scmp.ne.s32.totalorder %s5670_s8, %s4630_s6  ;;  %p4634_p3 = scmp.lt.u32.totalorder %s4630_s6, %s5670_s8 }
 0x1e2   :  { %p4636_p4 = pnand %p4634_p3, %p4631_p2 }
 0x1e4   :  { %4639 = shalt.err (!%p4636_p4)
}
 0x1e5   :  { %s4640_s29 = scalar_lea.vmem %s302_s17, 16  ;;  %s4644_s28 = scalar_lea.vmem %s302_s17, 32 }
 0x1e6   :  { %p4641_p5 = scmp.ne.s32.totalorder %s302_s17, %s4640_s29  ;;  %p4645_p6 = scmp.lt.s32.totalorder %s302_s17, %s302_s17 }
 0x1e7   :  { %p4646_p7 = scmp.lt.s32.totalorder %s4644_s28, %s4640_s29 }
 0x1e9   :  { %p4647_p8 = por %p4646_p7, %p4645_p6 }
 0x1eb   :  { %p4648_p9 = pnand %p4647_p8, %p4641_p5 }
 0x1ed   :  { %4651 = shalt.err (!%p4648_p9)
}
 0x1ee   :  { %s5671_s25 = sld [smem:[#allocation80_spill]]  ;;  %s4921_s1 = smov [#allocation34]  }
 0x1ef   :  { %304 = dma.hbm_to_vmem [thread:$0]  %s5670_s8, 16, %s302_s17, [#allocation30]  }
 0x1f0   :  { %s323_s10 = sshll.u32 %s4921_s1, 4  ;;  %s4922_s11 = smov [#allocation37]   ;;  %s324_s10 = int_to_ptr.vmem [resolvable:$true] %s323_s10 }
 0x1f1   :  { %s345_s20 = sshll.u32 %s4922_s11, 4  ;;  %s346_s20 = int_to_ptr.vmem [resolvable:$true] %s345_s20 }
 0x1f4   :  { %s4652_s21 = scalar_lea.hbm %s5671_s25, 16 }
 0x1f5   :  { %p4653_p10 = scmp.ne.s32.totalorder %s5671_s25, %s4652_s21  ;;  %p4656_p11 = scmp.lt.u32.totalorder %s4652_s21, %s5671_s25 }
 0x1f7   :  { %p4658_p12 = pnand %p4656_p11, %p4653_p10 }
 0x1f9   :  { %4661 = shalt.err (!%p4658_p12)
}
 0x1fa   :  { %s4662_s9 = scalar_lea.vmem %s324_s10, 16  ;;  %s4666_s4 = scalar_lea.vmem %s324_s10, 32 }
 0x1fb   :  { %p4663_p13 = scmp.ne.s32.totalorder %s324_s10, %s4662_s9  ;;  %p4667_p0 = scmp.lt.s32.totalorder %s324_s10, %s324_s10 }
 0x1fc   :  { %p4668_p1 = scmp.lt.s32.totalorder %s4666_s4, %s4662_s9 }
 0x1fe   :  { %p4669_p2 = por %p4668_p1, %p4667_p0 }
 0x200   :  { %p4670_p3 = pnand %p4669_p2, %p4663_p13 }
 0x202   :  { %4673 = shalt.err (!%p4670_p3)
}
 0x203   :  { %s5672_s15 = sld [smem:[#allocation81_spill]] }
 0x204   :  { %326 = dma.hbm_to_vmem [thread:$0]  %s5671_s25, 16, %s324_s10, [#allocation33]  }
 0x209   :  { %s4674_s3 = scalar_lea.hbm %s5672_s15, 16 }
 0x20a   :  { %p4675_p4 = scmp.ne.s32.totalorder %s5672_s15, %s4674_s3  ;;  %p4678_p5 = scmp.lt.u32.totalorder %s4674_s3, %s5672_s15 }
 0x20c   :  { %p4680_p6 = pnand %p4678_p5, %p4675_p4 }
 0x20e   :  { %4683 = shalt.err (!%p4680_p6)
}
 0x20f   :  { %s4684_s16 = scalar_lea.vmem %s346_s20, 16  ;;  %s4688_s14 = scalar_lea.vmem %s346_s20, 32 }
 0x210   :  { %p4685_p7 = scmp.ne.s32.totalorder %s346_s20, %s4684_s16  ;;  %p4689_p8 = scmp.lt.s32.totalorder %s346_s20, %s346_s20 }
 0x211   :  { %p4690_p9 = scmp.lt.s32.totalorder %s4688_s14, %s4684_s16 }
 0x213   :  { %p4691_p10 = por %p4690_p9, %p4689_p8 }
 0x215   :  { %p4692_p11 = pnand %p4691_p10, %p4685_p7 }
 0x217   :  { %4695 = shalt.err (!%p4692_p11)
}
 0x218   :  { %s5673_s18 = sld [smem:[#allocation82_spill]]  ;;  %s4923_s30 = smov [#allocation40]  }
 0x219   :  { %348 = dma.hbm_to_vmem [thread:$0]  %s5672_s15, 16, %s346_s20, [#allocation36]  }
 0x21a   :  { %s367_s0 = sshll.u32 %s4923_s30, 4  ;;  %s4924_s19 = smov [#allocation43]   ;;  %s368_s0 = int_to_ptr.vmem [resolvable:$true] %s367_s0 }
 0x21b   :  { %s389_s22 = sshll.u32 %s4924_s19, 4  ;;  %s390_s22 = int_to_ptr.vmem [resolvable:$true] %s389_s22 }
 0x21e   :  { %s4696_s17 = scalar_lea.hbm %s5673_s18, 16 }
 0x21f   :  { %p4697_p12 = scmp.ne.s32.totalorder %s5673_s18, %s4696_s17  ;;  %p4700_p13 = scmp.lt.u32.totalorder %s4696_s17, %s5673_s18 }
 0x221   :  { %p4702_p0 = pnand %p4700_p13, %p4697_p12 }
 0x223   :  { %4705 = shalt.err (!%p4702_p0)
}
 0x224   :  { %s4706_s23 = scalar_lea.vmem %s368_s0, 16  ;;  %s4710_s24 = scalar_lea.vmem %s368_s0, 32 }
 0x225   :  { %p4707_p1 = scmp.ne.s32.totalorder %s368_s0, %s4706_s23  ;;  %p4711_p2 = scmp.lt.s32.totalorder %s368_s0, %s368_s0 }
 0x226   :  { %p4712_p3 = scmp.lt.s32.totalorder %s4710_s24, %s4706_s23 }
 0x228   :  { %p4713_p4 = por %p4712_p3, %p4711_p2 }
 0x22a   :  { %p4714_p5 = pnand %p4713_p4, %p4707_p1 }
 0x22c   :  { %4717 = shalt.err (!%p4714_p5)
}
 0x22d   :  { %s5674_s26 = sld [smem:[#allocation83_spill]] }
 0x22e   :  { %370 = dma.hbm_to_vmem [thread:$0]  %s5673_s18, 16, %s368_s0, [#allocation39]  }
 0x233   :  { %s4718_s8 = scalar_lea.hbm %s5674_s26, 16 }
 0x234   :  { %p4719_p6 = scmp.ne.s32.totalorder %s5674_s26, %s4718_s8  ;;  %p4722_p7 = scmp.lt.u32.totalorder %s4718_s8, %s5674_s26 }
 0x236   :  { %p4724_p8 = pnand %p4722_p7, %p4719_p6 }
 0x238   :  { %4727 = shalt.err (!%p4724_p8)
}
 0x239   :  { %s4728_s6 = scalar_lea.vmem %s390_s22, 16  ;;  %s4732_s29 = scalar_lea.vmem %s390_s22, 32 }
 0x23a   :  { %p4729_p9 = scmp.ne.s32.totalorder %s390_s22, %s4728_s6  ;;  %p4733_p10 = scmp.lt.s32.totalorder %s390_s22, %s390_s22 }
 0x23b   :  { %p4734_p11 = scmp.lt.s32.totalorder %s4732_s29, %s4728_s6 }
 0x23d   :  { %p4735_p12 = por %p4734_p11, %p4733_p10 }
 0x23f   :  { %p4736_p13 = pnand %p4735_p12, %p4729_p9 }
 0x241   :  { %4739 = shalt.err (!%p4736_p13)
}
 0x242   :  { %392 = dma.hbm_to_vmem [thread:$0]  %s5674_s26, 16, %s390_s22, [#allocation42]  }
 0x243   :  { %s4925_s28 = smov [#allocation46]   ;;  %s4926_s1 = smov [#allocation47]  }
 0x244   :  { %s411_s25 = sshll.u32 %s4925_s28, 4  ;;  %s421_s10 = sshll.u32 %s4926_s1, 4  ;;  %s412_s25 = int_to_ptr.vmem [resolvable:$true] %s411_s25  ;;  %s422_s10 = int_to_ptr.vmem [resolvable:$true] %s421_s10 }
 0x245   :  { %s4740_s11 = scalar_lea.hbm %s5081_s27, 16 }
 0x246   :  { %p4741_p0 = scmp.ne.s32.totalorder %s5081_s27, %s4740_s11  ;;  %p4744_p1 = scmp.lt.u32.totalorder %s4740_s11, %s5081_s27 }
 0x248   :  { %p4746_p2 = pnand %p4744_p1, %p4741_p0 }
 0x24a   :  { %4749 = shalt.err (!%p4746_p2)
}
 0x24b   :  { %s4750_s20 = scalar_lea.vmem %s412_s25, 16  ;;  %s4754_s21 = scalar_lea.vmem %s412_s25, 32 }
 0x24c   :  { %p4751_p3 = scmp.ne.s32.totalorder %s412_s25, %s4750_s20  ;;  %p4755_p4 = scmp.lt.s32.totalorder %s412_s25, %s412_s25 }
 0x24d   :  { %p4756_p5 = scmp.lt.s32.totalorder %s4754_s21, %s4750_s20 }
 0x24f   :  { %p4757_p6 = por %p4756_p5, %p4755_p4 }
 0x251   :  { %p4758_p7 = pnand %p4757_p6, %p4751_p3 }
 0x253   :  { %4761 = shalt.err (!%p4758_p7)
}
 0x254   :  { %414 = dma.hbm_to_vmem [thread:$0]  %s5081_s27, 16, %s412_s25, [#allocation45]  }
 0x255   :  { %s4762_s9 = scalar_lea.hbm %s5086_s13, 64 }
 0x256   :  { %p4763_p8 = scmp.ne.s32.totalorder %s5086_s13, %s4762_s9  ;;  %p4766_p9 = scmp.lt.u32.totalorder %s4762_s9, %s5086_s13 }
 0x258   :  { %p4768_p10 = pnand %p4766_p9, %p4763_p8 }
 0x25a   :  { %4771 = shalt.err (!%p4768_p10)
}
 0x25b   :  { %s4772_s4 = scalar_lea.vmem %s422_s10, 64  ;;  %p4777_p12 = scmp.lt.s32.totalorder %s422_s10, %s422_s10 }
 0x25c   :  { %p4773_p11 = scmp.ne.s32.totalorder %s422_s10, %s4772_s4  ;;  %p4778_p13 = scmp.lt.s32.totalorder %s4772_s4, %s4772_s4 }
 0x25e   :  { %p4779_p0 = por %p4778_p13, %p4777_p12 }
 0x260   :  { %p4780_p1 = pnand %p4779_p0, %p4773_p11 }
 0x262   :  { %4783 = shalt.err (!%p4780_p1)
}
 0x263   :  { %424 = dma.hbm_to_vmem [thread:$0]  %s5086_s13, 64, %s422_s10, [#allocation48]  }
 0x264   :  { %4828 = dma.done.wait [#allocation3], 512  }
 0x265   :  { %4829 = vsyncadd [#allocation3], 4294966784 }
 0x266   :  { %4830 = dma.done.wait [#allocation6], 2432  }
 0x267   :  { %4831 = vsyncadd [#allocation6], 4294964864 }
 0x268   :  { %4832 = dma.done.wait [#allocation9], 3840  }
 0x269   :  { %4833 = vsyncadd [#allocation9], 4294963456 }
 0x26a   :  { %4834 = dma.done.wait [#allocation12], 1024  }
 0x26b   :  { %4835 = vsyncadd [#allocation12], 4294966272 }
 0x26c   :  { %4836 = dma.done.wait [#allocation15], 528  }
 0x26d   :  { %4837 = vsyncadd [#allocation15], 4294966768 }
 0x26e   :  { %4838 = dma.done.wait [#allocation18], 80  }
 0x26f   :  { %4839 = vsyncadd [#allocation18], 4294967216 }
 0x270   :  { %4840 = dma.done.wait [#allocation21], 768  }
 0x271   :  { %4841 = vsyncadd [#allocation21], 4294966528 }
 0x272   :  { %4842 = dma.done.wait [#allocation24], 896  }
 0x273   :  { %4843 = vsyncadd [#allocation24], 4294966400 }
 0x274   :  { %4844 = dma.done.wait [#allocation27], 528  }
 0x275   :  { %4845 = vsyncadd [#allocation27], 4294966768 }
 0x276   :  { %4846 = dma.done.wait [#allocation30], 528  }
 0x277   :  { %4847 = vsyncadd [#allocation30], 4294966768 }
 0x278   :  { %4848 = dma.done.wait [#allocation33], 528  }
 0x279   :  { %4849 = vsyncadd [#allocation33], 4294966768 }
 0x27a   :  { %4850 = dma.done.wait [#allocation36], 528  }
 0x27b   :  { %4851 = vsyncadd [#allocation36], 4294966768 }
 0x27c   :  { %4852 = dma.done.wait [#allocation39], 528  }
 0x27d   :  { %4853 = vsyncadd [#allocation39], 4294966768 }
 0x27e   :  { %4854 = dma.done.wait [#allocation42], 528  }
 0x27f   :  { %4855 = vsyncadd [#allocation42], 4294966768 }
 0x280   :  { %4856 = dma.done.wait [#allocation45], 528  }
 0x281   :  { %4857 = vsyncadd [#allocation45], 4294966768 }
 0x282   :  { %4858 = dma.done.wait [#allocation48], 64  }
 0x283   :  { %4859 = vsyncadd [#allocation48], 4294967232  ;;  %v523_v0 = vld [vmem:[#allocation13] sm:$0xff]  ;;  %v524_v1 = vld [vmem:[#allocation13 + $0x8] sm:$0xff]  ;;  %vm534_vm0 = vcmask 261120   ;;  %vm798_vm1 = vcmask 1043456  }
 0x284   :  { %v660_v2 = vld [vmem:[#allocation16] sm:$0xff]  ;;  %v3742_v3 = vpack.c.bf16 %v524_v1, %v523_v0  ;;  %v661_v4 = vld [vmem:[#allocation16 + $0x8] sm:$0xff]  ;;  %v526_v6 = vld [vmem:[#allocation13 + $0x18] sm:$0xff]  ;;  %vm785_vm2 = vcmask 31744   ;;  %vm4928_vm3 = vmmov 1   ;;  %vm4929_vm5 = vmmov 0  }
 0x285   :  { %v525_v5 = vld [vmem:[#allocation13 + $0x10] sm:$0xff]  ;;  %v3750_v7 = vpack.c.bf16 %v661_v4, %v660_v2  ;;  %v663_v10 = vld [vmem:[#allocation16 + $0x18] sm:$0xff]  ;;  %v784_v13 = vld [vmem:[#allocation19] sm:$0xf]  ;;  %v4927_v4 = vmov 0.0|0.0   ;;  %vm1242_vm6 = vcmask 97280  }
 0x286   :  { %v3746_v8 = vpack.c.bf16 %v526_v6, %v525_v5  ;;  %v662_v9 = vld [vmem:[#allocation16 + $0x10] sm:$0xff]  ;;  %3743 = vmatprep.subr.bf16.mxu0 %v3742_v3  ;;  %v516_v14 = vld [vmem:[#allocation2 + $0x8] sm:$0xff]  ;;  %v517_v15 = vld [vmem:[#allocation2 + $0x10] sm:$0xff]  ;;  %vm1081_vm7 = vcmask 1045504   ;;  %vm1035_vm9 = vcmask 244736   ;;  %vm1466_vm10 = vcmask 293888  }
 0x287   :  { %v515_v11 = vld [vmem:[#allocation2] sm:$0xff]  ;;  %v3754_v12 = vpack.c.bf16 %v663_v10, %v662_v9  ;;  %3751 = vmatprep.subr.bf16.mxu1 %v3750_v7  ;;  %3745 = vmatpush3.bf16.msra.mxu0 %v3742_v3  ;;  %v518_v16 = vld [vmem:[#allocation2 + $0x18] sm:$0x3f]  ;;  %v520_v18 = vld [vmem:[#allocation5 + $0x8] sm:$0xff]  ;;  %vm1674_vm11 = vcmask 982016   ;;  %vm1774_vm12 = vcmask 130048  }
 0x288   :  { %3391 = vmatprep.mubr.msk.f32.mxu0 %vm534_vm0, %v515_v11  ;;  %3753 = vmatpush3.bf16.msra.mxu1 %v3750_v7  ;;  %v519_v17 = vld [vmem:[#allocation5] sm:$0xff]  ;;  %v521_v19 = vld [vmem:[#allocation5 + $0x10] sm:$0xff]  ;;  %v522_v20 = vld [vmem:[#allocation5 + $0x18] sm:$0x3f]  ;;  %s4931_s13 = smov [#allocation49]   ;;  %vm2875_vm13 = vcmask 259072  }
 0x289   :  { %3747 = vmatprep.subr.bf16.mxu0 %v3746_v8  ;;  %3755 = vmatprep.subr.bf16.mxu1 %v3754_v12  ;;  %v891_v21 = vld [vmem:[#allocation20] sm:$0xff]  ;;  %v892_v22 = vld [vmem:[#allocation20 + $0x8] sm:$0xff]  ;;  %v893_v24 = vld [vmem:[#allocation20 + $0x10] sm:$0xff]  ;;  %s2979_s27 = sshll.u32 %s4931_s13, 4  ;;  %s4932_s15 = smov [#allocation50]   ;;  %s2980_s27 = int_to_ptr.vmem [resolvable:$true] %s2979_s27 }
 0x28a   :  { %3405 = vmatprep.mubr.msk.f32.mxu1 %vm534_vm0, %v515_v11  ;;  %v3758_v23 = vpack.c.bf16 %v892_v22, %v891_v21  ;;  %v894_v25 = vld [vmem:[#allocation20 + $0x18] sm:$0xff]  ;;  %v1240_v5 = vld [vmem:[#allocation22] sm:$0xff]  ;;  %v1241_v6 = vld [vmem:[#allocation22 + $0x8] sm:$0xf]  ;;  %s2991_s3 = sshll.u32 %s4932_s15, 4  ;;  %s4784_s16 = scalar_lea.vmem %s2980_s27, 512  ;;  %s5610_s3 = int_to_ptr.vmem [resolvable:$true] %s2991_s3 }
 0x28b   :  { %3749 = vmatpush3.bf16.msra.mxu0 %v3746_v8  ;;  %v3762_v26 = vpack.c.bf16 %v894_v25, %v893_v24  ;;  %v3062_v27 = vld [vmem:[#allocation17] ss:$0 sm:$0xff]  ;;  %v3774_v7 = vpack.c.bf16 %v1241_v6, %v1240_v5  ;;  %vm3775_vm4 = vmpackc.low %vm798_vm1, %vm4928_vm3  ;;  %v4930_v8 = vmov 0.0   ;;  %v1225_v9 = vld [vmem:[#allocation7] sm:$0xff]  ;;  %p4785_p2 = scmp.ne.s32.totalorder %s2980_s27, %s4784_s16  ;;  %p4789_p3 = scmp.lt.s32.totalorder %s2980_s27, %s2980_s27 }
 0x28c   :  { %3757 = vmatpush3.bf16.msra.mxu1 %v3754_v12  ;;  %3411 = vmatprep.subr.msk.mxu0 %vm798_vm1, %v784_v13  ;;  %v1226_v10 = vld [vmem:[#allocation7 + $0x8] sm:$0xff]  ;;  %v1227_v11 = vld [vmem:[#allocation7 + $0x10] sm:$0xff]  ;;  %v1228_v12 = vld [vmem:[#allocation7 + $0x18] sm:$0xff]  ;;  %p4790_p4 = scmp.lt.s32.totalorder %s4784_s16, %s4784_s16 }
 0x28d   :  { %3759 = vmatprep.subr.bf16.mxu1 %v3758_v23  ;;  %v1237_v21 = vld [vmem:[#allocation7 + $0x60] sm:$0xff]  ;;  %v1238_v22 = vld [vmem:[#allocation7 + $0x68] sm:$0xff]  ;;  %vm3771_vm8 = vmpackc.low %vm1081_vm7, %vm4928_vm3 }
 0x28e   :  { %3392 = vmatmul.mubr.msk.f32.vlgmr.msra.gmra.mrb[0].mxu0 %vm534_vm0, %v516_v14  ;;  %v1028_v5 = vld [vmem:[#allocation10 + $0x40] sm:$0xff]  ;;  %v1029_v6 = vld [vmem:[#allocation10 + $0x48] sm:$0xff]  ;;  %p4791_p5 = por %p4790_p4, %p4789_p3 }
 0x28f   :  { %3406 = vmatmul.mubr.msk.f32.vlgmr.msra.gmra.mrb[0].mxu1 %vm534_vm0, %v516_v14  ;;  %3394 = vmatprep.mubr.msk.f32.mxu0 %vm534_vm0, %v517_v15  ;;  %v1230_v14 = vld [vmem:[#allocation7 + $0x28] sm:$0xff] }
 0x290   :  { %3408 = vmatprep.mubr.msk.f32.mxu1 %vm534_vm0, %v517_v15  ;;  %3412 = vmatpush3.msk.msra.mxu0 %vm798_vm1, %v784_v13  ;;  %v1229_v13 = vld [vmem:[#allocation7 + $0x20] sm:$0xff]  ;;  %v1231_v15 = vld [vmem:[#allocation7 + $0x30] sm:$0xff]  ;;  %p4792_p6 = pnand %p4791_p5, %p4785_p2 }
 0x291   :  { %3761 = vmatpush3.bf16.msra.mxu1 %v3758_v23  ;;  %3766 = vmatprep.subr.bf16.mxu0 %v4927_v4  ;;  %v1239_v23 = vld [vmem:[#allocation7 + $0x70] sm:$0xff] }
 0x292   :  { %3395 = vmatmul.mubr.msk.f32.gmra.mrb[2].mxu0 %vm534_vm0, %v518_v16  ;;  %3763 = vmatprep.subr.bf16.mxu1 %v3762_v26 }
 0x293   :  { %3409 = vmatmul.mubr.msk.f32.gmra.mrb[2].mxu1 %vm534_vm0, %v518_v16  ;;  %3413 = vmatprep.mubr.msk.f32.mxu0 %vm785_vm2, %v519_v17  ;;  %v1232_v16 = vld [vmem:[#allocation7 + $0x38] sm:$0xff]  ;;  %v1233_v17 = vld [vmem:[#allocation7 + $0x40] sm:$0xff] }
 0x295   :  { %3765 = vmatpush3.bf16.msra.mxu1 %v3762_v26 }
 0x296   :  { %3414 = vmatmul.mubr.msk.f32.vlgmr.msra.gmra.mrb[4].mxu0 %vm785_vm2, %v520_v18  ;;  %3773 = vmatprep.subr.bf16.mxu1 %v4927_v4  ;;  %v1234_v18 = vld [vmem:[#allocation7 + $0x48] sm:$0xff] }
 0x297   :  { %3416 = vmatprep.mubr.msk.f32.mxu0 %vm785_vm2, %v521_v19  ;;  %v1235_v19 = vld [vmem:[#allocation7 + $0x50] sm:$0xff] }
 0x29a   :  { %3417 = vmatmul.mubr.msk.f32.gmra.mrb[6].mxu0 %vm785_vm2, %v522_v20  ;;  %v1236_v20 = vld [vmem:[#allocation7 + $0x58] sm:$0xff] }
 0x29b   :  { %3441 = vmatprep.mubr.msk.f32.mxu0 %vm4929_vm5, %v4930_v8 }
 0x361   :  { %v5352_v28 = vpop.f32.mrb[0].mxu0 }
 0x362   :  { %v3407_v29 = vpop.f32.mrb[0].mxu1  ;;  %v5354_v30 = vpop.f32.mrb[1].mxu0 }
 0x363   :  { %v743_v31 = vadd.f32 %v3407_v29, %v3062_v27  ;;  %v737_v32 = vpop.f32.mrb[1].mxu1 }
 0x364   :  { %v738_v33 = vadd.f32 %v3062_v27, %v737_v32 }
 0x365   :  { %v3068_v34 = vmul.f32 -1.442695, %v743_v31  ;;  %v5356_v35 = vpop.f32.mrb[2].mxu0 }
 0x366   :  { %v3067_v36 = vmul.f32 -1.442695, %v738_v33  ;;  %v3410_v37 = vpop.f32.mrb[2].mxu1  ;;  %v5358_v38 = vpop.f32.mrb[3].mxu0 }
 0x367   :  { %3940 = vpow2.f32 %v3068_v34  ;;  %v753_v39 = vadd.f32 %v3410_v37, %v3062_v27  ;;  %v747_v40 = vpop.f32.mrb[3].mxu1 }
 0x368   :  { %v748_v41 = vadd.f32 %v3062_v27, %v747_v40  ;;  %3942 = vpow2.f32 %v3067_v36 }
 0x369   :  { %v3070_v42 = vmul.f32 -1.442695, %v753_v39  ;;  %v3415_v43 = vpop.f32.mrb[4].mxu0 }
 0x36a   :  { %v3069_v44 = vmul.f32 -1.442695, %v748_v41  ;;  %v868_v45 = vpop.f32.mrb[5].mxu0 }
 0x36b   :  { %3944 = vpow2.f32 %v3070_v42 }
 0x36c   :  { %3946 = vpow2.f32 %v3069_v44 }
 0x36d   :  { %v3418_v46 = vpop.f32.mrb[6].mxu0 }
 0x36e   :  { %v878_v47 = vpop.f32.mrb[7].mxu0 }
 0x371   :  { %v3941_v48 = vpop.eup %3940 }
 0x372   :  { %v769_v49 = vadd.f32 1.0, %v3941_v48  ;;  %v3943_v50 = vpop.eup %3942 }
 0x373   :  { %v768_v51 = vadd.f32 1.0, %v3943_v50 }
 0x374   :  { %3948 = vrcp.f32 %v769_v49 }
 0x375   :  { %v3945_v52 = vpop.eup %3944  ;;  %3950 = vrcp.f32 %v768_v51 }
 0x376   :  { %v771_v53 = vadd.f32 1.0, %v3945_v52  ;;  %v3947_v54 = vpop.eup %3946 }
 0x377   :  { %v770_v55 = vadd.f32 1.0, %v3947_v54  ;;  %v1462_v54 = vld [vmem:[#allocation23 + $0x8] sm:$0xff] }
 0x378   :  { %3952 = vrcp.f32 %v771_v53  ;;  %v1461_v53 = vld [vmem:[#allocation23] sm:$0xff] }
 0x379   :  { %3954 = vrcp.f32 %v770_v55 }
 0x37e   :  { %v3949_v56 = vpop.eup %3948 }
 0x37f   :  { %v781_v57 = vmul.f32 %v3949_v56, %v743_v31  ;;  %v3951_v58 = vpop.eup %3950  ;;  %v1020_v56 = vld [vmem:[#allocation10] sm:$0xff] }
 0x380   :  { %v780_v60 = vmul.f32 %v3951_v58, %v738_v33  ;;  %v1463_v58 = vld [vmem:[#allocation23 + $0x10] sm:$0xff] }
 0x381   :  { %v888_v59 = vmul.f32 %v3415_v43, %v781_v57  ;;  %v3778_v57 = vpack.c.bf16 %v1462_v54, %v1461_v53 }
 0x382   :  { %v3953_v61 = vpop.eup %3952  ;;  %v887_v62 = vmul.f32 %v868_v45, %v780_v60  ;;  %v1021_v60 = vld [vmem:[#allocation10 + $0x8] sm:$0xff] }
 0x383   :  { %v783_v63 = vmul.f32 %v3953_v61, %v753_v39  ;;  %v3955_v0 = vpop.eup %3954 }
 0x384   :  { %v782_v2 = vmul.f32 %v3955_v0, %v748_v41  ;;  %3427 = vmatprep.mubr.msk.f32.mxu1 %vm534_vm0, %v887_v62  ;;  %v1022_v62 = vld [vmem:[#allocation10 + $0x10] sm:$0xff]  ;;  %v1023_v0 = vld [vmem:[#allocation10 + $0x18] sm:$0xff] }
 0x385   :  { %v890_v1 = vmul.f32 %v3418_v46, %v783_v63  ;;  %3428 = vmatmul.mubr.msk.f32.vlgmr.msra.gmra.mrb[4].mxu1 %vm534_vm0, %v888_v59  ;;  %v1464_v59 = vld [vmem:[#allocation23 + $0x18] sm:$0xff]  ;;  %v1465_v63 = vld [vmem:[#allocation23 + $0x20] sm:$0xf] }
 0x386   :  { %v889_v3 = vmul.f32 %v878_v47, %v782_v2  ;;  %3776 = vmatpush3.bf16.msk.msra.mxu1 %vm3775_vm4, %v3774_v7  ;;  %v3781_v61 = vpack.c.bf16 %v1464_v59, %v1463_v58  ;;  %v1025_v2 = vld [vmem:[#allocation10 + $0x28] sm:$0xff]  ;;  %v1030_v7 = vld [vmem:[#allocation10 + $0x50] sm:$0xff] }
 0x388   :  { %3430 = vmatprep.mubr.msk.f32.mxu1 %vm534_vm0, %v889_v3  ;;  %v1026_v3 = vld [vmem:[#allocation10 + $0x30] sm:$0xff] }
 0x389   :  { %3431 = vmatmul.mubr.msk.f32.gmra.mrb[6].mxu1 %vm534_vm0, %v890_v1  ;;  %v1024_v1 = vld [vmem:[#allocation10 + $0x20] sm:$0xff] }
 0x38a   :  { %3490 = vmatprep.mubr.msk.f32.mxu1 %vm4929_vm5, %v4930_v8 }
 0x38d   :  { %3491 = vmatmul.mubr.msk.f32.vlgmr.msra.gmra.mrb[8].mxu1 %vm1242_vm6, %v1225_v9  ;;  %v1031_v9 = vld [vmem:[#allocation10 + $0x58] sm:$0xff] }
 0x38e   :  { %3493 = vmatprep.mubr.msk.f32.mxu1 %vm4929_vm5, %v4930_v8 }
 0x391   :  { %3494 = vmatmul.mubr.msk.f32.gmra.mrb[10].mxu1 %vm1242_vm6, %v1226_v10  ;;  %v1032_v10 = vld [vmem:[#allocation10 + $0x60] sm:$0xff] }
 0x392   :  { %3496 = vmatprep.mubr.msk.f32.mxu1 %vm4929_vm5, %v4930_v8 }
 0x395   :  { %3497 = vmatmul.mubr.msk.f32.gmra.mrb[12].mxu1 %vm1242_vm6, %v1227_v11  ;;  %v1033_v11 = vld [vmem:[#allocation10 + $0x68] sm:$0xff] }
 0x396   :  { %3499 = vmatprep.mubr.msk.f32.mxu1 %vm4929_vm5, %v4930_v8 }
 0x399   :  { %3500 = vmatmul.mubr.msk.f32.gmra.mrb[14].mxu1 %vm1242_vm6, %v1228_v12  ;;  %v1034_v12 = vld [vmem:[#allocation10 + $0x70] sm:$0xff] }
 0x39a   :  { %3502 = vmatprep.mubr.msk.f32.mxu1 %vm4929_vm5, %v4930_v8 }
 0x39d   :  { %3503 = vmatmul.mubr.msk.f32.gmra.mrb[16].mxu1 %vm1242_vm6, %v1229_v13  ;;  %v1446_v13 = vld [vmem:[#allocation8] sm:$0xff] }
 0x39e   :  { %3505 = vmatprep.mubr.msk.f32.mxu1 %vm4929_vm5, %v4930_v8 }
 0x3a1   :  { %3506 = vmatmul.mubr.msk.f32.gmra.mrb[18].mxu1 %vm1242_vm6, %v1230_v14  ;;  %v1447_v14 = vld [vmem:[#allocation8 + $0x8] sm:$0xff] }
 0x3a2   :  { %3508 = vmatprep.mubr.msk.f32.mxu1 %vm4929_vm5, %v4930_v8 }
 0x3a5   :  { %3509 = vmatmul.mubr.msk.f32.gmra.mrb[20].mxu1 %vm1242_vm6, %v1231_v15  ;;  %v1448_v15 = vld [vmem:[#allocation8 + $0x10] sm:$0xff] }
 0x3a6   :  { %3511 = vmatprep.mubr.msk.f32.mxu1 %vm4929_vm5, %v4930_v8 }
 0x3a9   :  { %3512 = vmatmul.mubr.msk.f32.gmra.mrb[22].mxu1 %vm1242_vm6, %v1232_v16  ;;  %v1449_v16 = vld [vmem:[#allocation8 + $0x18] sm:$0xff] }
 0x3aa   :  { %3514 = vmatprep.mubr.msk.f32.mxu1 %vm4929_vm5, %v4930_v8 }
 0x3ad   :  { %3515 = vmatmul.mubr.msk.f32.gmra.mrb[24].mxu1 %vm1242_vm6, %v1233_v17  ;;  %v1450_v17 = vld [vmem:[#allocation8 + $0x20] sm:$0xff] }
 0x3ae   :  { %3517 = vmatprep.mubr.msk.f32.mxu1 %vm4929_vm5, %v4930_v8 }
 0x3b1   :  { %3518 = vmatmul.mubr.msk.f32.gmra.mrb[26].mxu1 %vm1242_vm6, %v1234_v18  ;;  %v1451_v18 = vld [vmem:[#allocation8 + $0x28] sm:$0xff] }
 0x3b2   :  { %3520 = vmatprep.mubr.msk.f32.mxu1 %vm4929_vm5, %v4930_v8 }
 0x3b5   :  { %3521 = vmatmul.mubr.msk.f32.gmra.mrb[28].mxu1 %vm1242_vm6, %v1235_v19  ;;  %v1452_v19 = vld [vmem:[#allocation8 + $0x30] sm:$0xff] }
 0x3b6   :  { %3523 = vmatprep.mubr.msk.f32.mxu1 %vm4929_vm5, %v4930_v8 }
 0x3b9   :  { %3524 = vmatmul.mubr.msk.f32.gmra.mrb[30].mxu1 %vm1242_vm6, %v1236_v20 }
 0x3ba   :  { %3526 = vmatprep.mubr.msk.f32.mxu1 %vm4929_vm5, %v4930_v8 }
 0x3bd   :  { %3527 = vmatmul.mubr.msk.f32.gmra.mrb[32].mxu1 %vm1242_vm6, %v1237_v21  ;;  %v1453_v21 = vld [vmem:[#allocation8 + $0x38] sm:$0xff] }
 0x3be   :  { %3529 = vmatprep.mubr.msk.f32.mxu1 %vm4929_vm5, %v4930_v8 }
 0x3c1   :  { %3530 = vmatmul.mubr.msk.f32.gmra.mrb[34].mxu1 %vm1242_vm6, %v1238_v22 }
 0x3c2   :  { %3532 = vmatprep.mubr.msk.f32.mxu1 %vm4929_vm5, %v4930_v8 }
 0x3c5   :  { %3533 = vmatmul.mubr.msk.f32.gmra.mrb[36].mxu1 %vm1242_vm6, %v1239_v23 }
 0x458   :  { %v3429_v24 = vpop.f32.mrb[4].mxu1 }
 0x459   :  { %v3081_v25 = vmul.f32 -1.442695, %v3429_v24  ;;  %v973_v26 = vpop.f32.mrb[5].mxu1 }
 0x45a   :  { %v3080_v27 = vmul.f32 -1.442695, %v973_v26 }
 0x45b   :  { %3956 = vpow2.f32 %v3081_v25 }
 0x45c   :  { %3958 = vpow2.f32 %v3080_v27  ;;  %v3432_v29 = vpop.f32.mrb[6].mxu1  ;;  %v1455_v27 = vld [vmem:[#allocation8 + $0x48] sm:$0xff] }
 0x45d   :  { %v3083_v31 = vmul.f32 -1.442695, %v3432_v29  ;;  %v983_v32 = vpop.f32.mrb[7].mxu1 }
 0x45e   :  { %v3082_v33 = vmul.f32 -1.442695, %v983_v32 }
 0x45f   :  { %3960 = vpow2.f32 %v3083_v31 }
 0x460   :  { %3962 = vpow2.f32 %v3082_v33  ;;  %v1357_v20 = vpop.f32.mrb[8].mxu1 }
 0x461   :  { %v3492_v22 = vpop.f32.mrb[9].mxu1 }
 0x464   :  { %v1362_v23 = vpop.f32.mrb[10].mxu1 }
 0x465   :  { %v3957_v34 = vpop.eup %3956  ;;  %v3495_v25 = vpop.f32.mrb[11].mxu1 }
 0x466   :  { %v3959_v36 = vpop.eup %3958  ;;  %v1005_v37 = vadd.f32 1.0, %v3957_v34 }
 0x467   :  { %v1004_v39 = vadd.f32 1.0, %v3959_v36  ;;  %v1457_v36 = vld [vmem:[#allocation8 + $0x58] sm:$0xff] }
 0x468   :  { %3964 = vrcp.f32 %v1005_v37 }
 0x469   :  { %v3961_v40 = vpop.eup %3960  ;;  %3966 = vrcp.f32 %v1004_v39 }
 0x46a   :  { %v3963_v41 = vpop.eup %3962  ;;  %v1007_v42 = vadd.f32 1.0, %v3961_v40  ;;  %v1458_v40 = vld [vmem:[#allocation8 + $0x60] sm:$0xff] }
 0x46b   :  { %v1006_v43 = vadd.f32 1.0, %v3963_v41 }
 0x46c   :  { %3968 = vrcp.f32 %v1007_v42 }
 0x46d   :  { %3970 = vrcp.f32 %v1006_v43  ;;  %v1459_v43 = vld [vmem:[#allocation8 + $0x68] sm:$0xff] }
 0x472   :  { %v3965_v44 = vpop.eup %3964 }
 0x473   :  { %v3967_v45 = vpop.eup %3966  ;;  %v1017_v46 = vmul.f32 %v3965_v44, %v3429_v24  ;;  %v1454_v24 = vld [vmem:[#allocation8 + $0x40] sm:$0xff] }
 0x474   :  { %v1016_v47 = vmul.f32 %v3967_v45, %v973_v26  ;;  %v1367_v26 = vpop.f32.mrb[12].mxu1 }
 0x476   :  { %v3969_v48 = vpop.eup %3968  ;;  %v3767_v49 = vpack.c.bf16 %v1017_v46, %v1016_v47  ;;  %v1460_v46 = vld [vmem:[#allocation8 + $0x70] sm:$0xff] }
 0x477   :  { %v3971_v50 = vpop.eup %3970  ;;  %v1019_v51 = vmul.f32 %v3969_v48, %v3432_v29  ;;  %v3498_v29 = vpop.f32.mrb[13].mxu1 }
 0x478   :  { %v1018_v52 = vmul.f32 %v3971_v50, %v983_v32  ;;  %3768 = vmatpush3.bf16.msra.mxu0 %v3767_v49  ;;  %v1372_v31 = vpop.f32.mrb[14].mxu1  ;;  %v1456_v32 = vld [vmem:[#allocation8 + $0x50] sm:$0xff] }
 0x479   :  { %3769 = vmatprep.subr.bf16.mxu0 %v4927_v4  ;;  %v3501_v33 = vpop.f32.mrb[15].mxu1 }
 0x47a   :  { %v3770_v55 = vpack.c.bf16 %v1019_v51, %v1018_v52  ;;  %v1377_v34 = vpop.f32.mrb[16].mxu1 }
 0x47b   :  { %v3504_v37 = vpop.f32.mrb[17].mxu1 }
 0x47c   :  { %3772 = vmatpush3.bf16.msk.msra.mxu0 %vm3771_vm8, %v3770_v55  ;;  %v1382_v39 = vpop.f32.mrb[18].mxu1 }
 0x47d   :  { %3777 = vmatprep.subr.bf16.mxu0 %v4927_v4  ;;  %v3507_v41 = vpop.f32.mrb[19].mxu1 }
 0x47e   :  { %v1387_v42 = vpop.f32.mrb[20].mxu1 }
 0x47f   :  { %3442 = vmatmul.mubr.msk.f32.vlgmr.msra.gmra.mrb[8].mxu0 %vm1035_vm9, %v1020_v56  ;;  %v3510_v44 = vpop.f32.mrb[21].mxu1 }
 0x480   :  { %3444 = vmatprep.mubr.msk.f32.mxu0 %vm4929_vm5, %v4930_v8  ;;  %3779 = vmatpush3.bf16.msra.mxu0 %v3778_v57  ;;  %v1392_v45 = vpop.f32.mrb[22].mxu1 }
 0x481   :  { %3780 = vmatprep.subr.bf16.mxu0 %v4927_v4  ;;  %v1027_v4 = vld [vmem:[#allocation10 + $0x38] sm:$0xff]  ;;  %v3513_v47 = vpop.f32.mrb[23].mxu1 }
 0x482   :  { %v1397_v48 = vpop.f32.mrb[24].mxu1 }
 0x483   :  { %3445 = vmatmul.mubr.msk.f32.gmra.mrb[10].mxu0 %vm1035_vm9, %v1021_v60  ;;  %v3516_v49 = vpop.f32.mrb[25].mxu1 }
 0x484   :  { %3447 = vmatprep.mubr.msk.f32.mxu0 %vm4929_vm5, %v4930_v8  ;;  %3782 = vmatpush3.bf16.msra.mxu0 %v3781_v61  ;;  %v1402_v50 = vpop.f32.mrb[26].mxu1 }
 0x485   :  { %3543 = vmatprep.subr.mxu0 %v4930_v8  ;;  %v3519_v51 = vpop.f32.mrb[27].mxu1 }
 0x487   :  { %3448 = vmatmul.mubr.msk.f32.gmra.mrb[12].mxu0 %vm1035_vm9, %v1022_v62  ;;  %v1670_v62 = vld [vmem:[#allocation11] sm:$0xff] }
 0x488   :  { %3450 = vmatprep.mubr.msk.f32.mxu0 %vm4929_vm5, %v4930_v8  ;;  %3544 = vmatpush3.msk.msra.mxu0 %vm798_vm1, %v1465_v63  ;;  %v1407_v52 = vpop.f32.mrb[28].mxu1 }
 0x489   :  { %v3522_v53 = vpop.f32.mrb[29].mxu1  ;;  %3620 = vmatprep.mubr.msk.f32.mxu1 %vm1674_vm11, %v1670_v62 }
 0x48b   :  { %3451 = vmatmul.mubr.msk.f32.gmra.mrb[14].mxu0 %vm1035_vm9, %v1023_v0 }
 0x48c   :  { %3453 = vmatprep.mubr.msk.f32.mxu0 %vm4929_vm5, %v4930_v8  ;;  %v1412_v54 = vpop.f32.mrb[30].mxu1 }
 0x48d   :  { %v3525_v55 = vpop.f32.mrb[31].mxu1 }
 0x48f   :  { %3454 = vmatmul.mubr.msk.f32.gmra.mrb[16].mxu0 %vm1035_vm9, %v1024_v1 }
 0x490   :  { %3456 = vmatprep.mubr.msk.f32.mxu0 %vm4929_vm5, %v4930_v8  ;;  %v1417_v56 = vpop.f32.mrb[32].mxu1 }
 0x491   :  { %v3528_v57 = vpop.f32.mrb[33].mxu1 }
 0x493   :  { %3457 = vmatmul.mubr.msk.f32.gmra.mrb[18].mxu0 %vm1035_vm9, %v1025_v2 }
 0x494   :  { %3459 = vmatprep.mubr.msk.f32.mxu0 %vm4929_vm5, %v4930_v8  ;;  %v1422_v58 = vpop.f32.mrb[34].mxu1 }
 0x495   :  { %v3531_v59 = vpop.f32.mrb[35].mxu1 }
 0x497   :  { %3460 = vmatmul.mubr.msk.f32.gmra.mrb[20].mxu0 %vm1035_vm9, %v1026_v3 }
 0x498   :  { %3462 = vmatprep.mubr.msk.f32.mxu0 %vm4929_vm5, %v4930_v8  ;;  %v1427_v60 = vpop.f32.mrb[36].mxu1 }
 0x499   :  { %v3534_v61 = vpop.f32.mrb[37].mxu1 }
 0x49b   :  { %3463 = vmatmul.mubr.msk.f32.gmra.mrb[22].mxu0 %vm1035_vm9, %v1027_v4 }
 0x49c   :  { %3465 = vmatprep.mubr.msk.f32.mxu0 %vm4929_vm5, %v4930_v8 }
 0x49f   :  { %3466 = vmatmul.mubr.msk.f32.gmra.mrb[24].mxu0 %vm1035_vm9, %v1028_v5 }
 0x4a0   :  { %3468 = vmatprep.mubr.msk.f32.mxu0 %vm4929_vm5, %v4930_v8 }
 0x4a3   :  { %3469 = vmatmul.mubr.msk.f32.gmra.mrb[26].mxu0 %vm1035_vm9, %v1029_v6 }
 0x4a4   :  { %3471 = vmatprep.mubr.msk.f32.mxu0 %vm4929_vm5, %v4930_v8 }
 0x4a7   :  { %3472 = vmatmul.mubr.msk.f32.gmra.mrb[28].mxu0 %vm1035_vm9, %v1030_v7 }
 0x4a8   :  { %3474 = vmatprep.mubr.msk.f32.mxu0 %vm4929_vm5, %v4930_v8 }
 0x4ab   :  { %3475 = vmatmul.mubr.msk.f32.gmra.mrb[30].mxu0 %vm1035_vm9, %v1031_v9 }
 0x4ac   :  { %3477 = vmatprep.mubr.msk.f32.mxu0 %vm4929_vm5, %v4930_v8 }
 0x4af   :  { %3478 = vmatmul.mubr.msk.f32.gmra.mrb[32].mxu0 %vm1035_vm9, %v1032_v10 }
 0x4b0   :  { %3480 = vmatprep.mubr.msk.f32.mxu0 %vm4929_vm5, %v4930_v8 }
 0x4b3   :  { %3481 = vmatmul.mubr.msk.f32.gmra.mrb[34].mxu0 %vm1035_vm9, %v1033_v11 }
 0x4b4   :  { %3483 = vmatprep.mubr.msk.f32.mxu0 %vm4929_vm5, %v4930_v8 }
 0x4b7   :  { %3484 = vmatmul.mubr.msk.f32.gmra.mrb[36].mxu0 %vm1035_vm9, %v1034_v12 }
 0x4b8   :  { %3545 = vmatprep.mubr.msk.f32.mxu0 %vm4929_vm5, %v4930_v8 }
 0x4bb   :  { %3546 = vmatmul.mubr.msk.f32.vlgmr.msra.gmra.mrb[38].mxu0 %vm1466_vm10, %v1446_v13 }
 0x4bc   :  { %3548 = vmatprep.mubr.msk.f32.mxu0 %vm4929_vm5, %v4930_v8 }
 0x4bf   :  { %3549 = vmatmul.mubr.msk.f32.gmra.mrb[40].mxu0 %vm1466_vm10, %v1447_v14 }
 0x4c0   :  { %3551 = vmatprep.mubr.msk.f32.mxu0 %vm4929_vm5, %v4930_v8 }
 0x4c3   :  { %3552 = vmatmul.mubr.msk.f32.gmra.mrb[42].mxu0 %vm1466_vm10, %v1448_v15 }
 0x4c4   :  { %3554 = vmatprep.mubr.msk.f32.mxu0 %vm4929_vm5, %v4930_v8 }
 0x4c7   :  { %3555 = vmatmul.mubr.msk.f32.gmra.mrb[44].mxu0 %vm1466_vm10, %v1449_v16 }
 0x4c8   :  { %3557 = vmatprep.mubr.msk.f32.mxu0 %vm4929_vm5, %v4930_v8 }
 0x4cb   :  { %3558 = vmatmul.mubr.msk.f32.gmra.mrb[46].mxu0 %vm1466_vm10, %v1450_v17 }
 0x4cc   :  { %3560 = vmatprep.mubr.msk.f32.mxu0 %vm4929_vm5, %v4930_v8 }
 0x4cf   :  { %3561 = vmatmul.mubr.msk.f32.gmra.mrb[48].mxu0 %vm1466_vm10, %v1451_v18 }
 0x4d0   :  { %3563 = vmatprep.mubr.msk.f32.mxu0 %vm4929_vm5, %v4930_v8 }
 0x4d3   :  { %3564 = vmatmul.mubr.msk.f32.gmra.mrb[50].mxu0 %vm1466_vm10, %v1452_v19 }
 0x4d4   :  { %3566 = vmatprep.mubr.msk.f32.mxu0 %vm4929_vm5, %v4930_v8 }
 0x4d7   :  { %3567 = vmatmul.mubr.msk.f32.gmra.mrb[52].mxu0 %vm1466_vm10, %v1453_v21 }
 0x4d8   :  { %3569 = vmatprep.mubr.msk.f32.mxu0 %vm4929_vm5, %v4930_v8 }
 0x4db   :  { %3570 = vmatmul.mubr.msk.f32.gmra.mrb[54].mxu0 %vm1466_vm10, %v1454_v24 }
 0x4dc   :  { %3572 = vmatprep.mubr.msk.f32.mxu0 %vm4929_vm5, %v4930_v8 }
 0x4df   :  { %3573 = vmatmul.mubr.msk.f32.gmra.mrb[56].mxu0 %vm1466_vm10, %v1455_v27 }
 0x4e0   :  { %3575 = vmatprep.mubr.msk.f32.mxu0 %vm4929_vm5, %v4930_v8 }
 0x4e3   :  { %3576 = vmatmul.mubr.msk.f32.gmra.mrb[58].mxu0 %vm1466_vm10, %v1456_v32 }
 0x4e4   :  { %3578 = vmatprep.mubr.msk.f32.mxu0 %vm4929_vm5, %v4930_v8 }
 0x4e7   :  { %3579 = vmatmul.mubr.msk.f32.gmra.mrb[60].mxu0 %vm1466_vm10, %v1457_v36 }
 0x4e8   :  { %3581 = vmatprep.mubr.msk.f32.mxu0 %vm4929_vm5, %v4930_v8 }
 0x4eb   :  { %3582 = vmatmul.mubr.msk.f32.gmra.mrb[62].mxu0 %vm1466_vm10, %v1458_v40 }
 0x4ec   :  { %3584 = vmatprep.mubr.msk.f32.mxu0 %vm4929_vm5, %v4930_v8 }
 0x4ef   :  { %3585 = vmatmul.mubr.msk.f32.gmra.mrb[64].mxu0 %vm1466_vm10, %v1459_v43 }
 0x4f0   :  { %3587 = vmatprep.mubr.msk.f32.mxu0 %vm4929_vm5, %v4930_v8 }
 0x4f3   :  { %3588 = vmatmul.mubr.msk.f32.gmra.mrb[66].mxu0 %vm1466_vm10, %v1460_v46 }
 0x552   :  { %v1151_v8 = vpop.f32.mrb[8].mxu0 }
 0x553   :  { %v1431_v63 = vmul.f32 %v1357_v20, %v1151_v8  ;;  %v3443_v0 = vpop.f32.mrb[9].mxu0 }
 0x556   :  { %v1156_v1 = vpop.f32.mrb[10].mxu0 }
 0x557   :  { %v1432_v2 = vmul.f32 %v1362_v23, %v1156_v1  ;;  %v3446_v3 = vpop.f32.mrb[11].mxu0 }
 0x55a   :  { %v1161_v4 = vpop.f32.mrb[12].mxu0 }
 0x55b   :  { %v1433_v5 = vmul.f32 %v1367_v26, %v1161_v4  ;;  %v3449_v6 = vpop.f32.mrb[13].mxu0 }
 0x55e   :  { %v1166_v7 = vpop.f32.mrb[14].mxu0 }
 0x55f   :  { %v1434_v9 = vmul.f32 %v1372_v31, %v1166_v7  ;;  %v3452_v10 = vpop.f32.mrb[15].mxu0 }
 0x562   :  { %v1171_v11 = vpop.f32.mrb[16].mxu0 }
 0x563   :  { %v1435_v12 = vmul.f32 %v1377_v34, %v1171_v11  ;;  %v3455_v13 = vpop.f32.mrb[17].mxu0 }
 0x566   :  { %v1176_v14 = vpop.f32.mrb[18].mxu0 }
 0x567   :  { %v1436_v15 = vmul.f32 %v1382_v39, %v1176_v14  ;;  %v3458_v16 = vpop.f32.mrb[19].mxu0 }
 0x56a   :  { %v1181_v17 = vpop.f32.mrb[20].mxu0 }
 0x56b   :  { %v1437_v18 = vmul.f32 %v1387_v42, %v1181_v17  ;;  %v3461_v19 = vpop.f32.mrb[21].mxu0 }
 0x56e   :  { %v1186_v20 = vpop.f32.mrb[22].mxu0 }
 0x56f   :  { %v1438_v21 = vmul.f32 %v1392_v45, %v1186_v20  ;;  %v3464_v22 = vpop.f32.mrb[23].mxu0 }
 0x572   :  { %v1191_v23 = vpop.f32.mrb[24].mxu0 }
 0x573   :  { %v1439_v24 = vmul.f32 %v1397_v48, %v1191_v23  ;;  %v3467_v25 = vpop.f32.mrb[25].mxu0 }
 0x576   :  { %v1196_v26 = vpop.f32.mrb[26].mxu0 }
 0x577   :  { %v1440_v27 = vmul.f32 %v1402_v50, %v1196_v26  ;;  %v3470_v29 = vpop.f32.mrb[27].mxu0 }
 0x57a   :  { %v1201_v31 = vpop.f32.mrb[28].mxu0 }
 0x57b   :  { %v1441_v32 = vmul.f32 %v1407_v52, %v1201_v31  ;;  %v3473_v33 = vpop.f32.mrb[29].mxu0 }
 0x57e   :  { %v1206_v34 = vpop.f32.mrb[30].mxu0 }
 0x57f   :  { %v1442_v36 = vmul.f32 %v1412_v54, %v1206_v34  ;;  %v3476_v37 = vpop.f32.mrb[31].mxu0 }
 0x582   :  { %v1211_v39 = vpop.f32.mrb[32].mxu0 }
 0x583   :  { %v1443_v40 = vmul.f32 %v1417_v56, %v1211_v39  ;;  %v3479_v41 = vpop.f32.mrb[33].mxu0 }
 0x584   :  { %v1772_v41 = vld [vmem:[#allocation25] sm:$0xff] }
 0x586   :  { %v1216_v42 = vpop.f32.mrb[34].mxu0 }
 0x587   :  { %v5510_v43 = vmul.f32 %v1422_v58, %v1216_v42  ;;  %v3482_v44 = vpop.f32.mrb[35].mxu0 }
 0x58a   :  { %v1221_v45 = vpop.f32.mrb[36].mxu0 }
 0x58b   :  { %v5512_v46 = vmul.f32 %v1427_v60, %v1221_v45  ;;  %v3485_v47 = vpop.f32.mrb[37].mxu0  ;;  %v1671_v45 = vld [vmem:[#allocation11 + $0x8] sm:$0xff] }
 0x58e   :  { %v1581_v48 = vpop.f32.mrb[38].mxu0 }
 0x58f   :  { %v1655_v49 = vmul.f32 %v1581_v48, %v1431_v63  ;;  %v3547_v50 = vpop.f32.mrb[39].mxu0 }
 0x590   :  { %v1904_v50 = vld [vmem:[#allocation26] sm:$0xff] }
 0x592   :  { %v1586_v51 = vpop.f32.mrb[40].mxu0 }
 0x593   :  { %v1656_v52 = vmul.f32 %v1586_v51, %v1432_v2  ;;  %v3550_v53 = vpop.f32.mrb[41].mxu0  ;;  %v1905_v51 = vld [vmem:[#allocation26 + $0x8] sm:$0xff] }
 0x594   :  { %v1906_v53 = vld [vmem:[#allocation26 + $0x10] sm:$0xff] }
 0x595   :  { %v3783_v55 = vpack.c.bf16 %v1656_v52, %v1655_v49  ;;  %v3815_v52 = vpack.c.bf16 %v1905_v51, %v1904_v50  ;;  %v3144_v51 = vld [vmem:[#allocation28] ss:$0 sm:$0xff] }
 0x596   :  { %v1591_v54 = vpop.f32.mrb[42].mxu0 }
 0x597   :  { %v1657_v57 = vmul.f32 %v1591_v54, %v1433_v5  ;;  %v3553_v59 = vpop.f32.mrb[43].mxu0  ;;  %3784 = vmatprep.subr.bf16.mxu1 %v3783_v55 }
 0x598   :  { %3786 = vmatpush3.bf16.msra.mxu1 %v3783_v55  ;;  %v1907_v55 = vld [vmem:[#allocation26 + $0x18] sm:$0xff] }
 0x599   :  { %v3819_v54 = vpack.c.bf16 %v1907_v55, %v1906_v53 }
 0x59a   :  { %v1596_v56 = vpop.f32.mrb[44].mxu0 }
 0x59b   :  { %v1658_v58 = vmul.f32 %v1596_v56, %v1434_v9  ;;  %v3556_v61 = vpop.f32.mrb[45].mxu0 }
 0x59d   :  { %v3787_v62 = vpack.c.bf16 %v1658_v58, %v1657_v57  ;;  %v3053_v57 = vld [vmem:[#allocation14] ss:$0 sm:$0xff] }
 0x59e   :  { %v1601_v8 = vpop.f32.mrb[46].mxu0  ;;  %v619_v59 = vadd.f32 %v5352_v28, %v3053_v57  ;;  %v614_v56 = vadd.f32 %v3053_v57, %v5354_v30  ;;  %v629_v61 = vadd.f32 %v5356_v35, %v3053_v57 }
 0x59f   :  { %v1659_v60 = vmul.f32 %v1601_v8, %v1435_v12  ;;  %v3559_v0 = vpop.f32.mrb[47].mxu0  ;;  %3788 = vmatprep.subr.bf16.mxu1 %v3787_v62  ;;  %v624_v8 = vadd.f32 %v3053_v57, %v5358_v38 }
 0x5a0   :  { %3790 = vmatpush3.bf16.msra.mxu1 %v3787_v62  ;;  %v3059_v58 = vmul.f32 -1.442695, %v619_v59  ;;  %v3058_v62 = vmul.f32 -1.442695, %v614_v56 }
 0x5a1   :  { %v3060_v0 = vmul.f32 -1.442695, %v624_v8 }
 0x5a2   :  { %v1606_v63 = vpop.f32.mrb[48].mxu0  ;;  %3972 = vpow2.f32 %v3059_v58 }
 0x5a3   :  { %v1660_v1 = vmul.f32 %v1606_v63, %v1436_v15  ;;  %v3562_v3 = vpop.f32.mrb[49].mxu0  ;;  %3974 = vpow2.f32 %v3058_v62 }
 0x5a5   :  { %v3791_v2 = vpack.c.bf16 %v1660_v1, %v1659_v60  ;;  %v3061_v60 = vmul.f32 -1.442695, %v629_v61 }
 0x5a6   :  { %v1611_v4 = vpop.f32.mrb[50].mxu0 }
 0x5a7   :  { %v1661_v6 = vmul.f32 %v1611_v4, %v1437_v18  ;;  %v3565_v7 = vpop.f32.mrb[51].mxu0  ;;  %3792 = vmatprep.subr.bf16.mxu1 %v3791_v2  ;;  %3976 = vpow2.f32 %v3061_v60 }
 0x5a8   :  { %3794 = vmatpush3.bf16.msra.mxu1 %v3791_v2  ;;  %3978 = vpow2.f32 %v3060_v0 }
 0x5aa   :  { %v1616_v5 = vpop.f32.mrb[52].mxu0 }
 0x5ab   :  { %v1662_v10 = vmul.f32 %v1616_v5, %v1438_v21  ;;  %v3568_v11 = vpop.f32.mrb[53].mxu0 }
 0x5ac   :  { %v3973_v35 = vpop.eup %3972 }
 0x5ad   :  { %v3795_v9 = vpack.c.bf16 %v1662_v10, %v1661_v6  ;;  %v3975_v7 = vpop.eup %3974  ;;  %v645_v38 = vadd.f32 1.0, %v3973_v35 }
 0x5ae   :  { %v1621_v13 = vpop.f32.mrb[54].mxu0  ;;  %v644_v10 = vadd.f32 1.0, %v3975_v7 }
 0x5af   :  { %v1663_v14 = vmul.f32 %v1621_v13, %v1439_v24  ;;  %v3571_v16 = vpop.f32.mrb[55].mxu0  ;;  %3796 = vmatprep.subr.bf16.mxu1 %v3795_v9 }
 0x5b0   :  { %3798 = vmatpush3.bf16.msra.mxu1 %v3795_v9 }
 0x5b1   :  { %v3977_v5 = vpop.eup %3976 }
 0x5b2   :  { %v1626_v12 = vpop.f32.mrb[56].mxu0  ;;  %v3979_v11 = vpop.eup %3978 }
 0x5b3   :  { %v1664_v17 = vmul.f32 %v1626_v12, %v1440_v27  ;;  %v3574_v19 = vpop.f32.mrb[57].mxu0  ;;  %v646_v12 = vadd.f32 1.0, %v3979_v11 }
 0x5b5   :  { %v3799_v15 = vpack.c.bf16 %v1664_v17, %v1663_v14  ;;  %v647_v14 = vadd.f32 1.0, %v3977_v5 }
 0x5b6   :  { %v1631_v20 = vpop.f32.mrb[58].mxu0 }
 0x5b7   :  { %v1665_v22 = vmul.f32 %v1631_v20, %v1441_v32  ;;  %v3577_v23 = vpop.f32.mrb[59].mxu0  ;;  %3800 = vmatprep.subr.bf16.mxu1 %v3799_v15  ;;  %v1773_v32 = vld [vmem:[#allocation25 + $0x8] sm:$0xff] }
 0x5b8   :  { %3802 = vmatpush3.bf16.msra.mxu1 %v3799_v15 }
 0x5ba   :  { %v1636_v18 = vpop.f32.mrb[60].mxu0 }
 0x5bb   :  { %v1666_v25 = vmul.f32 %v1636_v18, %v1442_v36  ;;  %v3580_v26 = vpop.f32.mrb[61].mxu0  ;;  %v3811_v36 = vpack.c.bf16 %v1773_v32, %v1772_v41 }
 0x5bd   :  { %v3803_v21 = vpack.c.bf16 %v1666_v25, %v1665_v22 }
 0x5be   :  { %v1641_v29 = vpop.f32.mrb[62].mxu0 }
 0x5bf   :  { %v1667_v31 = vmul.f32 %v1641_v29, %v1443_v40  ;;  %v3583_v33 = vpop.f32.mrb[63].mxu0  ;;  %3804 = vmatprep.subr.bf16.mxu1 %v3803_v21  ;;  %v1672_v40 = vld [vmem:[#allocation11 + $0x10] sm:$0xff] }
 0x5c0   :  { %3806 = vmatpush3.bf16.msra.mxu1 %v3803_v21 }
 0x5c2   :  { %v1646_v24 = vpop.f32.mrb[64].mxu0 }
 0x5c3   :  { %v1668_v34 = vmul.f32 %v1646_v24, %v5510_v43  ;;  %v3586_v27 = vpop.f32.mrb[65].mxu0  ;;  %v1673_v43 = vld [vmem:[#allocation11 + $0x18] sm:$0x3f] }
 0x5c5   :  { %v3807_v37 = vpack.c.bf16 %v1668_v34, %v1667_v31 }
 0x5c6   :  { %v1651_v39 = vpop.f32.mrb[66].mxu0 }
 0x5c7   :  { %v1669_v42 = vmul.f32 %v1651_v39, %v5512_v46  ;;  %3808 = vmatprep.subr.bf16.mxu1 %v3807_v37  ;;  %v3589_v44 = vpop.f32.mrb[67].mxu0 }
 0x5c8   :  { %3810 = vmatpush3.bf16.msra.mxu1 %v3807_v37 }
 0x5c9   :  { %3618 = vmatprep.subr.mxu1 %v1669_v42 }
 0x5cc   :  { %3619 = vmatpush3.msra.mxu1 %v1669_v42 }
 0x5cd   :  { %3621 = vmatmul.mubr.msk.f32.vlgmr.msra.gmra.mrb[38].mxu1 %vm1674_vm11, %v1671_v45  ;;  %3812 = vmatprep.subr.bf16.mxu1 %v3811_v36 }
 0x5ce   :  { %3623 = vmatprep.mubr.msk.f32.mxu1 %vm1674_vm11, %v1672_v40  ;;  %3814 = vmatpush3.bf16.msra.mxu1 %v3811_v36 }
 0x5cf   :  { %3816 = vmatprep.subr.bf16.mxu1 %v3815_v52 }
 0x5d1   :  { %3624 = vmatmul.mubr.msk.f32.gmra.mrb[40].mxu1 %vm1674_vm11, %v1673_v43  ;;  %v2040_v43 = vld [vmem:[#allocation29] sm:$0xff] }
 0x6a0   :  { %v3622_v47 = vpop.f32.mrb[38].mxu1 }
 0x6a1   :  { %v1753_v46 = vpop.f32.mrb[39].mxu1 }
 0x6a2   :  { %3630 = vmatprep.mubr.msk.f32.mxu1 %vm1774_vm12, %v1753_v46 }
 0x6a3   :  { %3631 = vmatmul.mubr.msk.f32.vlgmr.msra.gmra.mrb[42].mxu1 %vm1774_vm12, %v3622_v47  ;;  %v2041_v47 = vld [vmem:[#allocation29 + $0x8] sm:$0xff] }
 0x6a4   :  { %v3625_v48 = vpop.f32.mrb[40].mxu1  ;;  %3818 = vmatpush3.bf16.msra.mxu1 %v3815_v52  ;;  %v3823_v46 = vpack.c.bf16 %v2041_v47, %v2040_v43 }
 0x6a5   :  { %v1763_v49 = vpop.f32.mrb[41].mxu1  ;;  %3820 = vmatprep.subr.bf16.mxu1 %v3819_v54 }
 0x6a6   :  { %3633 = vmatprep.mubr.msk.f32.mxu1 %vm1774_vm12, %v1763_v49  ;;  %v2043_v49 = vld [vmem:[#allocation29 + $0x18] sm:$0xff] }
 0x6a7   :  { %3634 = vmatmul.mubr.msk.f32.gmra.mrb[44].mxu1 %vm1774_vm12, %v3625_v48  ;;  %v2042_v48 = vld [vmem:[#allocation29 + $0x10] sm:$0xff] }
 0x6a8   :  { %3822 = vmatpush3.bf16.msra.mxu1 %v3819_v54  ;;  %v3827_v50 = vpack.c.bf16 %v2043_v49, %v2042_v48 }
 0x6a9   :  { %3824 = vmatprep.subr.bf16.mxu1 %v3823_v46 }
 0x776   :  { %v3632_v63 = vpop.f32.mrb[42].mxu1 }
 0x777   :  { %v3141_v1 = vmul.f32 -1.442695, %v3632_v63  ;;  %v1853_v3 = vpop.f32.mrb[43].mxu1 }
 0x778   :  { %v3140_v2 = vmul.f32 -1.442695, %v1853_v3 }
 0x779   :  { %3980 = vpow2.f32 %v3141_v1 }
 0x77a   :  { %3982 = vpow2.f32 %v3140_v2  ;;  %v3635_v28 = vpop.f32.mrb[44].mxu1 }
 0x77b   :  { %v3143_v30 = vmul.f32 -1.442695, %v3635_v28  ;;  %v1863_v4 = vpop.f32.mrb[45].mxu1 }
 0x77c   :  { %v3142_v6 = vmul.f32 -1.442695, %v1863_v4 }
 0x77d   :  { %3984 = vpow2.f32 %v3143_v30 }
 0x77e   :  { %3986 = vpow2.f32 %v3142_v6 }
 0x77f   :  { %3988 = vrcp.f32 %v645_v38 }
 0x780   :  { %3990 = vrcp.f32 %v644_v10 }
 0x783   :  { %v3981_v9 = vpop.eup %3980 }
 0x784   :  { %v3983_v13 = vpop.eup %3982  ;;  %v1885_v16 = vadd.f32 1.0, %v3981_v9 }
 0x785   :  { %v1884_v17 = vadd.f32 1.0, %v3983_v13  ;;  %v2180_v13 = vld [vmem:[#allocation32] sm:$0xff] }
 0x786   :  { %3992 = vrcp.f32 %v1885_v16 }
 0x787   :  { %v3985_v19 = vpop.eup %3984  ;;  %3994 = vrcp.f32 %v1884_v17  ;;  %v2183_v17 = vld [vmem:[#allocation32 + $0x18] sm:$0xff] }
 0x788   :  { %v3987_v15 = vpop.eup %3986  ;;  %3996 = vrcp.f32 %v647_v14  ;;  %v1887_v20 = vadd.f32 1.0, %v3985_v19  ;;  %v2181_v14 = vld [vmem:[#allocation32 + $0x8] sm:$0xff] }
 0x789   :  { %3998 = vrcp.f32 %v646_v12  ;;  %v1886_v22 = vadd.f32 1.0, %v3987_v15  ;;  %v3989_v23 = vpop.eup %3988  ;;  %v3831_v16 = vpack.c.bf16 %v2181_v14, %v2180_v13  ;;  %v2182_v12 = vld [vmem:[#allocation32 + $0x10] sm:$0xff]  ;;  %v3153_v15 = vld [vmem:[#allocation31] ss:$0 sm:$0xff] }
 0x78a   :  { %4000 = vrcp.f32 %v1887_v20  ;;  %v3991_v18 = vpop.eup %3990  ;;  %v657_v21 = vmul.f32 %v3989_v23, %v619_v59  ;;  %v3835_v19 = vpack.c.bf16 %v2183_v17, %v2182_v12 }
 0x78b   :  { %4002 = vrcp.f32 %v1886_v22  ;;  %v656_v33 = vmul.f32 %v3991_v18, %v614_v56 }
 0x790   :  { %v3993_v25 = vpop.eup %3992 }
 0x791   :  { %v3995_v26 = vpop.eup %3994  ;;  %v1897_v29 = vmul.f32 %v3993_v25, %v3632_v63 }
 0x792   :  { %v3997_v31 = vpop.eup %3996  ;;  %v1896_v24 = vmul.f32 %v3995_v26, %v1853_v3 }
 0x793   :  { %v3999_v34 = vpop.eup %3998  ;;  %v5523_v27 = vadd.f32 %v1897_v29, %v657_v21  ;;  %v659_v32 = vmul.f32 %v3997_v31, %v629_v61 }
 0x794   :  { %v4001_v37 = vpop.eup %4000  ;;  %v5525_v39 = vadd.f32 %v1896_v24, %v656_v33  ;;  %v658_v44 = vmul.f32 %v3999_v34, %v624_v8 }
 0x795   :  { %v4003_v41 = vpop.eup %4002  ;;  %v1899_v42 = vmul.f32 %v4001_v37, %v3635_v28 }
 0x796   :  { %v1898_v36 = vmul.f32 %v4003_v41, %v1863_v4  ;;  %3644 = vmatprep.mubr.msk.f32.mxu1 %vm534_vm0, %v5525_v39 }
 0x797   :  { %v5529_v45 = vadd.f32 %v1899_v42, %v659_v32  ;;  %3645 = vmatmul.mubr.msk.f32.vlgmr.msra.gmra.mrb[46].mxu1 %vm534_vm0, %v5523_v27 }
 0x798   :  { %v5533_v40 = vadd.f32 %v1898_v36, %v658_v44  ;;  %3826 = vmatpush3.bf16.msra.mxu1 %v3823_v46 }
 0x799   :  { %3828 = vmatprep.subr.bf16.mxu1 %v3827_v50 }
 0x79a   :  { %3647 = vmatprep.mubr.msk.f32.mxu1 %vm534_vm0, %v5533_v40 }
 0x79b   :  { %3648 = vmatmul.mubr.msk.f32.gmra.mrb[48].mxu1 %vm534_vm0, %v5529_v45 }
 0x79c   :  { %3830 = vmatpush3.bf16.msra.mxu1 %v3827_v50 }
 0x79d   :  { %3832 = vmatprep.subr.bf16.mxu1 %v3831_v16 }
 0x86a   :  { %v3646_v52 = vpop.f32.mrb[46].mxu1 }
 0x86b   :  { %v1999_v53 = vadd.f32 %v3646_v52, %v3144_v51  ;;  %v1993_v55 = vpop.f32.mrb[47].mxu1 }
 0x86c   :  { %v1994_v54 = vadd.f32 %v3144_v51, %v1993_v55 }
 0x86d   :  { %v3150_v57 = vmul.f32 -1.442695, %v1999_v53 }
 0x86e   :  { %v3149_v59 = vmul.f32 -1.442695, %v1994_v54  ;;  %v3649_v56 = vpop.f32.mrb[48].mxu1 }
 0x86f   :  { %4004 = vpow2.f32 %v3150_v57  ;;  %v2009_v58 = vadd.f32 %v3649_v56, %v3144_v51  ;;  %v2003_v61 = vpop.f32.mrb[49].mxu1 }
 0x870   :  { %4006 = vpow2.f32 %v3149_v59  ;;  %v2004_v62 = vadd.f32 %v3144_v51, %v2003_v61  ;;  %v2321_v61 = vld [vmem:[#allocation35 + $0x8] sm:$0xff] }
 0x871   :  { %v3152_v8 = vmul.f32 -1.442695, %v2009_v58 }
 0x872   :  { %v3151_v60 = vmul.f32 -1.442695, %v2004_v62 }
 0x873   :  { %4008 = vpow2.f32 %v3152_v8 }
 0x874   :  { %4010 = vpow2.f32 %v3151_v60  ;;  %v3162_v60 = vld [vmem:[#allocation34] ss:$0 sm:$0xff] }
 0x879   :  { %v4005_v0 = vpop.eup %4004 }
 0x87a   :  { %v4007_v63 = vpop.eup %4006  ;;  %v2025_v1 = vadd.f32 1.0, %v4005_v0 }
 0x87b   :  { %v2024_v3 = vadd.f32 1.0, %v4007_v63 }
 0x87c   :  { %4012 = vrcp.f32 %v2025_v1 }
 0x87d   :  { %v4009_v2 = vpop.eup %4008  ;;  %4014 = vrcp.f32 %v2024_v3 }
 0x87e   :  { %v4011_v28 = vpop.eup %4010  ;;  %v2027_v30 = vadd.f32 1.0, %v4009_v2 }
 0x87f   :  { %v2026_v4 = vadd.f32 1.0, %v4011_v28 }
 0x880   :  { %4016 = vrcp.f32 %v2027_v30 }
 0x881   :  { %4018 = vrcp.f32 %v2026_v4 }
 0x886   :  { %v4013_v6 = vpop.eup %4012 }
 0x887   :  { %v4015_v35 = vpop.eup %4014  ;;  %v2037_v38 = vmul.f32 %v4013_v6, %v1999_v53 }
 0x888   :  { %v2036_v7 = vmul.f32 %v4015_v35, %v1994_v54 }
 0x88a   :  { %v4017_v5 = vpop.eup %4016  ;;  %3658 = vmatprep.mubr.msk.f32.mxu1 %vm534_vm0, %v2036_v7 }
 0x88b   :  { %v4019_v10 = vpop.eup %4018  ;;  %3659 = vmatmul.mubr.msk.f32.vlgmr.msra.gmra.mrb[50].mxu1 %vm534_vm0, %v2037_v38  ;;  %v2039_v9 = vmul.f32 %v4017_v5, %v2009_v58  ;;  %v2320_v58 = vld [vmem:[#allocation35] sm:$0xff] }
 0x88c   :  { %v2038_v11 = vmul.f32 %v4019_v10, %v2004_v62  ;;  %3834 = vmatpush3.bf16.msra.mxu1 %v3831_v16  ;;  %v2323_v62 = vld [vmem:[#allocation35 + $0x18] sm:$0xff] }
 0x88d   :  { %3836 = vmatprep.subr.bf16.mxu1 %v3835_v19 }
 0x88e   :  { %3661 = vmatprep.mubr.msk.f32.mxu1 %vm534_vm0, %v2038_v11 }
 0x88f   :  { %3662 = vmatmul.mubr.msk.f32.gmra.mrb[52].mxu1 %vm534_vm0, %v2039_v9 }
 0x890   :  { %3838 = vmatpush3.bf16.msra.mxu1 %v3835_v19 }
 0x95e   :  { %v3660_v20 = vpop.f32.mrb[50].mxu1 }
 0x95f   :  { %v2135_v22 = vadd.f32 %v3660_v20, %v3153_v15  ;;  %v2129_v23 = vpop.f32.mrb[51].mxu1  ;;  %v4116_v20 = vld [vmem:[#allocation2] sm:$0xff] }
 0x960   :  { %v2130_v18 = vadd.f32 %v3153_v15, %v2129_v23 }
 0x961   :  { %v3159_v25 = vmul.f32 -1.442695, %v2135_v22 }
 0x962   :  { %v3158_v26 = vmul.f32 -1.442695, %v2130_v18  ;;  %v3663_v21 = vpop.f32.mrb[52].mxu1 }
 0x963   :  { %4020 = vpow2.f32 %v3159_v25  ;;  %v2145_v29 = vadd.f32 %v3663_v21, %v3153_v15  ;;  %v2139_v31 = vpop.f32.mrb[53].mxu1 }
 0x964   :  { %4022 = vpow2.f32 %v3158_v26  ;;  %v2140_v33 = vadd.f32 %v3153_v15, %v2139_v31 }
 0x965   :  { %v3161_v24 = vmul.f32 -1.442695, %v2145_v29 }
 0x966   :  { %v3160_v34 = vmul.f32 -1.442695, %v2140_v33 }
 0x967   :  { %4024 = vpow2.f32 %v3161_v24 }
 0x968   :  { %4026 = vpow2.f32 %v3160_v34  ;;  %v2456_v34 = vld [vmem:[#allocation38] sm:$0xff] }
 0x96d   :  { %v4021_v37 = vpop.eup %4020 }
 0x96e   :  { %v4023_v41 = vpop.eup %4022  ;;  %v2161_v32 = vadd.f32 1.0, %v4021_v37  ;;  %v2457_v37 = vld [vmem:[#allocation38 + $0x8] sm:$0xff] }
 0x96f   :  { %v2160_v42 = vadd.f32 1.0, %v4023_v41  ;;  %v3847_v41 = vpack.c.bf16 %v2457_v37, %v2456_v34 }
 0x970   :  { %4028 = vrcp.f32 %v2161_v32  ;;  %v2458_v32 = vld [vmem:[#allocation38 + $0x10] sm:$0xff] }
 0x971   :  { %v4025_v44 = vpop.eup %4024  ;;  %4030 = vrcp.f32 %v2160_v42  ;;  %v2459_v42 = vld [vmem:[#allocation38 + $0x18] sm:$0xff] }
 0x972   :  { %v4027_v36 = vpop.eup %4026  ;;  %v2163_v43 = vadd.f32 1.0, %v4025_v44  ;;  %v3851_v44 = vpack.c.bf16 %v2459_v42, %v2458_v32 }
 0x973   :  { %v2162_v47 = vadd.f32 1.0, %v4027_v36  ;;  %v3171_v36 = vld [vmem:[#allocation37] ss:$0 sm:$0xff] }
 0x974   :  { %4032 = vrcp.f32 %v2163_v43 }
 0x975   :  { %4034 = vrcp.f32 %v2162_v47 }
 0x97a   :  { %v4029_v46 = vpop.eup %4028 }
 0x97b   :  { %v4031_v48 = vpop.eup %4030  ;;  %v2173_v49 = vmul.f32 %v4029_v46, %v2135_v22 }
 0x97c   :  { %v2172_v50 = vmul.f32 %v4031_v48, %v2130_v18  ;;  %v4117_v18 = vld [vmem:[#allocation2 + $0x8] sm:$0xff] }
 0x97d   :  { %v2177_v55 = vadd.f32 %v2173_v49, %v5523_v27  ;;  %v2322_v27 = vld [vmem:[#allocation35 + $0x10] sm:$0xff] }
 0x97e   :  { %v4033_v51 = vpop.eup %4032  ;;  %v2176_v52 = vadd.f32 %v2172_v50, %v5525_v39  ;;  %v3839_v39 = vpack.c.bf16 %v2321_v61, %v2320_v58  ;;  %v3843_v8 = vpack.c.bf16 %v2323_v62, %v2322_v27 }
 0x97f   :  { %v4035_v53 = vpop.eup %4034  ;;  %v2175_v54 = vmul.f32 %v4033_v51, %v2145_v29  ;;  %v4118_v29 = vld [vmem:[#allocation2 + $0x10] sm:$0xff] }
 0x980   :  { %v2174_v57 = vmul.f32 %v4035_v53, %v2140_v33  ;;  %3672 = vmatprep.mubr.msk.f32.mxu1 %vm534_vm0, %v2176_v52  ;;  %3840 = vmatprep.subr.bf16.mxu1 %v3839_v39  ;;  %v4119_v33 = vld [vmem:[#allocation2 + $0x18] sm:$0x3f] }
 0x981   :  { %3673 = vmatmul.mubr.msk.f32.vlgmr.msra.gmra.mrb[54].mxu1 %vm534_vm0, %v2177_v55  ;;  %v2179_v56 = vadd.f32 %v2175_v54, %v5529_v45 }
 0x982   :  { %v2178_v59 = vadd.f32 %v2174_v57, %v5533_v40  ;;  %3842 = vmatpush3.bf16.msra.mxu1 %v3839_v39 }
 0x983   :  { %3844 = vmatprep.subr.bf16.mxu1 %v3843_v8 }
 0x984   :  { %3675 = vmatprep.mubr.msk.f32.mxu1 %vm534_vm0, %v2178_v59 }
 0x985   :  { %3676 = vmatmul.mubr.msk.f32.gmra.mrb[56].mxu1 %vm534_vm0, %v2179_v56 }
 0x986   :  { %3846 = vmatpush3.bf16.msra.mxu1 %v3843_v8 }
 0x987   :  { %3848 = vmatprep.subr.bf16.mxu1 %v3847_v41 }
 0xa54   :  { %v3674_v0 = vpop.f32.mrb[54].mxu1 }
 0xa55   :  { %v2275_v63 = vadd.f32 %v3674_v0, %v3162_v60  ;;  %v2269_v40 = vpop.f32.mrb[55].mxu1 }
 0xa56   :  { %v2270_v1 = vadd.f32 %v3162_v60, %v2269_v40 }
 0xa57   :  { %v3168_v45 = vmul.f32 -1.442695, %v2275_v63 }
 0xa58   :  { %v3167_v3 = vmul.f32 -1.442695, %v2270_v1  ;;  %v3677_v2 = vpop.f32.mrb[56].mxu1 }
 0xa59   :  { %4036 = vpow2.f32 %v3168_v45  ;;  %v2285_v28 = vadd.f32 %v3677_v2, %v3162_v60  ;;  %v2279_v30 = vpop.f32.mrb[57].mxu1 }
 0xa5a   :  { %4038 = vpow2.f32 %v3167_v3  ;;  %v2280_v4 = vadd.f32 %v3162_v60, %v2279_v30  ;;  %v2597_v30 = vld [vmem:[#allocation41 + $0x8] sm:$0xff] }
 0xa5b   :  { %v3170_v6 = vmul.f32 -1.442695, %v2285_v28 }
 0xa5c   :  { %v3169_v35 = vmul.f32 -1.442695, %v2280_v4 }
 0xa5d   :  { %4040 = vpow2.f32 %v3170_v6  ;;  %v2598_v6 = vld [vmem:[#allocation41 + $0x10] sm:$0xff] }
 0xa5e   :  { %4042 = vpow2.f32 %v3169_v35  ;;  %v2599_v35 = vld [vmem:[#allocation41 + $0x18] sm:$0xff] }
 0xa63   :  { %v4037_v7 = vpop.eup %4036 }
 0xa64   :  { %v4039_v38 = vpop.eup %4038  ;;  %v2301_v5 = vadd.f32 1.0, %v4037_v7  ;;  %v3859_v7 = vpack.c.bf16 %v2599_v35, %v2598_v6 }
 0xa65   :  { %v2300_v10 = vadd.f32 1.0, %v4039_v38  ;;  %v2732_v38 = vld [vmem:[#allocation44] sm:$0xff] }
 0xa66   :  { %4044 = vrcp.f32 %v2301_v5  ;;  %v2733_v5 = vld [vmem:[#allocation44 + $0x8] sm:$0xff] }
 0xa67   :  { %v4041_v11 = vpop.eup %4040  ;;  %4046 = vrcp.f32 %v2300_v10  ;;  %v3863_v10 = vpack.c.bf16 %v2733_v5, %v2732_v38 }
 0xa68   :  { %v4043_v9 = vpop.eup %4042  ;;  %v2303_v13 = vadd.f32 1.0, %v4041_v11  ;;  %v3180_v11 = vld [vmem:[#allocation40] ss:$0 sm:$0xff] }
 0xa69   :  { %v2302_v14 = vadd.f32 1.0, %v4043_v9  ;;  %3864 = vmatprep.subr.bf16.mxu0 %v3863_v10 }
 0xa6a   :  { %4048 = vrcp.f32 %v2303_v13  ;;  %3866 = vmatpush3.bf16.msra.mxu0 %v3863_v10 }
 0xa6b   :  { %4050 = vrcp.f32 %v2302_v14 }
 0xa70   :  { %v4045_v16 = vpop.eup %4044 }
 0xa71   :  { %v4047_v12 = vpop.eup %4046  ;;  %v2313_v17 = vmul.f32 %v4045_v16, %v2275_v63 }
 0xa72   :  { %v2312_v19 = vmul.f32 %v4047_v12, %v2270_v1 }
 0xa73   :  { %v5553_v25 = vadd.f32 %v4117_v18, %v2313_v17 }
 0xa74   :  { %v4049_v15 = vpop.eup %4048  ;;  %v5551_v22 = vadd.f32 %v4116_v20, %v2312_v19 }
 0xa75   :  { %v4051_v23 = vpop.eup %4050  ;;  %v2315_v26 = vmul.f32 %v4049_v15, %v2285_v28  ;;  %v2596_v28 = vld [vmem:[#allocation41] sm:$0xff] }
 0xa76   :  { %v2314_v21 = vmul.f32 %v4051_v23, %v2280_v4  ;;  %3686 = vmatprep.mubr.msk.f32.mxu1 %vm534_vm0, %v5551_v22  ;;  %v3855_v4 = vpack.c.bf16 %v2597_v30, %v2596_v28 }
 0xa77   :  { %3687 = vmatmul.mubr.msk.f32.vlgmr.msra.gmra.mrb[58].mxu1 %vm534_vm0, %v5553_v25  ;;  %v5561_v24 = vadd.f32 %v4119_v33, %v2315_v26 }
 0xa78   :  { %v5559_v31 = vadd.f32 %v4118_v29, %v2314_v21  ;;  %3850 = vmatpush3.bf16.msra.mxu1 %v3847_v41 }
 0xa79   :  { %3852 = vmatprep.subr.bf16.mxu1 %v3851_v44 }
 0xa7a   :  { %3689 = vmatprep.mubr.msk.f32.mxu1 %vm534_vm0, %v5559_v31 }
 0xa7b   :  { %3690 = vmatmul.mubr.msk.f32.gmra.mrb[60].mxu1 %vm534_vm0, %v5561_v24 }
 0xa7c   :  { %3854 = vmatpush3.bf16.msra.mxu1 %v3851_v44 }
 0xa7d   :  { %3856 = vmatprep.subr.bf16.mxu1 %v3855_v4 }
 0xb4a   :  { %v3688_v43 = vpop.f32.mrb[58].mxu1 }
 0xb4b   :  { %v2415_v47 = vadd.f32 %v3688_v43, %v3171_v36  ;;  %v2409_v46 = vpop.f32.mrb[59].mxu1 }
 0xb4c   :  { %v2410_v48 = vadd.f32 %v3171_v36, %v2409_v46 }
 0xb4d   :  { %v3177_v49 = vmul.f32 -1.442695, %v2415_v47 }
 0xb4e   :  { %v3176_v50 = vmul.f32 -1.442695, %v2410_v48  ;;  %v3691_v51 = vpop.f32.mrb[60].mxu1 }
 0xb4f   :  { %4052 = vpow2.f32 %v3177_v49  ;;  %v2425_v52 = vadd.f32 %v3691_v51, %v3171_v36  ;;  %v2419_v53 = vpop.f32.mrb[61].mxu1 }
 0xb50   :  { %4054 = vpow2.f32 %v3176_v50  ;;  %v2420_v55 = vadd.f32 %v3171_v36, %v2419_v53 }
 0xb51   :  { %v3179_v54 = vmul.f32 -1.442695, %v2425_v52 }
 0xb52   :  { %v3178_v57 = vmul.f32 -1.442695, %v2420_v55 }
 0xb53   :  { %4056 = vpow2.f32 %v3179_v54  ;;  %v2735_v54 = vld [vmem:[#allocation44 + $0x18] sm:$0xff] }
 0xb54   :  { %4058 = vpow2.f32 %v3178_v57 }
 0xb59   :  { %v4053_v59 = vpop.eup %4052 }
 0xb5a   :  { %v4055_v56 = vpop.eup %4054  ;;  %v2441_v58 = vadd.f32 1.0, %v4053_v59  ;;  %v2877_v59 = vld [vmem:[#allocation47] sm:$0xf] }
 0xb5b   :  { %v2440_v61 = vadd.f32 1.0, %v4055_v56  ;;  %v4123_v56 = vld [vmem:[#allocation5 + $0x18] sm:$0x3f] }
 0xb5c   :  { %4060 = vrcp.f32 %v2441_v58  ;;  %v3189_v58 = vld [vmem:[#allocation43] ss:$0 sm:$0xff] }
 0xb5d   :  { %v4057_v39 = vpop.eup %4056  ;;  %4062 = vrcp.f32 %v2440_v61 }
 0xb5e   :  { %v4059_v27 = vpop.eup %4058  ;;  %v2443_v62 = vadd.f32 1.0, %v4057_v39 }
 0xb5f   :  { %v2442_v8 = vadd.f32 1.0, %v4059_v27 }
 0xb60   :  { %4064 = vrcp.f32 %v2443_v62 }
 0xb61   :  { %4066 = vrcp.f32 %v2442_v8 }
 0xb66   :  { %v4061_v60 = vpop.eup %4060 }
 0xb67   :  { %v4063_v0 = vpop.eup %4062  ;;  %v2453_v40 = vmul.f32 %v4061_v60, %v2415_v47 }
 0xb68   :  { %v2452_v63 = vmul.f32 %v4063_v0, %v2410_v48 }
 0xb6a   :  { %v4065_v1 = vpop.eup %4064  ;;  %3700 = vmatprep.mubr.msk.f32.mxu1 %vm534_vm0, %v2452_v63 }
 0xb6b   :  { %v4067_v45 = vpop.eup %4066  ;;  %3701 = vmatmul.mubr.msk.f32.vlgmr.msra.gmra.mrb[62].mxu1 %vm534_vm0, %v2453_v40  ;;  %v2455_v2 = vmul.f32 %v4065_v1, %v2425_v52 }
 0xb6c   :  { %v2454_v3 = vmul.f32 %v4067_v45, %v2420_v55  ;;  %3858 = vmatpush3.bf16.msra.mxu1 %v3855_v4 }
 0xb6d   :  { %3860 = vmatprep.subr.bf16.mxu1 %v3859_v7 }
 0xb6e   :  { %3703 = vmatprep.mubr.msk.f32.mxu1 %vm534_vm0, %v2454_v3 }
 0xb6f   :  { %3704 = vmatmul.mubr.msk.f32.gmra.mrb[64].mxu1 %vm534_vm0, %v2455_v2 }
 0xb70   :  { %3862 = vmatpush3.bf16.msra.mxu1 %v3859_v7 }
 0xb71   :  { %3734 = vmatprep.subr.msk.mxu1 %vm798_vm1, %v2877_v59 }
 0xc3e   :  { %v3702_v9 = vpop.f32.mrb[62].mxu1 }
 0xc3f   :  { %v2551_v13 = vadd.f32 %v3702_v9, %v3180_v11  ;;  %v2545_v14 = vpop.f32.mrb[63].mxu1 }
 0xc40   :  { %v2546_v16 = vadd.f32 %v3180_v11, %v2545_v14 }
 0xc41   :  { %v3186_v12 = vmul.f32 -1.442695, %v2551_v13 }
 0xc42   :  { %v3185_v17 = vmul.f32 -1.442695, %v2546_v16  ;;  %v3705_v19 = vpop.f32.mrb[64].mxu1 }
 0xc43   :  { %4068 = vpow2.f32 %v3186_v12  ;;  %v2561_v15 = vadd.f32 %v3705_v19, %v3180_v11  ;;  %v2555_v20 = vpop.f32.mrb[65].mxu1 }
 0xc44   :  { %4070 = vpow2.f32 %v3185_v17  ;;  %v2556_v23 = vadd.f32 %v3180_v11, %v2555_v20 }
 0xc45   :  { %v3188_v18 = vmul.f32 -1.442695, %v2561_v15 }
 0xc46   :  { %v3187_v26 = vmul.f32 -1.442695, %v2556_v23 }
 0xc47   :  { %4072 = vpow2.f32 %v3188_v18 }
 0xc48   :  { %4074 = vpow2.f32 %v3187_v26 }
 0xc4d   :  { %v4069_v21 = vpop.eup %4068 }
 0xc4e   :  { %v4071_v29 = vpop.eup %4070  ;;  %v2577_v33 = vadd.f32 1.0, %v4069_v21 }
 0xc4f   :  { %v2576_v34 = vadd.f32 1.0, %v4071_v29 }
 0xc50   :  { %4076 = vrcp.f32 %v2577_v33 }
 0xc51   :  { %v4073_v37 = vpop.eup %4072  ;;  %4078 = vrcp.f32 %v2576_v34 }
 0xc52   :  { %v4075_v41 = vpop.eup %4074  ;;  %v2579_v32 = vadd.f32 1.0, %v4073_v37 }
 0xc53   :  { %v2578_v42 = vadd.f32 1.0, %v4075_v41 }
 0xc54   :  { %4080 = vrcp.f32 %v2579_v32 }
 0xc55   :  { %4082 = vrcp.f32 %v2578_v42 }
 0xc5a   :  { %v4077_v44 = vpop.eup %4076 }
 0xc5b   :  { %v4079_v36 = vpop.eup %4078  ;;  %v2589_v43 = vmul.f32 %v4077_v44, %v2551_v13 }
 0xc5c   :  { %v2588_v47 = vmul.f32 %v4079_v36, %v2546_v16 }
 0xc5d   :  { %v5575_v50 = vadd.f32 %v2589_v43, %v5553_v25  ;;  %v2734_v25 = vld [vmem:[#allocation44 + $0x10] sm:$0xff] }
 0xc5e   :  { %v4081_v46 = vpop.eup %4080  ;;  %v5572_v48 = vadd.f32 %v2588_v47, %v5551_v22  ;;  %v4120_v22 = vld [vmem:[#allocation5] sm:$0xff]  ;;  %v3867_v57 = vpack.c.bf16 %v2735_v54, %v2734_v25 }
 0xc5f   :  { %v4083_v49 = vpop.eup %4082  ;;  %v2591_v51 = vmul.f32 %v4081_v46, %v2561_v15 }
 0xc60   :  { %v2590_v52 = vmul.f32 %v4083_v49, %v2556_v23  ;;  %3714 = vmatprep.mubr.msk.f32.mxu1 %vm534_vm0, %v5572_v48  ;;  %3868 = vmatprep.subr.bf16.mxu0 %v3867_v57  ;;  %v3198_v23 = vld [vmem:[#allocation46] ss:$0 sm:$0xff] }
 0xc61   :  { %3715 = vmatmul.mubr.msk.f32.vlgmr.msra.gmra.mrb[66].mxu1 %vm534_vm0, %v5575_v50  ;;  %v5585_v55 = vadd.f32 %v2591_v51, %v5561_v24  ;;  %3870 = vmatpush3.bf16.msra.mxu0 %v3867_v57  ;;  %v4122_v24 = vld [vmem:[#allocation5 + $0x10] sm:$0xff] }
 0xc62   :  { %v5582_v53 = vadd.f32 %v2590_v52, %v5559_v31  ;;  %3735 = vmatpush3.msk.msra.mxu1 %vm798_vm1, %v2877_v59  ;;  %v4121_v31 = vld [vmem:[#allocation5 + $0x8] sm:$0xff] }
 0xc64   :  { %3717 = vmatprep.mubr.msk.f32.mxu1 %vm534_vm0, %v5582_v53 }
 0xc65   :  { %3718 = vmatmul.mubr.msk.f32.gmra.mrb[68].mxu1 %vm534_vm0, %v5585_v55 }
 0xc66   :  { %3736 = vmatprep.mubr.msk.f32.mxu1 %vm785_vm2, %v4120_v22 }
 0xc69   :  { %3737 = vmatmul.mubr.msk.f32.vlgmr.msra.gmra.mrb[70].mxu1 %vm785_vm2, %v4121_v31 }
 0xc6a   :  { %3739 = vmatprep.mubr.msk.f32.mxu1 %vm785_vm2, %v4122_v24 }
 0xc6d   :  { %3740 = vmatmul.mubr.msk.f32.gmra.mrb[72].mxu1 %vm785_vm2, %v4123_v56 }
 0xd34   :  { %v3716_v61 = vpop.f32.mrb[66].mxu1 }
 0xd35   :  { %v2691_v39 = vadd.f32 %v3716_v61, %v3189_v58  ;;  %v2685_v27 = vpop.f32.mrb[67].mxu1 }
 0xd36   :  { %v2686_v62 = vadd.f32 %v3189_v58, %v2685_v27 }
 0xd37   :  { %v3195_v8 = vmul.f32 -1.442695, %v2691_v39 }
 0xd38   :  { %v3194_v60 = vmul.f32 -1.442695, %v2686_v62  ;;  %v3719_v0 = vpop.f32.mrb[68].mxu1 }
 0xd39   :  { %4084 = vpow2.f32 %v3195_v8  ;;  %v2701_v63 = vadd.f32 %v3719_v0, %v3189_v58  ;;  %v2695_v40 = vpop.f32.mrb[69].mxu1 }
 0xd3a   :  { %4086 = vpow2.f32 %v3194_v60  ;;  %v2696_v1 = vadd.f32 %v3189_v58, %v2695_v40 }
 0xd3b   :  { %v3197_v45 = vmul.f32 -1.442695, %v2701_v63 }
 0xd3c   :  { %v3196_v3 = vmul.f32 -1.442695, %v2696_v1  ;;  %v3738_v17 = vpop.f32.mrb[70].mxu1 }
 0xd3d   :  { %4088 = vpow2.f32 %v3197_v45  ;;  %v2947_v19 = vpop.f32.mrb[71].mxu1 }
 0xd3e   :  { %4090 = vpow2.f32 %v3196_v3 }
 0xd40   :  { %v3741_v15 = vpop.f32.mrb[72].mxu1 }
 0xd41   :  { %v2957_v20 = vpop.f32.mrb[73].mxu1 }
 0xd43   :  { %v4085_v2 = vpop.eup %4084 }
 0xd44   :  { %v4087_v28 = vpop.eup %4086  ;;  %v2717_v30 = vadd.f32 1.0, %v4085_v2 }
 0xd45   :  { %v2716_v4 = vadd.f32 1.0, %v4087_v28 }
 0xd46   :  { %4092 = vrcp.f32 %v2717_v30 }
 0xd47   :  { %v4089_v6 = vpop.eup %4088  ;;  %4094 = vrcp.f32 %v2716_v4 }
 0xd48   :  { %v4091_v35 = vpop.eup %4090  ;;  %v2719_v7 = vadd.f32 1.0, %v4089_v6 }
 0xd49   :  { %v2718_v38 = vadd.f32 1.0, %v4091_v35 }
 0xd4a   :  { %4096 = vrcp.f32 %v2719_v7 }
 0xd4b   :  { %4098 = vrcp.f32 %v2718_v38 }
 0xd50   :  { %v4093_v5 = vpop.eup %4092 }
 0xd51   :  { %v4095_v10 = vpop.eup %4094  ;;  %v2729_v9 = vmul.f32 %v4093_v5, %v2691_v39 }
 0xd52   :  { %v2728_v11 = vmul.f32 %v4095_v10, %v2686_v62 }
 0xd54   :  { %v4097_v13 = vpop.eup %4096  ;;  %3728 = vmatprep.mubr.msk.f32.mxu0 %vm534_vm0, %v2728_v11 }
 0xd55   :  { %v4099_v14 = vpop.eup %4098  ;;  %3729 = vmatmul.mubr.msk.f32.vlgmr.msra.gmra.mrb[68].mxu0 %vm534_vm0, %v2729_v9  ;;  %v2731_v12 = vmul.f32 %v4097_v13, %v2701_v63 }
 0xd56   :  { %v2730_v16 = vmul.f32 %v4099_v14, %v2696_v1 }
 0xd58   :  { %3731 = vmatprep.mubr.msk.f32.mxu0 %vm534_vm0, %v2730_v16 }
 0xd59   :  { %3732 = vmatmul.mubr.msk.f32.gmra.mrb[70].mxu0 %vm534_vm0, %v2731_v12 }
 0xe28   :  { %v3730_v18 = vpop.f32.mrb[68].mxu0 }
 0xe29   :  { %v2827_v26 = vadd.f32 %v3730_v18, %v3198_v23  ;;  %v2821_v21 = vpop.f32.mrb[69].mxu0 }
 0xe2a   :  { %v2822_v29 = vadd.f32 %v3198_v23, %v2821_v21 }
 0xe2b   :  { %v3204_v33 = vmul.f32 -1.442695, %v2827_v26 }
 0xe2c   :  { %v3203_v34 = vmul.f32 -1.442695, %v2822_v29  ;;  %v3733_v37 = vpop.f32.mrb[70].mxu0 }
 0xe2d   :  { %4100 = vpow2.f32 %v3204_v33  ;;  %v2837_v41 = vadd.f32 %v3733_v37, %v3198_v23  ;;  %v2831_v32 = vpop.f32.mrb[71].mxu0 }
 0xe2e   :  { %4102 = vpow2.f32 %v3203_v34  ;;  %v2832_v42 = vadd.f32 %v3198_v23, %v2831_v32 }
 0xe2f   :  { %v3206_v44 = vmul.f32 -1.442695, %v2837_v41 }
 0xe30   :  { %v3205_v36 = vmul.f32 -1.442695, %v2832_v42 }
 0xe31   :  { %4104 = vpow2.f32 %v3206_v44 }
 0xe32   :  { %4106 = vpow2.f32 %v3205_v36 }
 0xe37   :  { %v4101_v43 = vpop.eup %4100 }
 0xe38   :  { %v4103_v47 = vpop.eup %4102  ;;  %v2853_v46 = vadd.f32 1.0, %v4101_v43 }
 0xe39   :  { %v2852_v49 = vadd.f32 1.0, %v4103_v47 }
 0xe3a   :  { %4108 = vrcp.f32 %v2853_v46 }
 0xe3b   :  { %v4105_v51 = vpop.eup %4104  ;;  %4110 = vrcp.f32 %v2852_v49 }
 0xe3c   :  { %v4107_v52 = vpop.eup %4106  ;;  %v2855_v22 = vadd.f32 1.0, %v4105_v51 }
 0xe3d   :  { %v2854_v25 = vadd.f32 1.0, %v4107_v52 }
 0xe3e   :  { %4112 = vrcp.f32 %v2855_v22 }
 0xe3f   :  { %4114 = vrcp.f32 %v2854_v25 }
 0xe44   :  { %v4109_v54 = vpop.eup %4108 }
 0xe45   :  { %v4111_v57 = vpop.eup %4110  ;;  %v2865_v59 = vmul.f32 %v4109_v54, %v2827_v26 }
 0xe46   :  { %v2864_v31 = vmul.f32 %v4111_v57, %v2822_v29 }
 0xe47   :  { %v2869_v24 = vadd.f32 %v2865_v59, %v5575_v50 }
 0xe48   :  { %v4113_v56 = vpop.eup %4112  ;;  %v2868_v58 = vadd.f32 %v2864_v31, %v5572_v48 }
 0xe49   :  { %v4115_v61 = vpop.eup %4114  ;;  %v2867_v39 = vmul.f32 %v4113_v56, %v2837_v41  ;;  %2873 = vst.msk [vmem:[#allocation49 + $0x8] sm:$0xff] %vm534_vm0, %v2869_v24  ;;  %v2967_v27 = vmul.f32 %v3738_v17, %v2869_v24 }
 0xe4a   :  { %v2866_v62 = vmul.f32 %v4115_v61, %v2832_v42  ;;  %2872 = vst.msk [vmem:[#allocation49] sm:$0xff] %vm534_vm0, %v2868_v58  ;;  %v2966_v8 = vmul.f32 %v2947_v19, %v2868_v58 }
 0xe4b   :  { %2971 = vst.msk [vmem:[#allocation50 + $0x8] sm:$0xff] %vm534_vm0, %v2967_v27  ;;  %v2871_v60 = vadd.f32 %v2867_v39, %v5585_v55 }
 0xe4c   :  { %2970 = vst.msk [vmem:[#allocation50] sm:$0xff] %vm534_vm0, %v2966_v8  ;;  %v2870_v48 = vadd.f32 %v2866_v62, %v5582_v53 }
 0xe4d   :  { %2876 = vst.msk [vmem:[#allocation49 + $0x18] sm:$0x3f] %vm2875_vm13, %v2871_v60  ;;  %v2969_v50 = vmul.f32 %v3741_v15, %v2871_v60 }
 0xe4e   :  { %2874 = vst.msk [vmem:[#allocation49 + $0x10] sm:$0xff] %vm534_vm0, %v2870_v48  ;;  %v2968_v0 = vmul.f32 %v2957_v20, %v2870_v48 }
 0xe4f   :  { %2973 = vst.msk [vmem:[#allocation50 + $0x18] sm:$0x3f] %vm2875_vm13, %v2969_v50 }
 0xe50   :  { %4795 = shalt.err (!%p4792_p6)
}
 0xe51   :  { %s4796_s14 = scalar_lea.hbm %s5091_s12, 512 }
 0xe52   :  { %p4797_p7 = scmp.ne.s32.totalorder %s5091_s12, %s4796_s14  ;;  %p4800_p8 = scmp.lt.u32.totalorder %s4796_s14, %s5091_s12 }
 0xe54   :  { %p4802_p9 = pnand %p4800_p8, %p4797_p7 }
 0xe56   :  { %4805 = shalt.err (!%p4802_p9)
}
 0xe57   :  { %2985 = dma.vmem_to_hbm [thread:$0]  %s2980_s27, 512, %s5091_s12, [#allocation4], %s4897_s2, %s4897_s2, %s4898_s7   ;;  %2972 = vst.msk [vmem:[#allocation50 + $0x10] sm:$0xff] %vm534_vm0, %v2968_v0 }
 0xe58   :  { %s4806_s18 = scalar_lea.vmem %s5610_s3, 512  ;;  %p4811_p11 = scmp.lt.s32.totalorder %s5610_s3, %s5610_s3 }
 0xe59   :  { %p4807_p10 = scmp.ne.s32.totalorder %s5610_s3, %s4806_s18  ;;  %p4812_p12 = scmp.lt.s32.totalorder %s4806_s18, %s4806_s18 }
 0xe5b   :  { %p4813_p13 = por %p4812_p12, %p4811_p11 }
 0xe5d   :  { %p4814_p0 = pnand %p4813_p13, %p4807_p10 }
 0xe5f   :  { %4817 = shalt.err (!%p4814_p0)
}
 0xe60   :  { %s4818_s30 = scalar_lea.hbm %s5096_s5, 512 }
 0xe61   :  { %p4819_p1 = scmp.ne.s32.totalorder %s5096_s5, %s4818_s30  ;;  %p4822_p2 = scmp.lt.u32.totalorder %s4818_s30, %s5096_s5 }
 0xe63   :  { %p4824_p3 = pnand %p4822_p2, %p4819_p1 }
 0xe65   :  { %4827 = shalt.err (!%p4824_p3)
}
 0xe66   :  { %2997 = dma.vmem_to_hbm [thread:$0]  %s5610_s3, 512, %s5096_s5, [#allocation51], %s4897_s2, %s4897_s2, %s4898_s7  }
 0xe67   :  { %4860 = dma.done.wait [#allocation4], 512  }
 0xe68   :  { %4861 = vsyncadd [#allocation4], 4294966784 }
 0xe69   :  { %4862 = dma.done.wait [#allocation51], 512  }
 0xe6a   :  { %4863 = vsyncadd [#allocation51], 4294966784 }
 0xe6b   :  { %3004 = vsyncpa [#allocation3], 1 }
 0xe6c   :  { %3005 = vsyncpa [#allocation6], 1 }
 0xe6d   :  { %3006 = vsyncpa [#allocation9], 1 }
 0xe6e   :  { %3007 = vsyncpa [#allocation12], 1 }
 0xe6f   :  { %3008 = vsyncpa [#allocation15], 1 }
 0xe70   :  { %3009 = vsyncpa [#allocation18], 1 }
 0xe71   :  { %3010 = vsyncpa [#allocation21], 1 }
 0xe72   :  { %3011 = vsyncpa [#allocation24], 1 }
 0xe73   :  { %3012 = vsyncpa [#allocation27], 1 }
 0xe74   :  { %3013 = vsyncpa [#allocation30], 1 }
 0xe75   :  { %3014 = vsyncpa [#allocation33], 1 }
 0xe76   :  { %3015 = vsyncpa [#allocation36], 1 }
 0xe77   :  { %3016 = vsyncpa [#allocation39], 1 }
 0xe78   :  { %3017 = vsyncpa [#allocation42], 1 }
 0xe79   :  { %3018 = vsyncpa [#allocation45], 1 }
 0xe7a   :  { %3019 = vsyncpa [#allocation48], 1 }
 0xe7b   :  { %3020 = vsyncpa [#allocation4], 1 }
 0xe7c   :  { %3021 = vsyncpa [#allocation51], 1 }

</bundles_post_ra>
